<compile_context>
chip_gen: v7x
topology: tpu7x:2x2x1
jax: 0.10.0
libtpu: 0.0.40
codegen_flags: <defaults>
</compile_context>

<pallas_src>
import functools

import jax
import jax.numpy as jnp
from jax.experimental import pallas as pl
from jax.experimental.pallas import tpu as pltpu

N_STACK = 20
INITIAL_SHARPEN = 5.0


def _softmax(logits, approx):
    m = jnp.max(logits, axis=1, keepdims=True)
    e = jnp.exp(logits - m)
    s = jnp.sum(e, axis=1, keepdims=True)
    if approx:
        return e * pl.reciprocal(s, approx=True)
    return e / s


def _pow_int(x, p):
    """x ** p for a static positive integer p via multiplies (no EUP log/exp)."""
    acc = None
    base = x
    while p:
        if p & 1:
            acc = base if acc is None else acc * base
        p >>= 1
        if p:
            base = base * base
    return acc


def _rnn_stack_kernel(x_ref, ri_ref, g_ref, wh_ref, wheads_ref, embT_ref, sharp_ref,
                      out_ref, *, n_stack, vocab, int_sharp, unroll):
    T, B, D = x_ref.shape
    H = ri_ref.shape[-1]
    n = n_stack
    V = vocab

    # ---- loop-invariant loads (small; the big embT table is read at its use site) ----
    wh = wh_ref[...]            # [H, H]
    wheads = wheads_ref[...]    # [H, V+5]  = [fc | ops | choose], cat([hmod,hmod]) folded

    # combined pointer-shift matrix [n, 2n]: cols 0..n-1 give roll(+1), cols n..2n-1 roll(-1)
    row = jax.lax.broadcasted_iota(jnp.int32, (n, 2 * n), 0)
    col = jax.lax.broadcasted_iota(jnp.int32, (n, 2 * n), 1)
    cc = jnp.where(col < n, col, col - n)
    up = (col < n) & (((row + 1) % n) == cc)
    dn = (col >= n) & (((cc + 1) % n) == row)
    shift_both = (up | dn).astype(jnp.float32)

    # ---- initial recurrent state, carried in registers through the time loop ----
    h0 = jnp.zeros((B, H), jnp.float32)
    stack0 = jnp.full((B, n, D), 0.001, jnp.float32)          # zero_offset + 0.001
    ptr0 = (jax.lax.broadcasted_iota(jnp.int32, (B, n), 1) == 0).astype(jnp.float32)

    def step(t, carry):
        h, stack, ptr = carry
        x_t = x_ref[t]                                         # [B, D] raw embedding (pushed)
        ri = ri_ref[t]                                         # [B, H] = rnn_i(normalize(x_t))
        g5 = g_ref[t]                                          # [B, 5] gumbel noise (ops ++ choose)

        # h = tanh(rnn_i(normalize(x)) + rnn_h(h))
        h = jnp.tanh(ri + jnp.dot(h, wh, preferred_element_type=jnp.float32))
        hmod = 1.0 - jnp.maximum(h, 0.0)                       # cat([hmod,hmod]) folded in weights

        # all head logits in one MXU call: [semantic | ops | choose]
        head = jnp.dot(hmod, wheads, preferred_element_type=jnp.float32)   # [B, V+5]
        semantic = _softmax(head[:, :V], approx=True)                      # Softmax(fc(hmod))
        ops = _softmax(head[:, V:V + 3] + g5[:, 0:3], approx=False)        # GumbelSoftmax, tau=1
        choice = _softmax(head[:, V + 3:V + 5] + g5[:, 3:5], approx=True)  # GumbelSoftmax, tau=1
        p_push = ops[:, 0:1]
        p_pop = ops[:, 1:2]
        p_nop = ops[:, 2:3]

        # ---- differentiable stack: S.push_pop_nop(ss, sharp, push, pop, nop, x[:, i]) ----
        # TODO(synk): the `S` stack module is external to the provided snippet; standard
        # soft-stack semantics are assumed (read at pointer, roll pointer for push/pop,
        # mix by op probs, sharpen pointer with p**sharp then renormalize).
        pop_val = jnp.sum(ptr[:, :, None] * stack, axis=1)                 # [B, D] read at pointer

        shifts = jnp.dot(ptr, shift_both, preferred_element_type=jnp.float32)   # [B, 2n]
        ptr_push = shifts[:, :n]
        ptr_pop = shifts[:, n:]

        # softmax(ops) sums to 1 -> push/pop/nop mix collapses to a single lerp on the stack
        w_push = (p_push * ptr_push)[:, :, None]
        stack = stack + w_push * (x_t[:, None, :] - stack)

        new_ptr = p_push * ptr_push + p_pop * ptr_pop + p_nop * ptr
        if int_sharp is not None:
            sp = _pow_int(jnp.maximum(new_ptr, 0.0), int_sharp)            # no log/exp
        else:
            sp = jnp.exp(sharp_ref[0] * jnp.log(jnp.maximum(new_ptr, 1e-12)))
        ptr = sp / jnp.sum(sp, axis=1, keepdims=True)

        # syntactic = cosine_similarity(pop_val, embeddings); emb rows pre-normalized &
        # pre-transposed in the wrapper, so this is a plain matmul + one rsqrt.
        dots = jnp.dot(pop_val, embT_ref[...], preferred_element_type=jnp.float32)   # [B, V]
        inv_pv = jax.lax.rsqrt(
            jnp.maximum(jnp.sum(pop_val * pop_val, axis=1, keepdims=True), 1e-16))
        syntactic = dots * inv_pv

        # output = einsum('bc,bcv->bv', choice, stack([semantic, syntactic], dim=1))
        out_ref[t] = (choice[:, 0:1] * semantic
                      + choice[:, 1:2] * syntactic).astype(out_ref.dtype)
        return (h, stack, ptr)

    jax.lax.fori_loop(0, T, step, (h0, stack0, ptr0), unroll=unroll)


def make_params(key, vocab_size, input_dim, hidden_dim):
    ks = jax.random.split(key, 6)

    def lin(k, fan_in, shape):
        bound = 1.0 / float(fan_in) ** 0.5
        return jax.random.uniform(k, shape, jnp.float32, -bound, bound)

    return dict(
        emb=jax.random.normal(ks[0], (vocab_size, input_dim), jnp.float32),
        w_i=lin(ks[1], input_dim, (input_dim, hidden_dim)),
        w_h=lin(ks[2], hidden_dim, (hidden_dim, hidden_dim)),
        w_fc=lin(ks[3], 2 * hidden_dim, (2 * hidden_dim, vocab_size)),
        w_ops=lin(ks[4], 2 * hidden_dim, (2 * hidden_dim, 3)),
        w_choose=lin(ks[5], 2 * hidden_dim, (2 * hidden_dim, 2)),
        sharp=jnp.array([INITIAL_SHARPEN], jnp.float32),
    )


def rnn_stack_forward(x_ids, params, g_ops, g_choose, n_stack=N_STACK):
    emb = params["emb"]
    V, D = emb.shape
    H = params["w_h"].shape[0]
    B, T = x_ids.shape

    # ---- one-time preprocessing hoisted out of the recurrence (glue, runs in XLA) ----
    emb_norm = jnp.sqrt(jnp.sum(emb * emb, axis=1, keepdims=True))
    emb_n12 = emb / jnp.maximum(emb_norm, 1e-12)          # F.normalize(x, dim=1) on vocab rows
    ri_table = emb_n12 @ params["w_i"]                    # rnn_i applied to every vocab row
    emb_unitT = (emb / jnp.maximum(emb_norm, 1e-8)).T     # [D, V]: cosine denom folded + transposed

    x = jnp.take(emb, x_ids, axis=0)                      # [B, T, D]
    x_tm = jnp.transpose(x, (1, 0, 2))                    # [T, B, D]
    ri_tm = jnp.transpose(jnp.take(ri_table, x_ids, axis=0), (1, 0, 2))   # [T, B, H]

    # fold cat([hmod, hmod]) into head weights and fuse the three heads into one matmul
    wfc = params["w_fc"][:H] + params["w_fc"][H:]
    wops = params["w_ops"][:H] + params["w_ops"][H:]
    wch = params["w_choose"][:H] + params["w_choose"][H:]
    w_heads = jnp.concatenate([wfc, wops, wch], axis=1)   # [H, V+5]

    g5 = jnp.concatenate([g_ops, g_choose], axis=-1)      # [T, B, 5] single noise tensor

    # static decision: integer-valued sharp -> multiply chain instead of exp/log in-kernel
    int_sharp = None
    try:
        sv = float(jax.device_get(params["sharp"]).reshape(-1)[0])
        if abs(sv - round(sv)) < 1e-6 and 1 <= round(sv) <= 16:
            int_sharp = int(round(sv))
    except Exception:
        int_sharp = None                                  # traced sharp -> exp/log path

    unroll = True if T <= 16 else 2

    kernel = functools.partial(_rnn_stack_kernel, n_stack=n_stack, vocab=V,
                               int_sharp=int_sharp, unroll=unroll)

    def full(shape):
        return pl.BlockSpec(shape, lambda i, _s=shape: (0,) * len(_s))

    grid_spec = pltpu.PrefetchScalarGridSpec(
        num_scalar_prefetch=0,
        grid=(1,),                                        # single invocation; time loop in-kernel
        in_specs=[
            full((T, B, D)),                              # raw embeddings (pushed onto the stack)
            full((T, B, H)),                              # precomputed rnn_i(normalize(x))
            full((T, B, 5)),                              # fused gumbel noise (ops ++ choose)
            full((H, H)),                                 # rnn_h weight
            full((H, V + 5)),                             # fused head weights [fc | ops | choose]
            full((D, V)),                                 # unit-norm embedding table, transposed
            pl.BlockSpec(memory_space=pltpu.MemorySpace.SMEM),   # sharp (scalar, used iff non-int)
        ],
        out_specs=full((T, B, V)),
    )

    out_tm = pl.pallas_call(
        kernel,
        out_shape=jax.ShapeDtypeStruct((T, B, V), jnp.float32),
        grid_spec=grid_spec,
        compiler_params=pltpu.CompilerParams(dimension_semantics=("arbitrary",)),
    )(x_tm, ri_tm, g5, params["w_h"], w_heads, emb_unitT, params["sharp"])

    return jnp.transpose(out_tm, (1, 0, 2))               # [B, T, V]


def rnn_stack_reference(x_ids, params, g_ops, g_choose, n_stack=N_STACK):
    """Pure-JAX reference mirroring the original PyTorch forward math (unfused)."""
    emb = params["emb"]
    V, D = emb.shape
    H = params["w_h"].shape[0]
    B, T = x_ids.shape
    x = jnp.take(emb, x_ids, axis=0)
    h = jnp.zeros((B, H), jnp.float32)
    stack = jnp.full((B, n_stack, D), 0.001, jnp.float32)
    ptr = jnp.zeros((B, n_stack), jnp.float32).at[:, 0].set(1.0)
    sharp = params["sharp"][0]
    outs = []
    for i in range(T):
        x_t = x[:, i]
        x_n = x_t / jnp.maximum(jnp.sqrt(jnp.sum(x_t * x_t, axis=1, keepdims=True)), 1e-12)
        h = jnp.tanh(x_n @ params["w_i"] + h @ params["w_h"])
        hmod = 1.0 - jnp.maximum(h, 0.0)
        hmod = jnp.concatenate([hmod, hmod], axis=1)
        ops = jax.nn.softmax(hmod @ params["w_ops"] + g_ops[i], axis=1)
        p_push, p_pop, p_nop = ops[:, 0:1], ops[:, 1:2], ops[:, 2:3]
        pop_val = jnp.sum(ptr[:, :, None] * stack, axis=1)
        ptr_push = jnp.roll(ptr, 1, axis=1)
        ptr_pop = jnp.roll(ptr, -1, axis=1)
        stack_push = stack * (1 - ptr_push[:, :, None]) + x_t[:, None, :] * ptr_push[:, :, None]
        new_stack = p_push[:, :, None] * stack_push + (p_pop + p_nop)[:, :, None] * stack
        new_ptr = p_push * ptr_push + p_pop * ptr_pop + p_nop * ptr
        sp = jnp.exp(sharp * jnp.log(jnp.maximum(new_ptr, 1e-12)))
        ptr = sp / jnp.sum(sp, axis=1, keepdims=True)
        stack = new_stack
        semantic = jax.nn.softmax(hmod @ params["w_fc"], axis=1)
        dots = pop_val @ emb.T
        pvn = jnp.maximum(jnp.sqrt(jnp.sum(pop_val * pop_val, axis=1, keepdims=True)), 1e-8)
        en = jnp.maximum(jnp.sqrt(jnp.sum(emb * emb, axis=1, keepdims=True)), 1e-8)
        syntactic = dots / (pvn * en.T)
        choice = jax.nn.softmax(hmod @ params["w_choose"] + g_choose[i], axis=1)
        outs.append(choice[:, 0:1] * semantic + choice[:, 1:2] * syntactic)
    return jnp.stack(outs, axis=1)


if __name__ == "__main__":
    B, T = 2, 8
    V, D, H = 16, 256, 32            # vocab, input_dim (VEC_SIZE), hidden_dim

    key = jax.random.PRNGKey(0)
    kp, kx, kg1, kg2 = jax.random.split(key, 4)
    params = make_params(kp, V, D, H)
    x_ids = jax.random.randint(kx, (B, T), 0, V)
    # TODO(synk): the custom GumbelSoftmax class is not in the snippet; standard soft Gumbel
    # (softmax(logits + g), g ~ Gumbel(0,1), tau=1, hard=False) with noise drawn in glue.
    g_ops = jax.random.gumbel(kg1, (T, B, 3), jnp.float32)
    g_choose = jax.random.gumbel(kg2, (T, B, 2), jnp.float32)

    out = rnn_stack_forward(x_ids, params, g_ops, g_choose)
    out = jax.block_until_ready(out)

    ref = rnn_stack_reference(x_ids, params, g_ops, g_choose)
    assert out.shape == (B, T, V)
    assert bool(jnp.all(jnp.isfinite(out)))
    assert bool(jnp.allclose(out, ref, atol=2e-3, rtol=2e-3))
    print("KERNEL_OK")
</pallas_src>

<mosaic_0001>
module attributes {stable_mosaic.version = 11 : i64} {
  func.func @_rnn_stack_kernel(%arg0: i32, %arg1: memref<8x2x256xf32, #tpu.memory_space<vmem>>, %arg2: memref<8x2x32xf32, #tpu.memory_space<vmem>>, %arg3: memref<8x2x5xf32, #tpu.memory_space<vmem>>, %arg4: memref<32x32xf32, #tpu.memory_space<vmem>>, %arg5: memref<32x21xf32, #tpu.memory_space<vmem>>, %arg6: memref<256x16xf32, #tpu.memory_space<vmem>>, %arg7: memref<1xf32, #tpu.memory_space<smem>>, %arg8: memref<8x2x16xf32, #tpu.memory_space<vmem>>) attributes {dimension_semantics = [#tpu.dimension_semantics<arbitrary>], iteration_bounds = array<i64: 1>, scalar_prefetch = 0 : i64, scratch_operands = 0 : i64, tpu.core_type = #tpu.core_type<tc>, window_params = [{pipeline_mode = #tpu.pipeline_mode<synchronous>, transform_indices = @transform_0, window_bounds = array<i64: 8, 2, 256>}, {pipeline_mode = #tpu.pipeline_mode<synchronous>, transform_indices = @transform_1, window_bounds = array<i64: 8, 2, 32>}, {pipeline_mode = #tpu.pipeline_mode<synchronous>, transform_indices = @transform_2, window_bounds = array<i64: 8, 2, 5>}, {pipeline_mode = #tpu.pipeline_mode<synchronous>, transform_indices = @transform_3, window_bounds = array<i64: 32, 32>}, {pipeline_mode = #tpu.pipeline_mode<synchronous>, transform_indices = @transform_4, window_bounds = array<i64: 32, 21>}, {pipeline_mode = #tpu.pipeline_mode<synchronous>, transform_indices = @transform_5, window_bounds = array<i64: 256, 16>}, {transform_indices = @transform_6, window_bounds = array<i64: 1>}, {pipeline_mode = #tpu.pipeline_mode<synchronous>, transform_indices = @transform_7, window_bounds = array<i64: 8, 2, 16>}]} {
    %c0 = arith.constant 0 : index
    %c0_0 = arith.constant 0 : index
    %0 = vector.load %arg4[%c0, %c0_0] : memref<32x32xf32, #tpu.memory_space<vmem>>, vector<32x32xf32>
    %c0_1 = arith.constant 0 : index
    %c0_2 = arith.constant 0 : index
    %1 = vector.load %arg5[%c0_1, %c0_2] : memref<32x21xf32, #tpu.memory_space<vmem>>, vector<32x21xf32>
    %2 = tpu.iota {dimensions = array<i32: 0>} : vector<20x40xi32>
    %3 = tpu.iota {dimensions = array<i32: 1>} : vector<20x40xi32>
    %c20_i32 = arith.constant 20 : i32
    %4 = vector.broadcast %c20_i32 : i32 to vector<20x40xi32>
    %5 = arith.cmpi slt, %3, %4 : vector<20x40xi32>
    %c20_i32_3 = arith.constant 20 : i32
    %6 = vector.broadcast %c20_i32_3 : i32 to vector<20x40xi32>
    %7 = arith.subi %3, %6 : vector<20x40xi32>
    %8 = arith.select %5, %3, %7 : vector<20x40xi1>, vector<20x40xi32>
    %c20_i32_4 = arith.constant 20 : i32
    %9 = vector.broadcast %c20_i32_4 : i32 to vector<20x40xi32>
    %10 = arith.cmpi slt, %3, %9 : vector<20x40xi32>
    %c1_i32 = arith.constant 1 : i32
    %11 = vector.broadcast %c1_i32 : i32 to vector<20x40xi32>
    %12 = arith.addi %2, %11 : vector<20x40xi32>
    %c20_i32_5 = arith.constant 20 : i32
    %c0_i32 = arith.constant 0 : i32
    %13 = arith.cmpi eq, %c20_i32_5, %c0_i32 : i32
    %c1_i32_6 = arith.constant 1 : i32
    %14 = arith.select %13, %c1_i32_6, %c20_i32_5 : i32
    %15 = vector.broadcast %14 : i32 to vector<20x40xi32>
    %16 = arith.remsi %12, %15 : vector<20x40xi32>
    %c0_i32_7 = arith.constant 0 : i32
    %17 = vector.broadcast %c0_i32_7 : i32 to vector<20x40xi32>
    %18 = arith.cmpi ne, %16, %17 : vector<20x40xi32>
    %c0_i32_8 = arith.constant 0 : i32
    %19 = vector.broadcast %c0_i32_8 : i32 to vector<20x40xi32>
    %20 = arith.cmpi slt, %16, %19 : vector<20x40xi32>
    %c0_i32_9 = arith.constant 0 : i32
    %21 = arith.cmpi slt, %14, %c0_i32_9 : i32
    %22 = vector.broadcast %21 : i1 to vector<20x40xi1>
    %23 = vector.broadcast %22 : vector<20x40xi1> to vector<20x40xi1>
    %24 = arith.xori %20, %23 : vector<20x40xi1>
    %25 = arith.andi %24, %18 : vector<20x40xi1>
    %26 = vector.broadcast %14 : i32 to vector<20x40xi32>
    %27 = arith.addi %16, %26 : vector<20x40xi32>
    %28 = arith.select %25, %27, %16 : vector<20x40xi1>, vector<20x40xi32>
    %29 = arith.cmpi eq, %28, %8 : vector<20x40xi32>
    %30 = arith.andi %10, %29 : vector<20x40xi1>
    %c20_i32_10 = arith.constant 20 : i32
    %31 = vector.broadcast %c20_i32_10 : i32 to vector<20x40xi32>
    %32 = arith.cmpi sge, %3, %31 : vector<20x40xi32>
    %c1_i32_11 = arith.constant 1 : i32
    %33 = vector.broadcast %c1_i32_11 : i32 to vector<20x40xi32>
    %34 = arith.addi %8, %33 : vector<20x40xi32>
    %c20_i32_12 = arith.constant 20 : i32
    %c0_i32_13 = arith.constant 0 : i32
    %35 = arith.cmpi eq, %c20_i32_12, %c0_i32_13 : i32
    %c1_i32_14 = arith.constant 1 : i32
    %36 = arith.select %35, %c1_i32_14, %c20_i32_12 : i32
    %37 = vector.broadcast %36 : i32 to vector<20x40xi32>
    %38 = arith.remsi %34, %37 : vector<20x40xi32>
    %c0_i32_15 = arith.constant 0 : i32
    %39 = vector.broadcast %c0_i32_15 : i32 to vector<20x40xi32>
    %40 = arith.cmpi ne, %38, %39 : vector<20x40xi32>
    %c0_i32_16 = arith.constant 0 : i32
    %41 = vector.broadcast %c0_i32_16 : i32 to vector<20x40xi32>
    %42 = arith.cmpi slt, %38, %41 : vector<20x40xi32>
    %c0_i32_17 = arith.constant 0 : i32
    %43 = arith.cmpi slt, %36, %c0_i32_17 : i32
    %44 = vector.broadcast %43 : i1 to vector<20x40xi1>
    %45 = vector.broadcast %44 : vector<20x40xi1> to vector<20x40xi1>
    %46 = arith.xori %42, %45 : vector<20x40xi1>
    %47 = arith.andi %46, %40 : vector<20x40xi1>
    %48 = vector.broadcast %36 : i32 to vector<20x40xi32>
    %49 = arith.addi %38, %48 : vector<20x40xi32>
    %50 = arith.select %47, %49, %38 : vector<20x40xi1>, vector<20x40xi32>
    %51 = arith.cmpi eq, %50, %2 : vector<20x40xi32>
    %52 = arith.andi %32, %51 : vector<20x40xi1>
    %53 = arith.ori %30, %52 : vector<20x40xi1>
    %54 = arith.extui %53 : vector<20x40xi1> to vector<20x40xi32>
    %55 = arith.sitofp %54 : vector<20x40xi32> to vector<20x40xf32>
    %cst = arith.constant 0.000000e+00 : f32
    %56 = vector.broadcast %cst : f32 to vector<2x32xf32>
    %cst_18 = arith.constant 1.000000e-03 : f32
    %57 = vector.broadcast %cst_18 : f32 to vector<2x20x256xf32>
    %58 = tpu.iota {dimensions = array<i32: 1>} : vector<2x20xi32>
    %c0_i32_19 = arith.constant 0 : i32
    %59 = vector.broadcast %c0_i32_19 : i32 to vector<2x20xi32>
    %60 = arith.cmpi eq, %58, %59 : vector<2x20xi32>
    %61 = arith.extui %60 : vector<2x20xi1> to vector<2x20xi32>
    %62 = arith.sitofp %61 : vector<2x20xi32> to vector<2x20xf32>
    %c0_i32_20 = arith.constant 0 : i32
    %63 = arith.index_cast %c0_i32_20 : i32 to index
    %c0_21 = arith.constant 0 : index
    %c0_22 = arith.constant 0 : index
    %64 = vector.load %arg1[%63, %c0_21, %c0_22] : memref<8x2x256xf32, #tpu.memory_space<vmem>>, vector<1x2x256xf32>
    %65 = vector.shape_cast %64 : vector<1x2x256xf32> to vector<2x256xf32>
    %66 = arith.index_cast %c0_i32_20 : i32 to index
    %c0_23 = arith.constant 0 : index
    %c0_24 = arith.constant 0 : index
    %67 = vector.load %arg2[%66, %c0_23, %c0_24] : memref<8x2x32xf32, #tpu.memory_space<vmem>>, vector<1x2x32xf32>
    %68 = vector.shape_cast %67 : vector<1x2x32xf32> to vector<2x32xf32>
    %69 = arith.index_cast %c0_i32_20 : i32 to index
    %c0_25 = arith.constant 0 : index
    %c0_26 = arith.constant 0 : index
    %70 = vector.load %arg3[%69, %c0_25, %c0_26] : memref<8x2x5xf32, #tpu.memory_space<vmem>>, vector<1x2x5xf32>
    %71 = vector.shape_cast %70 : vector<1x2x5xf32> to vector<2x5xf32>
    %cst_27 = arith.constant dense<0.000000e+00> : vector<2x32xf32>
    %72 = tpu.matmul %56, %0, %cst_27 {dimension_numbers = #tpu.dot_dimension_numbers<[1], [0], [0], [1], [0, 0, 1, 1], [], []>} : vector<2x32xf32>, vector<32x32xf32>, vector<2x32xf32> -> vector<2x32xf32>
    %73 = arith.addf %68, %72 : vector<2x32xf32>
    %74 = math.tanh %73 : vector<2x32xf32>
    %cst_28 = arith.constant 0.000000e+00 : f32
    %75 = vector.broadcast %cst_28 : f32 to vector<2x32xf32>
    %76 = arith.maximumf %74, %75 : vector<2x32xf32>
    %cst_29 = arith.constant 1.000000e+00 : f32
    %77 = vector.broadcast %cst_29 : f32 to vector<2x32xf32>
    %78 = arith.subf %77, %76 : vector<2x32xf32>
    %cst_30 = arith.constant dense<0.000000e+00> : vector<2x21xf32>
    %79 = tpu.matmul %78, %1, %cst_30 {dimension_numbers = #tpu.dot_dimension_numbers<[1], [0], [0], [1], [0, 0, 1, 1], [], []>} : vector<2x32xf32>, vector<32x21xf32>, vector<2x21xf32> -> vector<2x21xf32>
    %80 = vector.extract_strided_slice %79 {offsets = [0, 0], sizes = [2, 16], strides = [1, 1]} : vector<2x21xf32> to vector<2x16xf32>
    %cst_31 = arith.constant dense<0xFF800000> : vector<2xf32>
    %81 = vector.multi_reduction <maximumf>, %80, %cst_31 [1] : vector<2x16xf32> to vector<2xf32>
    %82 = vector.shape_cast %81 : vector<2xf32> to vector<2x1xf32>
    %83 = vector.broadcast %82 : vector<2x1xf32> to vector<2x16xf32>
    %84 = arith.subf %80, %83 : vector<2x16xf32>
    %85 = math.exp %84 : vector<2x16xf32>
    %cst_32 = arith.constant dense<0.000000e+00> : vector<2xf32>
    %86 = vector.multi_reduction <add>, %85, %cst_32 [1] : vector<2x16xf32> to vector<2xf32>
    %87 = vector.shape_cast %86 : vector<2xf32> to vector<2x1xf32>
    %88 = tpu.reciprocal %87 {approx = true} : vector<2x1xf32> -> vector<2x1xf32>
    %89 = vector.broadcast %88 : vector<2x1xf32> to vector<2x16xf32>
    %90 = arith.mulf %85, %89 : vector<2x16xf32>
    %91 = vector.extract_strided_slice %79 {offsets = [0, 16], sizes = [2, 3], strides = [1, 1]} : vector<2x21xf32> to vector<2x3xf32>
    %92 = vector.extract_strided_slice %71 {offsets = [0, 0], sizes = [2, 3], strides = [1, 1]} : vector<2x5xf32> to vector<2x3xf32>
    %93 = arith.addf %91, %92 : vector<2x3xf32>
    %cst_33 = arith.constant dense<0xFF800000> : vector<2xf32>
    %94 = vector.multi_reduction <maximumf>, %93, %cst_33 [1] : vector<2x3xf32> to vector<2xf32>
    %95 = vector.shape_cast %94 : vector<2xf32> to vector<2x1xf32>
    %96 = vector.broadcast %95 : vector<2x1xf32> to vector<2x3xf32>
    %97 = arith.subf %93, %96 : vector<2x3xf32>
    %98 = math.exp %97 : vector<2x3xf32>
    %cst_34 = arith.constant dense<0.000000e+00> : vector<2xf32>
    %99 = vector.multi_reduction <add>, %98, %cst_34 [1] : vector<2x3xf32> to vector<2xf32>
    %100 = vector.shape_cast %99 : vector<2xf32> to vector<2x1xf32>
    %101 = vector.broadcast %100 : vector<2x1xf32> to vector<2x3xf32>
    %102 = arith.divf %98, %101 : vector<2x3xf32>
    %103 = vector.extract_strided_slice %79 {offsets = [0, 19], sizes = [2, 2], strides = [1, 1]} : vector<2x21xf32> to vector<2x2xf32>
    %104 = vector.extract_strided_slice %71 {offsets = [0, 3], sizes = [2, 2], strides = [1, 1]} : vector<2x5xf32> to vector<2x2xf32>
    %105 = arith.addf %103, %104 : vector<2x2xf32>
    %cst_35 = arith.constant dense<0xFF800000> : vector<2xf32>
    %106 = vector.multi_reduction <maximumf>, %105, %cst_35 [1] : vector<2x2xf32> to vector<2xf32>
    %107 = vector.shape_cast %106 : vector<2xf32> to vector<2x1xf32>
    %108 = vector.broadcast %107 : vector<2x1xf32> to vector<2x2xf32>
    %109 = arith.subf %105, %108 : vector<2x2xf32>
    %110 = math.exp %109 : vector<2x2xf32>
    %cst_36 = arith.constant dense<0.000000e+00> : vector<2xf32>
    %111 = vector.multi_reduction <add>, %110, %cst_36 [1] : vector<2x2xf32> to vector<2xf32>
    %112 = vector.shape_cast %111 : vector<2xf32> to vector<2x1xf32>
    %113 = tpu.reciprocal %112 {approx = true} : vector<2x1xf32> -> vector<2x1xf32>
    %114 = vector.broadcast %113 : vector<2x1xf32> to vector<2x2xf32>
    %115 = arith.mulf %110, %114 : vector<2x2xf32>
    %116 = vector.extract_strided_slice %102 {offsets = [0, 0], sizes = [2, 1], strides = [1, 1]} : vector<2x3xf32> to vector<2x1xf32>
    %117 = vector.extract_strided_slice %102 {offsets = [0, 1], sizes = [2, 1], strides = [1, 1]} : vector<2x3xf32> to vector<2x1xf32>
    %118 = vector.extract_strided_slice %102 {offsets = [0, 2], sizes = [2, 1], strides = [1, 1]} : vector<2x3xf32> to vector<2x1xf32>
    %119 = vector.shape_cast %62 : vector<2x20xf32> to vector<2x20x1xf32>
    %120 = vector.broadcast %119 : vector<2x20x1xf32> to vector<2x20x256xf32>
    %121 = arith.mulf %120, %57 : vector<2x20x256xf32>
    %cst_37 = arith.constant dense<0.000000e+00> : vector<2x256xf32>
    %122 = vector.multi_reduction <add>, %121, %cst_37 [1] : vector<2x20x256xf32> to vector<2x256xf32>
    %cst_38 = arith.constant dense<0.000000e+00> : vector<2x40xf32>
    %123 = tpu.matmul %62, %55, %cst_38 {dimension_numbers = #tpu.dot_dimension_numbers<[1], [0], [0], [1], [0, 0, 1, 1], [], []>} : vector<2x20xf32>, vector<20x40xf32>, vector<2x40xf32> -> vector<2x40xf32>
    %124 = vector.extract_strided_slice %123 {offsets = [0, 0], sizes = [2, 20], strides = [1, 1]} : vector<2x40xf32> to vector<2x20xf32>
    %125 = vector.extract_strided_slice %123 {offsets = [0, 20], sizes = [2, 20], strides = [1, 1]} : vector<2x40xf32> to vector<2x20xf32>
    %126 = vector.broadcast %116 : vector<2x1xf32> to vector<2x20xf32>
    %127 = arith.mulf %126, %124 : vector<2x20xf32>
    %128 = vector.shape_cast %127 : vector<2x20xf32> to vector<2x20x1xf32>
    %129 = vector.shape_cast %65 : vector<2x256xf32> to vector<2x1x256xf32>
    %130 = vector.broadcast %129 : vector<2x1x256xf32> to vector<2x20x256xf32>
    %131 = arith.subf %130, %57 : vector<2x20x256xf32>
    %132 = vector.broadcast %128 : vector<2x20x1xf32> to vector<2x20x256xf32>
    %133 = arith.mulf %132, %131 : vector<2x20x256xf32>
    %134 = arith.addf %57, %133 : vector<2x20x256xf32>
    %135 = vector.broadcast %116 : vector<2x1xf32> to vector<2x20xf32>
    %136 = arith.mulf %135, %124 : vector<2x20xf32>
    %137 = vector.broadcast %117 : vector<2x1xf32> to vector<2x20xf32>
    %138 = arith.mulf %137, %125 : vector<2x20xf32>
    %139 = arith.addf %136, %138 : vector<2x20xf32>
    %140 = vector.broadcast %118 : vector<2x1xf32> to vector<2x20xf32>
    %141 = arith.mulf %140, %62 : vector<2x20xf32>
    %142 = arith.addf %139, %141 : vector<2x20xf32>
    %cst_39 = arith.constant 0.000000e+00 : f32
    %143 = vector.broadcast %cst_39 : f32 to vector<2x20xf32>
    %144 = arith.maximumf %142, %143 : vector<2x20xf32>
    %145 = arith.mulf %144, %144 : vector<2x20xf32>
    %146 = arith.mulf %145, %145 : vector<2x20xf32>
    %147 = arith.mulf %144, %146 : vector<2x20xf32>
    %cst_40 = arith.constant dense<0.000000e+00> : vector<2xf32>
    %148 = vector.multi_reduction <add>, %147, %cst_40 [1] : vector<2x20xf32> to vector<2xf32>
    %149 = vector.shape_cast %148 : vector<2xf32> to vector<2x1xf32>
    %150 = vector.broadcast %149 : vector<2x1xf32> to vector<2x20xf32>
    %151 = arith.divf %147, %150 : vector<2x20xf32>
    %c0_41 = arith.constant 0 : index
    %c0_42 = arith.constant 0 : index
    %152 = vector.load %arg6[%c0_41, %c0_42] : memref<256x16xf32, #tpu.memory_space<vmem>>, vector<256x16xf32>
    %cst_43 = arith.constant dense<0.000000e+00> : vector<2x16xf32>
    %153 = tpu.matmul %122, %152, %cst_43 {dimension_numbers = #tpu.dot_dimension_numbers<[1], [0], [0], [1], [0, 0, 1, 1], [], []>} : vector<2x256xf32>, vector<256x16xf32>, vector<2x16xf32> -> vector<2x16xf32>
    %154 = arith.mulf %122, %122 : vector<2x256xf32>
    %cst_44 = arith.constant dense<0.000000e+00> : vector<2xf32>
    %155 = vector.multi_reduction <add>, %154, %cst_44 [1] : vector<2x256xf32> to vector<2xf32>
    %156 = vector.shape_cast %155 : vector<2xf32> to vector<2x1xf32>
    %cst_45 = arith.constant 1.000000e-16 : f32
    %157 = vector.broadcast %cst_45 : f32 to vector<2x1xf32>
    %158 = arith.maximumf %156, %157 : vector<2x1xf32>
    %159 = math.rsqrt %158 : vector<2x1xf32>
    %160 = vector.broadcast %159 : vector<2x1xf32> to vector<2x16xf32>
    %161 = arith.mulf %153, %160 : vector<2x16xf32>
    %162 = vector.extract_strided_slice %115 {offsets = [0, 0], sizes = [2, 1], strides = [1, 1]} : vector<2x2xf32> to vector<2x1xf32>
    %163 = vector.broadcast %162 : vector<2x1xf32> to vector<2x16xf32>
    %164 = arith.mulf %163, %90 : vector<2x16xf32>
    %165 = vector.extract_strided_slice %115 {offsets = [0, 1], sizes = [2, 1], strides = [1, 1]} : vector<2x2xf32> to vector<2x1xf32>
    %166 = vector.broadcast %165 : vector<2x1xf32> to vector<2x16xf32>
    %167 = arith.mulf %166, %161 : vector<2x16xf32>
    %168 = arith.addf %164, %167 : vector<2x16xf32>
    %169 = arith.index_cast %c0_i32_20 : i32 to index
    %c0_46 = arith.constant 0 : index
    %c0_47 = arith.constant 0 : index
    %170 = vector.load %arg8[%169, %c0_46, %c0_47] : memref<8x2x16xf32, #tpu.memory_space<vmem>>, vector<1x2x16xf32>
    %171 = vector.shape_cast %170 : vector<1x2x16xf32> to vector<2x16xf32>
    %172 = vector.shape_cast %168 : vector<2x16xf32> to vector<1x2x16xf32>
    tpu.vector_store %arg8[%169, %c0_46, %c0_47], %172 {strides = array<i32>} : memref<8x2x16xf32, #tpu.memory_space<vmem>>, vector<1x2x16xf32>,
    %c1_i32_48 = arith.constant 1 : i32
    %173 = arith.index_cast %c1_i32_48 : i32 to index
    %c0_49 = arith.constant 0 : index
    %c0_50 = arith.constant 0 : index
    %174 = vector.load %arg1[%173, %c0_49, %c0_50] : memref<8x2x256xf32, #tpu.memory_space<vmem>>, vector<1x2x256xf32>
    %175 = vector.shape_cast %174 : vector<1x2x256xf32> to vector<2x256xf32>
    %176 = arith.index_cast %c1_i32_48 : i32 to index
    %c0_51 = arith.constant 0 : index
    %c0_52 = arith.constant 0 : index
    %177 = vector.load %arg2[%176, %c0_51, %c0_52] : memref<8x2x32xf32, #tpu.memory_space<vmem>>, vector<1x2x32xf32>
    %178 = vector.shape_cast %177 : vector<1x2x32xf32> to vector<2x32xf32>
    %179 = arith.index_cast %c1_i32_48 : i32 to index
    %c0_53 = arith.constant 0 : index
    %c0_54 = arith.constant 0 : index
    %180 = vector.load %arg3[%179, %c0_53, %c0_54] : memref<8x2x5xf32, #tpu.memory_space<vmem>>, vector<1x2x5xf32>
    %181 = vector.shape_cast %180 : vector<1x2x5xf32> to vector<2x5xf32>
    %cst_55 = arith.constant dense<0.000000e+00> : vector<2x32xf32>
    %182 = tpu.matmul %74, %0, %cst_55 {dimension_numbers = #tpu.dot_dimension_numbers<[1], [0], [0], [1], [0, 0, 1, 1], [], []>} : vector<2x32xf32>, vector<32x32xf32>, vector<2x32xf32> -> vector<2x32xf32>
    %183 = arith.addf %178, %182 : vector<2x32xf32>
    %184 = math.tanh %183 : vector<2x32xf32>
    %cst_56 = arith.constant 0.000000e+00 : f32
    %185 = vector.broadcast %cst_56 : f32 to vector<2x32xf32>
    %186 = arith.maximumf %184, %185 : vector<2x32xf32>
    %cst_57 = arith.constant 1.000000e+00 : f32
    %187 = vector.broadcast %cst_57 : f32 to vector<2x32xf32>
    %188 = arith.subf %187, %186 : vector<2x32xf32>
    %cst_58 = arith.constant dense<0.000000e+00> : vector<2x21xf32>
    %189 = tpu.matmul %188, %1, %cst_58 {dimension_numbers = #tpu.dot_dimension_numbers<[1], [0], [0], [1], [0, 0, 1, 1], [], []>} : vector<2x32xf32>, vector<32x21xf32>, vector<2x21xf32> -> vector<2x21xf32>
    %190 = vector.extract_strided_slice %189 {offsets = [0, 0], sizes = [2, 16], strides = [1, 1]} : vector<2x21xf32> to vector<2x16xf32>
    %cst_59 = arith.constant dense<0xFF800000> : vector<2xf32>
    %191 = vector.multi_reduction <maximumf>, %190, %cst_59 [1] : vector<2x16xf32> to vector<2xf32>
    %192 = vector.shape_cast %191 : vector<2xf32> to vector<2x1xf32>
    %193 = vector.broadcast %192 : vector<2x1xf32> to vector<2x16xf32>
    %194 = arith.subf %190, %193 : vector<2x16xf32>
    %195 = math.exp %194 : vector<2x16xf32>
    %cst_60 = arith.constant dense<0.000000e+00> : vector<2xf32>
    %196 = vector.multi_reduction <add>, %195, %cst_60 [1] : vector<2x16xf32> to vector<2xf32>
    %197 = vector.shape_cast %196 : vector<2xf32> to vector<2x1xf32>
    %198 = tpu.reciprocal %197 {approx = true} : vector<2x1xf32> -> vector<2x1xf32>
    %199 = vector.broadcast %198 : vector<2x1xf32> to vector<2x16xf32>
    %200 = arith.mulf %195, %199 : vector<2x16xf32>
    %201 = vector.extract_strided_slice %189 {offsets = [0, 16], sizes = [2, 3], strides = [1, 1]} : vector<2x21xf32> to vector<2x3xf32>
    %202 = vector.extract_strided_slice %181 {offsets = [0, 0], sizes = [2, 3], strides = [1, 1]} : vector<2x5xf32> to vector<2x3xf32>
    %203 = arith.addf %201, %202 : vector<2x3xf32>
    %cst_61 = arith.constant dense<0xFF800000> : vector<2xf32>
    %204 = vector.multi_reduction <maximumf>, %203, %cst_61 [1] : vector<2x3xf32> to vector<2xf32>
    %205 = vector.shape_cast %204 : vector<2xf32> to vector<2x1xf32>
    %206 = vector.broadcast %205 : vector<2x1xf32> to vector<2x3xf32>
    %207 = arith.subf %203, %206 : vector<2x3xf32>
    %208 = math.exp %207 : vector<2x3xf32>
    %cst_62 = arith.constant dense<0.000000e+00> : vector<2xf32>
    %209 = vector.multi_reduction <add>, %208, %cst_62 [1] : vector<2x3xf32> to vector<2xf32>
    %210 = vector.shape_cast %209 : vector<2xf32> to vector<2x1xf32>
    %211 = vector.broadcast %210 : vector<2x1xf32> to vector<2x3xf32>
    %212 = arith.divf %208, %211 : vector<2x3xf32>
    %213 = vector.extract_strided_slice %189 {offsets = [0, 19], sizes = [2, 2], strides = [1, 1]} : vector<2x21xf32> to vector<2x2xf32>
    %214 = vector.extract_strided_slice %181 {offsets = [0, 3], sizes = [2, 2], strides = [1, 1]} : vector<2x5xf32> to vector<2x2xf32>
    %215 = arith.addf %213, %214 : vector<2x2xf32>
    %cst_63 = arith.constant dense<0xFF800000> : vector<2xf32>
    %216 = vector.multi_reduction <maximumf>, %215, %cst_63 [1] : vector<2x2xf32> to vector<2xf32>
    %217 = vector.shape_cast %216 : vector<2xf32> to vector<2x1xf32>
    %218 = vector.broadcast %217 : vector<2x1xf32> to vector<2x2xf32>
    %219 = arith.subf %215, %218 : vector<2x2xf32>
    %220 = math.exp %219 : vector<2x2xf32>
    %cst_64 = arith.constant dense<0.000000e+00> : vector<2xf32>
    %221 = vector.multi_reduction <add>, %220, %cst_64 [1] : vector<2x2xf32> to vector<2xf32>
    %222 = vector.shape_cast %221 : vector<2xf32> to vector<2x1xf32>
    %223 = tpu.reciprocal %222 {approx = true} : vector<2x1xf32> -> vector<2x1xf32>
    %224 = vector.broadcast %223 : vector<2x1xf32> to vector<2x2xf32>
    %225 = arith.mulf %220, %224 : vector<2x2xf32>
    %226 = vector.extract_strided_slice %212 {offsets = [0, 0], sizes = [2, 1], strides = [1, 1]} : vector<2x3xf32> to vector<2x1xf32>
    %227 = vector.extract_strided_slice %212 {offsets = [0, 1], sizes = [2, 1], strides = [1, 1]} : vector<2x3xf32> to vector<2x1xf32>
    %228 = vector.extract_strided_slice %212 {offsets = [0, 2], sizes = [2, 1], strides = [1, 1]} : vector<2x3xf32> to vector<2x1xf32>
    %229 = vector.shape_cast %151 : vector<2x20xf32> to vector<2x20x1xf32>
    %230 = vector.broadcast %229 : vector<2x20x1xf32> to vector<2x20x256xf32>
    %231 = arith.mulf %230, %134 : vector<2x20x256xf32>
    %cst_65 = arith.constant dense<0.000000e+00> : vector<2x256xf32>
    %232 = vector.multi_reduction <add>, %231, %cst_65 [1] : vector<2x20x256xf32> to vector<2x256xf32>
    %cst_66 = arith.constant dense<0.000000e+00> : vector<2x40xf32>
    %233 = tpu.matmul %151, %55, %cst_66 {dimension_numbers = #tpu.dot_dimension_numbers<[1], [0], [0], [1], [0, 0, 1, 1], [], []>} : vector<2x20xf32>, vector<20x40xf32>, vector<2x40xf32> -> vector<2x40xf32>
    %234 = vector.extract_strided_slice %233 {offsets = [0, 0], sizes = [2, 20], strides = [1, 1]} : vector<2x40xf32> to vector<2x20xf32>
    %235 = vector.extract_strided_slice %233 {offsets = [0, 20], sizes = [2, 20], strides = [1, 1]} : vector<2x40xf32> to vector<2x20xf32>
    %236 = vector.broadcast %226 : vector<2x1xf32> to vector<2x20xf32>
    %237 = arith.mulf %236, %234 : vector<2x20xf32>
    %238 = vector.shape_cast %237 : vector<2x20xf32> to vector<2x20x1xf32>
    %239 = vector.shape_cast %175 : vector<2x256xf32> to vector<2x1x256xf32>
    %240 = vector.broadcast %239 : vector<2x1x256xf32> to vector<2x20x256xf32>
    %241 = arith.subf %240, %134 : vector<2x20x256xf32>
    %242 = vector.broadcast %238 : vector<2x20x1xf32> to vector<2x20x256xf32>
    %243 = arith.mulf %242, %241 : vector<2x20x256xf32>
    %244 = arith.addf %134, %243 : vector<2x20x256xf32>
    %245 = vector.broadcast %226 : vector<2x1xf32> to vector<2x20xf32>
    %246 = arith.mulf %245, %234 : vector<2x20xf32>
    %247 = vector.broadcast %227 : vector<2x1xf32> to vector<2x20xf32>
    %248 = arith.mulf %247, %235 : vector<2x20xf32>
    %249 = arith.addf %246, %248 : vector<2x20xf32>
    %250 = vector.broadcast %228 : vector<2x1xf32> to vector<2x20xf32>
    %251 = arith.mulf %250, %151 : vector<2x20xf32>
    %252 = arith.addf %249, %251 : vector<2x20xf32>
    %cst_67 = arith.constant 0.000000e+00 : f32
    %253 = vector.broadcast %cst_67 : f32 to vector<2x20xf32>
    %254 = arith.maximumf %252, %253 : vector<2x20xf32>
    %255 = arith.mulf %254, %254 : vector<2x20xf32>
    %256 = arith.mulf %255, %255 : vector<2x20xf32>
    %257 = arith.mulf %254, %256 : vector<2x20xf32>
    %cst_68 = arith.constant dense<0.000000e+00> : vector<2xf32>
    %258 = vector.multi_reduction <add>, %257, %cst_68 [1] : vector<2x20xf32> to vector<2xf32>
    %259 = vector.shape_cast %258 : vector<2xf32> to vector<2x1xf32>
    %260 = vector.broadcast %259 : vector<2x1xf32> to vector<2x20xf32>
    %261 = arith.divf %257, %260 : vector<2x20xf32>
    %c0_69 = arith.constant 0 : index
    %c0_70 = arith.constant 0 : index
    %262 = vector.load %arg6[%c0_69, %c0_70] : memref<256x16xf32, #tpu.memory_space<vmem>>, vector<256x16xf32>
    %cst_71 = arith.constant dense<0.000000e+00> : vector<2x16xf32>
    %263 = tpu.matmul %232, %262, %cst_71 {dimension_numbers = #tpu.dot_dimension_numbers<[1], [0], [0], [1], [0, 0, 1, 1], [], []>} : vector<2x256xf32>, vector<256x16xf32>, vector<2x16xf32> -> vector<2x16xf32>
    %264 = arith.mulf %232, %232 : vector<2x256xf32>
    %cst_72 = arith.constant dense<0.000000e+00> : vector<2xf32>
    %265 = vector.multi_reduction <add>, %264, %cst_72 [1] : vector<2x256xf32> to vector<2xf32>
    %266 = vector.shape_cast %265 : vector<2xf32> to vector<2x1xf32>
    %cst_73 = arith.constant 1.000000e-16 : f32
    %267 = vector.broadcast %cst_73 : f32 to vector<2x1xf32>
    %268 = arith.maximumf %266, %267 : vector<2x1xf32>
    %269 = math.rsqrt %268 : vector<2x1xf32>
    %270 = vector.broadcast %269 : vector<2x1xf32> to vector<2x16xf32>
    %271 = arith.mulf %263, %270 : vector<2x16xf32>
    %272 = vector.extract_strided_slice %225 {offsets = [0, 0], sizes = [2, 1], strides = [1, 1]} : vector<2x2xf32> to vector<2x1xf32>
    %273 = vector.broadcast %272 : vector<2x1xf32> to vector<2x16xf32>
    %274 = arith.mulf %273, %200 : vector<2x16xf32>
    %275 = vector.extract_strided_slice %225 {offsets = [0, 1], sizes = [2, 1], strides = [1, 1]} : vector<2x2xf32> to vector<2x1xf32>
    %276 = vector.broadcast %275 : vector<2x1xf32> to vector<2x16xf32>
    %277 = arith.mulf %276, %271 : vector<2x16xf32>
    %278 = arith.addf %274, %277 : vector<2x16xf32>
    %279 = arith.index_cast %c1_i32_48 : i32 to index
    %c0_74 = arith.constant 0 : index
    %c0_75 = arith.constant 0 : index
    %280 = vector.load %arg8[%279, %c0_74, %c0_75] : memref<8x2x16xf32, #tpu.memory_space<vmem>>, vector<1x2x16xf32>
    %281 = vector.shape_cast %280 : vector<1x2x16xf32> to vector<2x16xf32>
    %282 = vector.shape_cast %278 : vector<2x16xf32> to vector<1x2x16xf32>
    tpu.vector_store %arg8[%279, %c0_74, %c0_75], %282 {strides = array<i32>} : memref<8x2x16xf32, #tpu.memory_space<vmem>>, vector<1x2x16xf32>,
    %c2_i32 = arith.constant 2 : i32
    %283 = arith.index_cast %c2_i32 : i32 to index
    %c0_76 = arith.constant 0 : index
    %c0_77 = arith.constant 0 : index
    %284 = vector.load %arg1[%283, %c0_76, %c0_77] : memref<8x2x256xf32, #tpu.memory_space<vmem>>, vector<1x2x256xf32>
    %285 = vector.shape_cast %284 : vector<1x2x256xf32> to vector<2x256xf32>
    %286 = arith.index_cast %c2_i32 : i32 to index
    %c0_78 = arith.constant 0 : index
    %c0_79 = arith.constant 0 : index
    %287 = vector.load %arg2[%286, %c0_78, %c0_79] : memref<8x2x32xf32, #tpu.memory_space<vmem>>, vector<1x2x32xf32>
    %288 = vector.shape_cast %287 : vector<1x2x32xf32> to vector<2x32xf32>
    %289 = arith.index_cast %c2_i32 : i32 to index
    %c0_80 = arith.constant 0 : index
    %c0_81 = arith.constant 0 : index
    %290 = vector.load %arg3[%289, %c0_80, %c0_81] : memref<8x2x5xf32, #tpu.memory_space<vmem>>, vector<1x2x5xf32>
    %291 = vector.shape_cast %290 : vector<1x2x5xf32> to vector<2x5xf32>
    %cst_82 = arith.constant dense<0.000000e+00> : vector<2x32xf32>
    %292 = tpu.matmul %184, %0, %cst_82 {dimension_numbers = #tpu.dot_dimension_numbers<[1], [0], [0], [1], [0, 0, 1, 1], [], []>} : vector<2x32xf32>, vector<32x32xf32>, vector<2x32xf32> -> vector<2x32xf32>
    %293 = arith.addf %288, %292 : vector<2x32xf32>
    %294 = math.tanh %293 : vector<2x32xf32>
    %cst_83 = arith.constant 0.000000e+00 : f32
    %295 = vector.broadcast %cst_83 : f32 to vector<2x32xf32>
    %296 = arith.maximumf %294, %295 : vector<2x32xf32>
    %cst_84 = arith.constant 1.000000e+00 : f32
    %297 = vector.broadcast %cst_84 : f32 to vector<2x32xf32>
    %298 = arith.subf %297, %296 : vector<2x32xf32>
    %cst_85 = arith.constant dense<0.000000e+00> : vector<2x21xf32>
    %299 = tpu.matmul %298, %1, %cst_85 {dimension_numbers = #tpu.dot_dimension_numbers<[1], [0], [0], [1], [0, 0, 1, 1], [], []>} : vector<2x32xf32>, vector<32x21xf32>, vector<2x21xf32> -> vector<2x21xf32>
    %300 = vector.extract_strided_slice %299 {offsets = [0, 0], sizes = [2, 16], strides = [1, 1]} : vector<2x21xf32> to vector<2x16xf32>
    %cst_86 = arith.constant dense<0xFF800000> : vector<2xf32>
    %301 = vector.multi_reduction <maximumf>, %300, %cst_86 [1] : vector<2x16xf32> to vector<2xf32>
    %302 = vector.shape_cast %301 : vector<2xf32> to vector<2x1xf32>
    %303 = vector.broadcast %302 : vector<2x1xf32> to vector<2x16xf32>
    %304 = arith.subf %300, %303 : vector<2x16xf32>
    %305 = math.exp %304 : vector<2x16xf32>
    %cst_87 = arith.constant dense<0.000000e+00> : vector<2xf32>
    %306 = vector.multi_reduction <add>, %305, %cst_87 [1] : vector<2x16xf32> to vector<2xf32>
    %307 = vector.shape_cast %306 : vector<2xf32> to vector<2x1xf32>
    %308 = tpu.reciprocal %307 {approx = true} : vector<2x1xf32> -> vector<2x1xf32>
    %309 = vector.broadcast %308 : vector<2x1xf32> to vector<2x16xf32>
    %310 = arith.mulf %305, %309 : vector<2x16xf32>
    %311 = vector.extract_strided_slice %299 {offsets = [0, 16], sizes = [2, 3], strides = [1, 1]} : vector<2x21xf32> to vector<2x3xf32>
    %312 = vector.extract_strided_slice %291 {offsets = [0, 0], sizes = [2, 3], strides = [1, 1]} : vector<2x5xf32> to vector<2x3xf32>
    %313 = arith.addf %311, %312 : vector<2x3xf32>
    %cst_88 = arith.constant dense<0xFF800000> : vector<2xf32>
    %314 = vector.multi_reduction <maximumf>, %313, %cst_88 [1] : vector<2x3xf32> to vector<2xf32>
    %315 = vector.shape_cast %314 : vector<2xf32> to vector<2x1xf32>
    %316 = vector.broadcast %315 : vector<2x1xf32> to vector<2x3xf32>
    %317 = arith.subf %313, %316 : vector<2x3xf32>
    %318 = math.exp %317 : vector<2x3xf32>
    %cst_89 = arith.constant dense<0.000000e+00> : vector<2xf32>
    %319 = vector.multi_reduction <add>, %318, %cst_89 [1] : vector<2x3xf32> to vector<2xf32>
    %320 = vector.shape_cast %319 : vector<2xf32> to vector<2x1xf32>
    %321 = vector.broadcast %320 : vector<2x1xf32> to vector<2x3xf32>
    %322 = arith.divf %318, %321 : vector<2x3xf32>
    %323 = vector.extract_strided_slice %299 {offsets = [0, 19], sizes = [2, 2], strides = [1, 1]} : vector<2x21xf32> to vector<2x2xf32>
    %324 = vector.extract_strided_slice %291 {offsets = [0, 3], sizes = [2, 2], strides = [1, 1]} : vector<2x5xf32> to vector<2x2xf32>
    %325 = arith.addf %323, %324 : vector<2x2xf32>
    %cst_90 = arith.constant dense<0xFF800000> : vector<2xf32>
    %326 = vector.multi_reduction <maximumf>, %325, %cst_90 [1] : vector<2x2xf32> to vector<2xf32>
    %327 = vector.shape_cast %326 : vector<2xf32> to vector<2x1xf32>
    %328 = vector.broadcast %327 : vector<2x1xf32> to vector<2x2xf32>
    %329 = arith.subf %325, %328 : vector<2x2xf32>
    %330 = math.exp %329 : vector<2x2xf32>
    %cst_91 = arith.constant dense<0.000000e+00> : vector<2xf32>
    %331 = vector.multi_reduction <add>, %330, %cst_91 [1] : vector<2x2xf32> to vector<2xf32>
    %332 = vector.shape_cast %331 : vector<2xf32> to vector<2x1xf32>
    %333 = tpu.reciprocal %332 {approx = true} : vector<2x1xf32> -> vector<2x1xf32>
    %334 = vector.broadcast %333 : vector<2x1xf32> to vector<2x2xf32>
    %335 = arith.mulf %330, %334 : vector<2x2xf32>
    %336 = vector.extract_strided_slice %322 {offsets = [0, 0], sizes = [2, 1], strides = [1, 1]} : vector<2x3xf32> to vector<2x1xf32>
    %337 = vector.extract_strided_slice %322 {offsets = [0, 1], sizes = [2, 1], strides = [1, 1]} : vector<2x3xf32> to vector<2x1xf32>
    %338 = vector.extract_strided_slice %322 {offsets = [0, 2], sizes = [2, 1], strides = [1, 1]} : vector<2x3xf32> to vector<2x1xf32>
    %339 = vector.shape_cast %261 : vector<2x20xf32> to vector<2x20x1xf32>
    %340 = vector.broadcast %339 : vector<2x20x1xf32> to vector<2x20x256xf32>
    %341 = arith.mulf %340, %244 : vector<2x20x256xf32>
    %cst_92 = arith.constant dense<0.000000e+00> : vector<2x256xf32>
    %342 = vector.multi_reduction <add>, %341, %cst_92 [1] : vector<2x20x256xf32> to vector<2x256xf32>
    %cst_93 = arith.constant dense<0.000000e+00> : vector<2x40xf32>
    %343 = tpu.matmul %261, %55, %cst_93 {dimension_numbers = #tpu.dot_dimension_numbers<[1], [0], [0], [1], [0, 0, 1, 1], [], []>} : vector<2x20xf32>, vector<20x40xf32>, vector<2x40xf32> -> vector<2x40xf32>
    %344 = vector.extract_strided_slice %343 {offsets = [0, 0], sizes = [2, 20], strides = [1, 1]} : vector<2x40xf32> to vector<2x20xf32>
    %345 = vector.extract_strided_slice %343 {offsets = [0, 20], sizes = [2, 20], strides = [1, 1]} : vector<2x40xf32> to vector<2x20xf32>
    %346 = vector.broadcast %336 : vector<2x1xf32> to vector<2x20xf32>
    %347 = arith.mulf %346, %344 : vector<2x20xf32>
    %348 = vector.shape_cast %347 : vector<2x20xf32> to vector<2x20x1xf32>
    %349 = vector.shape_cast %285 : vector<2x256xf32> to vector<2x1x256xf32>
    %350 = vector.broadcast %349 : vector<2x1x256xf32> to vector<2x20x256xf32>
    %351 = arith.subf %350, %244 : vector<2x20x256xf32>
    %352 = vector.broadcast %348 : vector<2x20x1xf32> to vector<2x20x256xf32>
    %353 = arith.mulf %352, %351 : vector<2x20x256xf32>
    %354 = arith.addf %244, %353 : vector<2x20x256xf32>
    %355 = vector.broadcast %336 : vector<2x1xf32> to vector<2x20xf32>
    %356 = arith.mulf %355, %344 : vector<2x20xf32>
    %357 = vector.broadcast %337 : vector<2x1xf32> to vector<2x20xf32>
    %358 = arith.mulf %357, %345 : vector<2x20xf32>
    %359 = arith.addf %356, %358 : vector<2x20xf32>
    %360 = vector.broadcast %338 : vector<2x1xf32> to vector<2x20xf32>
    %361 = arith.mulf %360, %261 : vector<2x20xf32>
    %362 = arith.addf %359, %361 : vector<2x20xf32>
    %cst_94 = arith.constant 0.000000e+00 : f32
    %363 = vector.broadcast %cst_94 : f32 to vector<2x20xf32>
    %364 = arith.maximumf %362, %363 : vector<2x20xf32>
    %365 = arith.mulf %364, %364 : vector<2x20xf32>
    %366 = arith.mulf %365, %365 : vector<2x20xf32>
    %367 = arith.mulf %364, %366 : vector<2x20xf32>
    %cst_95 = arith.constant dense<0.000000e+00> : vector<2xf32>
    %368 = vector.multi_reduction <add>, %367, %cst_95 [1] : vector<2x20xf32> to vector<2xf32>
    %369 = vector.shape_cast %368 : vector<2xf32> to vector<2x1xf32>
    %370 = vector.broadcast %369 : vector<2x1xf32> to vector<2x20xf32>
    %371 = arith.divf %367, %370 : vector<2x20xf32>
    %c0_96 = arith.constant 0 : index
    %c0_97 = arith.constant 0 : index
    %372 = vector.load %arg6[%c0_96, %c0_97] : memref<256x16xf32, #tpu.memory_space<vmem>>, vector<256x16xf32>
    %cst_98 = arith.constant dense<0.000000e+00> : vector<2x16xf32>
    %373 = tpu.matmul %342, %372, %cst_98 {dimension_numbers = #tpu.dot_dimension_numbers<[1], [0], [0], [1], [0, 0, 1, 1], [], []>} : vector<2x256xf32>, vector<256x16xf32>, vector<2x16xf32> -> vector<2x16xf32>
    %374 = arith.mulf %342, %342 : vector<2x256xf32>
    %cst_99 = arith.constant dense<0.000000e+00> : vector<2xf32>
    %375 = vector.multi_reduction <add>, %374, %cst_99 [1] : vector<2x256xf32> to vector<2xf32>
    %376 = vector.shape_cast %375 : vector<2xf32> to vector<2x1xf32>
    %cst_100 = arith.constant 1.000000e-16 : f32
    %377 = vector.broadcast %cst_100 : f32 to vector<2x1xf32>
    %378 = arith.maximumf %376, %377 : vector<2x1xf32>
    %379 = math.rsqrt %378 : vector<2x1xf32>
    %380 = vector.broadcast %379 : vector<2x1xf32> to vector<2x16xf32>
    %381 = arith.mulf %373, %380 : vector<2x16xf32>
    %382 = vector.extract_strided_slice %335 {offsets = [0, 0], sizes = [2, 1], strides = [1, 1]} : vector<2x2xf32> to vector<2x1xf32>
    %383 = vector.broadcast %382 : vector<2x1xf32> to vector<2x16xf32>
    %384 = arith.mulf %383, %310 : vector<2x16xf32>
    %385 = vector.extract_strided_slice %335 {offsets = [0, 1], sizes = [2, 1], strides = [1, 1]} : vector<2x2xf32> to vector<2x1xf32>
    %386 = vector.broadcast %385 : vector<2x1xf32> to vector<2x16xf32>
    %387 = arith.mulf %386, %381 : vector<2x16xf32>
    %388 = arith.addf %384, %387 : vector<2x16xf32>
    %389 = arith.index_cast %c2_i32 : i32 to index
    %c0_101 = arith.constant 0 : index
    %c0_102 = arith.constant 0 : index
    %390 = vector.load %arg8[%389, %c0_101, %c0_102] : memref<8x2x16xf32, #tpu.memory_space<vmem>>, vector<1x2x16xf32>
    %391 = vector.shape_cast %390 : vector<1x2x16xf32> to vector<2x16xf32>
    %392 = vector.shape_cast %388 : vector<2x16xf32> to vector<1x2x16xf32>
    tpu.vector_store %arg8[%389, %c0_101, %c0_102], %392 {strides = array<i32>} : memref<8x2x16xf32, #tpu.memory_space<vmem>>, vector<1x2x16xf32>,
    %c3_i32 = arith.constant 3 : i32
    %393 = arith.index_cast %c3_i32 : i32 to index
    %c0_103 = arith.constant 0 : index
    %c0_104 = arith.constant 0 : index
    %394 = vector.load %arg1[%393, %c0_103, %c0_104] : memref<8x2x256xf32, #tpu.memory_space<vmem>>, vector<1x2x256xf32>
    %395 = vector.shape_cast %394 : vector<1x2x256xf32> to vector<2x256xf32>
    %396 = arith.index_cast %c3_i32 : i32 to index
    %c0_105 = arith.constant 0 : index
    %c0_106 = arith.constant 0 : index
    %397 = vector.load %arg2[%396, %c0_105, %c0_106] : memref<8x2x32xf32, #tpu.memory_space<vmem>>, vector<1x2x32xf32>
    %398 = vector.shape_cast %397 : vector<1x2x32xf32> to vector<2x32xf32>
    %399 = arith.index_cast %c3_i32 : i32 to index
    %c0_107 = arith.constant 0 : index
    %c0_108 = arith.constant 0 : index
    %400 = vector.load %arg3[%399, %c0_107, %c0_108] : memref<8x2x5xf32, #tpu.memory_space<vmem>>, vector<1x2x5xf32>
    %401 = vector.shape_cast %400 : vector<1x2x5xf32> to vector<2x5xf32>
    %cst_109 = arith.constant dense<0.000000e+00> : vector<2x32xf32>
    %402 = tpu.matmul %294, %0, %cst_109 {dimension_numbers = #tpu.dot_dimension_numbers<[1], [0], [0], [1], [0, 0, 1, 1], [], []>} : vector<2x32xf32>, vector<32x32xf32>, vector<2x32xf32> -> vector<2x32xf32>
    %403 = arith.addf %398, %402 : vector<2x32xf32>
    %404 = math.tanh %403 : vector<2x32xf32>
    %cst_110 = arith.constant 0.000000e+00 : f32
    %405 = vector.broadcast %cst_110 : f32 to vector<2x32xf32>
    %406 = arith.maximumf %404, %405 : vector<2x32xf32>
    %cst_111 = arith.constant 1.000000e+00 : f32
    %407 = vector.broadcast %cst_111 : f32 to vector<2x32xf32>
    %408 = arith.subf %407, %406 : vector<2x32xf32>
    %cst_112 = arith.constant dense<0.000000e+00> : vector<2x21xf32>
    %409 = tpu.matmul %408, %1, %cst_112 {dimension_numbers = #tpu.dot_dimension_numbers<[1], [0], [0], [1], [0, 0, 1, 1], [], []>} : vector<2x32xf32>, vector<32x21xf32>, vector<2x21xf32> -> vector<2x21xf32>
    %410 = vector.extract_strided_slice %409 {offsets = [0, 0], sizes = [2, 16], strides = [1, 1]} : vector<2x21xf32> to vector<2x16xf32>
    %cst_113 = arith.constant dense<0xFF800000> : vector<2xf32>
    %411 = vector.multi_reduction <maximumf>, %410, %cst_113 [1] : vector<2x16xf32> to vector<2xf32>
    %412 = vector.shape_cast %411 : vector<2xf32> to vector<2x1xf32>
    %413 = vector.broadcast %412 : vector<2x1xf32> to vector<2x16xf32>
    %414 = arith.subf %410, %413 : vector<2x16xf32>
    %415 = math.exp %414 : vector<2x16xf32>
    %cst_114 = arith.constant dense<0.000000e+00> : vector<2xf32>
    %416 = vector.multi_reduction <add>, %415, %cst_114 [1] : vector<2x16xf32> to vector<2xf32>
    %417 = vector.shape_cast %416 : vector<2xf32> to vector<2x1xf32>
    %418 = tpu.reciprocal %417 {approx = true} : vector<2x1xf32> -> vector<2x1xf32>
    %419 = vector.broadcast %418 : vector<2x1xf32> to vector<2x16xf32>
    %420 = arith.mulf %415, %419 : vector<2x16xf32>
    %421 = vector.extract_strided_slice %409 {offsets = [0, 16], sizes = [2, 3], strides = [1, 1]} : vector<2x21xf32> to vector<2x3xf32>
    %422 = vector.extract_strided_slice %401 {offsets = [0, 0], sizes = [2, 3], strides = [1, 1]} : vector<2x5xf32> to vector<2x3xf32>
    %423 = arith.addf %421, %422 : vector<2x3xf32>
    %cst_115 = arith.constant dense<0xFF800000> : vector<2xf32>
    %424 = vector.multi_reduction <maximumf>, %423, %cst_115 [1] : vector<2x3xf32> to vector<2xf32>
    %425 = vector.shape_cast %424 : vector<2xf32> to vector<2x1xf32>
    %426 = vector.broadcast %425 : vector<2x1xf32> to vector<2x3xf32>
    %427 = arith.subf %423, %426 : vector<2x3xf32>
    %428 = math.exp %427 : vector<2x3xf32>
    %cst_116 = arith.constant dense<0.000000e+00> : vector<2xf32>
    %429 = vector.multi_reduction <add>, %428, %cst_116 [1] : vector<2x3xf32> to vector<2xf32>
    %430 = vector.shape_cast %429 : vector<2xf32> to vector<2x1xf32>
    %431 = vector.broadcast %430 : vector<2x1xf32> to vector<2x3xf32>
    %432 = arith.divf %428, %431 : vector<2x3xf32>
    %433 = vector.extract_strided_slice %409 {offsets = [0, 19], sizes = [2, 2], strides = [1, 1]} : vector<2x21xf32> to vector<2x2xf32>
    %434 = vector.extract_strided_slice %401 {offsets = [0, 3], sizes = [2, 2], strides = [1, 1]} : vector<2x5xf32> to vector<2x2xf32>
    %435 = arith.addf %433, %434 : vector<2x2xf32>
    %cst_117 = arith.constant dense<0xFF800000> : vector<2xf32>
    %436 = vector.multi_reduction <maximumf>, %435, %cst_117 [1] : vector<2x2xf32> to vector<2xf32>
    %437 = vector.shape_cast %436 : vector<2xf32> to vector<2x1xf32>
    %438 = vector.broadcast %437 : vector<2x1xf32> to vector<2x2xf32>
    %439 = arith.subf %435, %438 : vector<2x2xf32>
    %440 = math.exp %439 : vector<2x2xf32>
    %cst_118 = arith.constant dense<0.000000e+00> : vector<2xf32>
    %441 = vector.multi_reduction <add>, %440, %cst_118 [1] : vector<2x2xf32> to vector<2xf32>
    %442 = vector.shape_cast %441 : vector<2xf32> to vector<2x1xf32>
    %443 = tpu.reciprocal %442 {approx = true} : vector<2x1xf32> -> vector<2x1xf32>
    %444 = vector.broadcast %443 : vector<2x1xf32> to vector<2x2xf32>
    %445 = arith.mulf %440, %444 : vector<2x2xf32>
    %446 = vector.extract_strided_slice %432 {offsets = [0, 0], sizes = [2, 1], strides = [1, 1]} : vector<2x3xf32> to vector<2x1xf32>
    %447 = vector.extract_strided_slice %432 {offsets = [0, 1], sizes = [2, 1], strides = [1, 1]} : vector<2x3xf32> to vector<2x1xf32>
    %448 = vector.extract_strided_slice %432 {offsets = [0, 2], sizes = [2, 1], strides = [1, 1]} : vector<2x3xf32> to vector<2x1xf32>
    %449 = vector.shape_cast %371 : vector<2x20xf32> to vector<2x20x1xf32>
    %450 = vector.broadcast %449 : vector<2x20x1xf32> to vector<2x20x256xf32>
    %451 = arith.mulf %450, %354 : vector<2x20x256xf32>
    %cst_119 = arith.constant dense<0.000000e+00> : vector<2x256xf32>
    %452 = vector.multi_reduction <add>, %451, %cst_119 [1] : vector<2x20x256xf32> to vector<2x256xf32>
    %cst_120 = arith.constant dense<0.000000e+00> : vector<2x40xf32>
    %453 = tpu.matmul %371, %55, %cst_120 {dimension_numbers = #tpu.dot_dimension_numbers<[1], [0], [0], [1], [0, 0, 1, 1], [], []>} : vector<2x20xf32>, vector<20x40xf32>, vector<2x40xf32> -> vector<2x40xf32>
    %454 = vector.extract_strided_slice %453 {offsets = [0, 0], sizes = [2, 20], strides = [1, 1]} : vector<2x40xf32> to vector<2x20xf32>
    %455 = vector.extract_strided_slice %453 {offsets = [0, 20], sizes = [2, 20], strides = [1, 1]} : vector<2x40xf32> to vector<2x20xf32>
    %456 = vector.broadcast %446 : vector<2x1xf32> to vector<2x20xf32>
    %457 = arith.mulf %456, %454 : vector<2x20xf32>
    %458 = vector.shape_cast %457 : vector<2x20xf32> to vector<2x20x1xf32>
    %459 = vector.shape_cast %395 : vector<2x256xf32> to vector<2x1x256xf32>
    %460 = vector.broadcast %459 : vector<2x1x256xf32> to vector<2x20x256xf32>
    %461 = arith.subf %460, %354 : vector<2x20x256xf32>
    %462 = vector.broadcast %458 : vector<2x20x1xf32> to vector<2x20x256xf32>
    %463 = arith.mulf %462, %461 : vector<2x20x256xf32>
    %464 = arith.addf %354, %463 : vector<2x20x256xf32>
    %465 = vector.broadcast %446 : vector<2x1xf32> to vector<2x20xf32>
    %466 = arith.mulf %465, %454 : vector<2x20xf32>
    %467 = vector.broadcast %447 : vector<2x1xf32> to vector<2x20xf32>
    %468 = arith.mulf %467, %455 : vector<2x20xf32>
    %469 = arith.addf %466, %468 : vector<2x20xf32>
    %470 = vector.broadcast %448 : vector<2x1xf32> to vector<2x20xf32>
    %471 = arith.mulf %470, %371 : vector<2x20xf32>
    %472 = arith.addf %469, %471 : vector<2x20xf32>
    %cst_121 = arith.constant 0.000000e+00 : f32
    %473 = vector.broadcast %cst_121 : f32 to vector<2x20xf32>
    %474 = arith.maximumf %472, %473 : vector<2x20xf32>
    %475 = arith.mulf %474, %474 : vector<2x20xf32>
    %476 = arith.mulf %475, %475 : vector<2x20xf32>
    %477 = arith.mulf %474, %476 : vector<2x20xf32>
    %cst_122 = arith.constant dense<0.000000e+00> : vector<2xf32>
    %478 = vector.multi_reduction <add>, %477, %cst_122 [1] : vector<2x20xf32> to vector<2xf32>
    %479 = vector.shape_cast %478 : vector<2xf32> to vector<2x1xf32>
    %480 = vector.broadcast %479 : vector<2x1xf32> to vector<2x20xf32>
    %481 = arith.divf %477, %480 : vector<2x20xf32>
    %c0_123 = arith.constant 0 : index
    %c0_124 = arith.constant 0 : index
    %482 = vector.load %arg6[%c0_123, %c0_124] : memref<256x16xf32, #tpu.memory_space<vmem>>, vector<256x16xf32>
    %cst_125 = arith.constant dense<0.000000e+00> : vector<2x16xf32>
    %483 = tpu.matmul %452, %482, %cst_125 {dimension_numbers = #tpu.dot_dimension_numbers<[1], [0], [0], [1], [0, 0, 1, 1], [], []>} : vector<2x256xf32>, vector<256x16xf32>, vector<2x16xf32> -> vector<2x16xf32>
    %484 = arith.mulf %452, %452 : vector<2x256xf32>
    %cst_126 = arith.constant dense<0.000000e+00> : vector<2xf32>
    %485 = vector.multi_reduction <add>, %484, %cst_126 [1] : vector<2x256xf32> to vector<2xf32>
    %486 = vector.shape_cast %485 : vector<2xf32> to vector<2x1xf32>
    %cst_127 = arith.constant 1.000000e-16 : f32
    %487 = vector.broadcast %cst_127 : f32 to vector<2x1xf32>
    %488 = arith.maximumf %486, %487 : vector<2x1xf32>
    %489 = math.rsqrt %488 : vector<2x1xf32>
    %490 = vector.broadcast %489 : vector<2x1xf32> to vector<2x16xf32>
    %491 = arith.mulf %483, %490 : vector<2x16xf32>
    %492 = vector.extract_strided_slice %445 {offsets = [0, 0], sizes = [2, 1], strides = [1, 1]} : vector<2x2xf32> to vector<2x1xf32>
    %493 = vector.broadcast %492 : vector<2x1xf32> to vector<2x16xf32>
    %494 = arith.mulf %493, %420 : vector<2x16xf32>
    %495 = vector.extract_strided_slice %445 {offsets = [0, 1], sizes = [2, 1], strides = [1, 1]} : vector<2x2xf32> to vector<2x1xf32>
    %496 = vector.broadcast %495 : vector<2x1xf32> to vector<2x16xf32>
    %497 = arith.mulf %496, %491 : vector<2x16xf32>
    %498 = arith.addf %494, %497 : vector<2x16xf32>
    %499 = arith.index_cast %c3_i32 : i32 to index
    %c0_128 = arith.constant 0 : index
    %c0_129 = arith.constant 0 : index
    %500 = vector.load %arg8[%499, %c0_128, %c0_129] : memref<8x2x16xf32, #tpu.memory_space<vmem>>, vector<1x2x16xf32>
    %501 = vector.shape_cast %500 : vector<1x2x16xf32> to vector<2x16xf32>
    %502 = vector.shape_cast %498 : vector<2x16xf32> to vector<1x2x16xf32>
    tpu.vector_store %arg8[%499, %c0_128, %c0_129], %502 {strides = array<i32>} : memref<8x2x16xf32, #tpu.memory_space<vmem>>, vector<1x2x16xf32>,
    %c4_i32 = arith.constant 4 : i32
    %503 = arith.index_cast %c4_i32 : i32 to index
    %c0_130 = arith.constant 0 : index
    %c0_131 = arith.constant 0 : index
    %504 = vector.load %arg1[%503, %c0_130, %c0_131] : memref<8x2x256xf32, #tpu.memory_space<vmem>>, vector<1x2x256xf32>
    %505 = vector.shape_cast %504 : vector<1x2x256xf32> to vector<2x256xf32>
    %506 = arith.index_cast %c4_i32 : i32 to index
    %c0_132 = arith.constant 0 : index
    %c0_133 = arith.constant 0 : index
    %507 = vector.load %arg2[%506, %c0_132, %c0_133] : memref<8x2x32xf32, #tpu.memory_space<vmem>>, vector<1x2x32xf32>
    %508 = vector.shape_cast %507 : vector<1x2x32xf32> to vector<2x32xf32>
    %509 = arith.index_cast %c4_i32 : i32 to index
    %c0_134 = arith.constant 0 : index
    %c0_135 = arith.constant 0 : index
    %510 = vector.load %arg3[%509, %c0_134, %c0_135] : memref<8x2x5xf32, #tpu.memory_space<vmem>>, vector<1x2x5xf32>
    %511 = vector.shape_cast %510 : vector<1x2x5xf32> to vector<2x5xf32>
    %cst_136 = arith.constant dense<0.000000e+00> : vector<2x32xf32>
    %512 = tpu.matmul %404, %0, %cst_136 {dimension_numbers = #tpu.dot_dimension_numbers<[1], [0], [0], [1], [0, 0, 1, 1], [], []>} : vector<2x32xf32>, vector<32x32xf32>, vector<2x32xf32> -> vector<2x32xf32>
    %513 = arith.addf %508, %512 : vector<2x32xf32>
    %514 = math.tanh %513 : vector<2x32xf32>
    %cst_137 = arith.constant 0.000000e+00 : f32
    %515 = vector.broadcast %cst_137 : f32 to vector<2x32xf32>
    %516 = arith.maximumf %514, %515 : vector<2x32xf32>
    %cst_138 = arith.constant 1.000000e+00 : f32
    %517 = vector.broadcast %cst_138 : f32 to vector<2x32xf32>
    %518 = arith.subf %517, %516 : vector<2x32xf32>
    %cst_139 = arith.constant dense<0.000000e+00> : vector<2x21xf32>
    %519 = tpu.matmul %518, %1, %cst_139 {dimension_numbers = #tpu.dot_dimension_numbers<[1], [0], [0], [1], [0, 0, 1, 1], [], []>} : vector<2x32xf32>, vector<32x21xf32>, vector<2x21xf32> -> vector<2x21xf32>
    %520 = vector.extract_strided_slice %519 {offsets = [0, 0], sizes = [2, 16], strides = [1, 1]} : vector<2x21xf32> to vector<2x16xf32>
    %cst_140 = arith.constant dense<0xFF800000> : vector<2xf32>
    %521 = vector.multi_reduction <maximumf>, %520, %cst_140 [1] : vector<2x16xf32> to vector<2xf32>
    %522 = vector.shape_cast %521 : vector<2xf32> to vector<2x1xf32>
    %523 = vector.broadcast %522 : vector<2x1xf32> to vector<2x16xf32>
    %524 = arith.subf %520, %523 : vector<2x16xf32>
    %525 = math.exp %524 : vector<2x16xf32>
    %cst_141 = arith.constant dense<0.000000e+00> : vector<2xf32>
    %526 = vector.multi_reduction <add>, %525, %cst_141 [1] : vector<2x16xf32> to vector<2xf32>
    %527 = vector.shape_cast %526 : vector<2xf32> to vector<2x1xf32>
    %528 = tpu.reciprocal %527 {approx = true} : vector<2x1xf32> -> vector<2x1xf32>
    %529 = vector.broadcast %528 : vector<2x1xf32> to vector<2x16xf32>
    %530 = arith.mulf %525, %529 : vector<2x16xf32>
    %531 = vector.extract_strided_slice %519 {offsets = [0, 16], sizes = [2, 3], strides = [1, 1]} : vector<2x21xf32> to vector<2x3xf32>
    %532 = vector.extract_strided_slice %511 {offsets = [0, 0], sizes = [2, 3], strides = [1, 1]} : vector<2x5xf32> to vector<2x3xf32>
    %533 = arith.addf %531, %532 : vector<2x3xf32>
    %cst_142 = arith.constant dense<0xFF800000> : vector<2xf32>
    %534 = vector.multi_reduction <maximumf>, %533, %cst_142 [1] : vector<2x3xf32> to vector<2xf32>
    %535 = vector.shape_cast %534 : vector<2xf32> to vector<2x1xf32>
    %536 = vector.broadcast %535 : vector<2x1xf32> to vector<2x3xf32>
    %537 = arith.subf %533, %536 : vector<2x3xf32>
    %538 = math.exp %537 : vector<2x3xf32>
    %cst_143 = arith.constant dense<0.000000e+00> : vector<2xf32>
    %539 = vector.multi_reduction <add>, %538, %cst_143 [1] : vector<2x3xf32> to vector<2xf32>
    %540 = vector.shape_cast %539 : vector<2xf32> to vector<2x1xf32>
    %541 = vector.broadcast %540 : vector<2x1xf32> to vector<2x3xf32>
    %542 = arith.divf %538, %541 : vector<2x3xf32>
    %543 = vector.extract_strided_slice %519 {offsets = [0, 19], sizes = [2, 2], strides = [1, 1]} : vector<2x21xf32> to vector<2x2xf32>
    %544 = vector.extract_strided_slice %511 {offsets = [0, 3], sizes = [2, 2], strides = [1, 1]} : vector<2x5xf32> to vector<2x2xf32>
    %545 = arith.addf %543, %544 : vector<2x2xf32>
    %cst_144 = arith.constant dense<0xFF800000> : vector<2xf32>
    %546 = vector.multi_reduction <maximumf>, %545, %cst_144 [1] : vector<2x2xf32> to vector<2xf32>
    %547 = vector.shape_cast %546 : vector<2xf32> to vector<2x1xf32>
    %548 = vector.broadcast %547 : vector<2x1xf32> to vector<2x2xf32>
    %549 = arith.subf %545, %548 : vector<2x2xf32>
    %550 = math.exp %549 : vector<2x2xf32>
    %cst_145 = arith.constant dense<0.000000e+00> : vector<2xf32>
    %551 = vector.multi_reduction <add>, %550, %cst_145 [1] : vector<2x2xf32> to vector<2xf32>
    %552 = vector.shape_cast %551 : vector<2xf32> to vector<2x1xf32>
    %553 = tpu.reciprocal %552 {approx = true} : vector<2x1xf32> -> vector<2x1xf32>
    %554 = vector.broadcast %553 : vector<2x1xf32> to vector<2x2xf32>
    %555 = arith.mulf %550, %554 : vector<2x2xf32>
    %556 = vector.extract_strided_slice %542 {offsets = [0, 0], sizes = [2, 1], strides = [1, 1]} : vector<2x3xf32> to vector<2x1xf32>
    %557 = vector.extract_strided_slice %542 {offsets = [0, 1], sizes = [2, 1], strides = [1, 1]} : vector<2x3xf32> to vector<2x1xf32>
    %558 = vector.extract_strided_slice %542 {offsets = [0, 2], sizes = [2, 1], strides = [1, 1]} : vector<2x3xf32> to vector<2x1xf32>
    %559 = vector.shape_cast %481 : vector<2x20xf32> to vector<2x20x1xf32>
    %560 = vector.broadcast %559 : vector<2x20x1xf32> to vector<2x20x256xf32>
    %561 = arith.mulf %560, %464 : vector<2x20x256xf32>
    %cst_146 = arith.constant dense<0.000000e+00> : vector<2x256xf32>
    %562 = vector.multi_reduction <add>, %561, %cst_146 [1] : vector<2x20x256xf32> to vector<2x256xf32>
    %cst_147 = arith.constant dense<0.000000e+00> : vector<2x40xf32>
    %563 = tpu.matmul %481, %55, %cst_147 {dimension_numbers = #tpu.dot_dimension_numbers<[1], [0], [0], [1], [0, 0, 1, 1], [], []>} : vector<2x20xf32>, vector<20x40xf32>, vector<2x40xf32> -> vector<2x40xf32>
    %564 = vector.extract_strided_slice %563 {offsets = [0, 0], sizes = [2, 20], strides = [1, 1]} : vector<2x40xf32> to vector<2x20xf32>
    %565 = vector.extract_strided_slice %563 {offsets = [0, 20], sizes = [2, 20], strides = [1, 1]} : vector<2x40xf32> to vector<2x20xf32>
    %566 = vector.broadcast %556 : vector<2x1xf32> to vector<2x20xf32>
    %567 = arith.mulf %566, %564 : vector<2x20xf32>
    %568 = vector.shape_cast %567 : vector<2x20xf32> to vector<2x20x1xf32>
    %569 = vector.shape_cast %505 : vector<2x256xf32> to vector<2x1x256xf32>
    %570 = vector.broadcast %569 : vector<2x1x256xf32> to vector<2x20x256xf32>
    %571 = arith.subf %570, %464 : vector<2x20x256xf32>
    %572 = vector.broadcast %568 : vector<2x20x1xf32> to vector<2x20x256xf32>
    %573 = arith.mulf %572, %571 : vector<2x20x256xf32>
    %574 = arith.addf %464, %573 : vector<2x20x256xf32>
    %575 = vector.broadcast %556 : vector<2x1xf32> to vector<2x20xf32>
    %576 = arith.mulf %575, %564 : vector<2x20xf32>
    %577 = vector.broadcast %557 : vector<2x1xf32> to vector<2x20xf32>
    %578 = arith.mulf %577, %565 : vector<2x20xf32>
    %579 = arith.addf %576, %578 : vector<2x20xf32>
    %580 = vector.broadcast %558 : vector<2x1xf32> to vector<2x20xf32>
    %581 = arith.mulf %580, %481 : vector<2x20xf32>
    %582 = arith.addf %579, %581 : vector<2x20xf32>
    %cst_148 = arith.constant 0.000000e+00 : f32
    %583 = vector.broadcast %cst_148 : f32 to vector<2x20xf32>
    %584 = arith.maximumf %582, %583 : vector<2x20xf32>
    %585 = arith.mulf %584, %584 : vector<2x20xf32>
    %586 = arith.mulf %585, %585 : vector<2x20xf32>
    %587 = arith.mulf %584, %586 : vector<2x20xf32>
    %cst_149 = arith.constant dense<0.000000e+00> : vector<2xf32>
    %588 = vector.multi_reduction <add>, %587, %cst_149 [1] : vector<2x20xf32> to vector<2xf32>
    %589 = vector.shape_cast %588 : vector<2xf32> to vector<2x1xf32>
    %590 = vector.broadcast %589 : vector<2x1xf32> to vector<2x20xf32>
    %591 = arith.divf %587, %590 : vector<2x20xf32>
    %c0_150 = arith.constant 0 : index
    %c0_151 = arith.constant 0 : index
    %592 = vector.load %arg6[%c0_150, %c0_151] : memref<256x16xf32, #tpu.memory_space<vmem>>, vector<256x16xf32>
    %cst_152 = arith.constant dense<0.000000e+00> : vector<2x16xf32>
    %593 = tpu.matmul %562, %592, %cst_152 {dimension_numbers = #tpu.dot_dimension_numbers<[1], [0], [0], [1], [0, 0, 1, 1], [], []>} : vector<2x256xf32>, vector<256x16xf32>, vector<2x16xf32> -> vector<2x16xf32>
    %594 = arith.mulf %562, %562 : vector<2x256xf32>
    %cst_153 = arith.constant dense<0.000000e+00> : vector<2xf32>
    %595 = vector.multi_reduction <add>, %594, %cst_153 [1] : vector<2x256xf32> to vector<2xf32>
    %596 = vector.shape_cast %595 : vector<2xf32> to vector<2x1xf32>
    %cst_154 = arith.constant 1.000000e-16 : f32
    %597 = vector.broadcast %cst_154 : f32 to vector<2x1xf32>
    %598 = arith.maximumf %596, %597 : vector<2x1xf32>
    %599 = math.rsqrt %598 : vector<2x1xf32>
    %600 = vector.broadcast %599 : vector<2x1xf32> to vector<2x16xf32>
    %601 = arith.mulf %593, %600 : vector<2x16xf32>
    %602 = vector.extract_strided_slice %555 {offsets = [0, 0], sizes = [2, 1], strides = [1, 1]} : vector<2x2xf32> to vector<2x1xf32>
    %603 = vector.broadcast %602 : vector<2x1xf32> to vector<2x16xf32>
    %604 = arith.mulf %603, %530 : vector<2x16xf32>
    %605 = vector.extract_strided_slice %555 {offsets = [0, 1], sizes = [2, 1], strides = [1, 1]} : vector<2x2xf32> to vector<2x1xf32>
    %606 = vector.broadcast %605 : vector<2x1xf32> to vector<2x16xf32>
    %607 = arith.mulf %606, %601 : vector<2x16xf32>
    %608 = arith.addf %604, %607 : vector<2x16xf32>
    %609 = arith.index_cast %c4_i32 : i32 to index
    %c0_155 = arith.constant 0 : index
    %c0_156 = arith.constant 0 : index
    %610 = vector.load %arg8[%609, %c0_155, %c0_156] : memref<8x2x16xf32, #tpu.memory_space<vmem>>, vector<1x2x16xf32>
    %611 = vector.shape_cast %610 : vector<1x2x16xf32> to vector<2x16xf32>
    %612 = vector.shape_cast %608 : vector<2x16xf32> to vector<1x2x16xf32>
    tpu.vector_store %arg8[%609, %c0_155, %c0_156], %612 {strides = array<i32>} : memref<8x2x16xf32, #tpu.memory_space<vmem>>, vector<1x2x16xf32>,
    %c5_i32 = arith.constant 5 : i32
    %613 = arith.index_cast %c5_i32 : i32 to index
    %c0_157 = arith.constant 0 : index
    %c0_158 = arith.constant 0 : index
    %614 = vector.load %arg1[%613, %c0_157, %c0_158] : memref<8x2x256xf32, #tpu.memory_space<vmem>>, vector<1x2x256xf32>
    %615 = vector.shape_cast %614 : vector<1x2x256xf32> to vector<2x256xf32>
    %616 = arith.index_cast %c5_i32 : i32 to index
    %c0_159 = arith.constant 0 : index
    %c0_160 = arith.constant 0 : index
    %617 = vector.load %arg2[%616, %c0_159, %c0_160] : memref<8x2x32xf32, #tpu.memory_space<vmem>>, vector<1x2x32xf32>
    %618 = vector.shape_cast %617 : vector<1x2x32xf32> to vector<2x32xf32>
    %619 = arith.index_cast %c5_i32 : i32 to index
    %c0_161 = arith.constant 0 : index
    %c0_162 = arith.constant 0 : index
    %620 = vector.load %arg3[%619, %c0_161, %c0_162] : memref<8x2x5xf32, #tpu.memory_space<vmem>>, vector<1x2x5xf32>
    %621 = vector.shape_cast %620 : vector<1x2x5xf32> to vector<2x5xf32>
    %cst_163 = arith.constant dense<0.000000e+00> : vector<2x32xf32>
    %622 = tpu.matmul %514, %0, %cst_163 {dimension_numbers = #tpu.dot_dimension_numbers<[1], [0], [0], [1], [0, 0, 1, 1], [], []>} : vector<2x32xf32>, vector<32x32xf32>, vector<2x32xf32> -> vector<2x32xf32>
    %623 = arith.addf %618, %622 : vector<2x32xf32>
    %624 = math.tanh %623 : vector<2x32xf32>
    %cst_164 = arith.constant 0.000000e+00 : f32
    %625 = vector.broadcast %cst_164 : f32 to vector<2x32xf32>
    %626 = arith.maximumf %624, %625 : vector<2x32xf32>
    %cst_165 = arith.constant 1.000000e+00 : f32
    %627 = vector.broadcast %cst_165 : f32 to vector<2x32xf32>
    %628 = arith.subf %627, %626 : vector<2x32xf32>
    %cst_166 = arith.constant dense<0.000000e+00> : vector<2x21xf32>
    %629 = tpu.matmul %628, %1, %cst_166 {dimension_numbers = #tpu.dot_dimension_numbers<[1], [0], [0], [1], [0, 0, 1, 1], [], []>} : vector<2x32xf32>, vector<32x21xf32>, vector<2x21xf32> -> vector<2x21xf32>
    %630 = vector.extract_strided_slice %629 {offsets = [0, 0], sizes = [2, 16], strides = [1, 1]} : vector<2x21xf32> to vector<2x16xf32>
    %cst_167 = arith.constant dense<0xFF800000> : vector<2xf32>
    %631 = vector.multi_reduction <maximumf>, %630, %cst_167 [1] : vector<2x16xf32> to vector<2xf32>
    %632 = vector.shape_cast %631 : vector<2xf32> to vector<2x1xf32>
    %633 = vector.broadcast %632 : vector<2x1xf32> to vector<2x16xf32>
    %634 = arith.subf %630, %633 : vector<2x16xf32>
    %635 = math.exp %634 : vector<2x16xf32>
    %cst_168 = arith.constant dense<0.000000e+00> : vector<2xf32>
    %636 = vector.multi_reduction <add>, %635, %cst_168 [1] : vector<2x16xf32> to vector<2xf32>
    %637 = vector.shape_cast %636 : vector<2xf32> to vector<2x1xf32>
    %638 = tpu.reciprocal %637 {approx = true} : vector<2x1xf32> -> vector<2x1xf32>
    %639 = vector.broadcast %638 : vector<2x1xf32> to vector<2x16xf32>
    %640 = arith.mulf %635, %639 : vector<2x16xf32>
    %641 = vector.extract_strided_slice %629 {offsets = [0, 16], sizes = [2, 3], strides = [1, 1]} : vector<2x21xf32> to vector<2x3xf32>
    %642 = vector.extract_strided_slice %621 {offsets = [0, 0], sizes = [2, 3], strides = [1, 1]} : vector<2x5xf32> to vector<2x3xf32>
    %643 = arith.addf %641, %642 : vector<2x3xf32>
    %cst_169 = arith.constant dense<0xFF800000> : vector<2xf32>
    %644 = vector.multi_reduction <maximumf>, %643, %cst_169 [1] : vector<2x3xf32> to vector<2xf32>
    %645 = vector.shape_cast %644 : vector<2xf32> to vector<2x1xf32>
    %646 = vector.broadcast %645 : vector<2x1xf32> to vector<2x3xf32>
    %647 = arith.subf %643, %646 : vector<2x3xf32>
    %648 = math.exp %647 : vector<2x3xf32>
    %cst_170 = arith.constant dense<0.000000e+00> : vector<2xf32>
    %649 = vector.multi_reduction <add>, %648, %cst_170 [1] : vector<2x3xf32> to vector<2xf32>
    %650 = vector.shape_cast %649 : vector<2xf32> to vector<2x1xf32>
    %651 = vector.broadcast %650 : vector<2x1xf32> to vector<2x3xf32>
    %652 = arith.divf %648, %651 : vector<2x3xf32>
    %653 = vector.extract_strided_slice %629 {offsets = [0, 19], sizes = [2, 2], strides = [1, 1]} : vector<2x21xf32> to vector<2x2xf32>
    %654 = vector.extract_strided_slice %621 {offsets = [0, 3], sizes = [2, 2], strides = [1, 1]} : vector<2x5xf32> to vector<2x2xf32>
    %655 = arith.addf %653, %654 : vector<2x2xf32>
    %cst_171 = arith.constant dense<0xFF800000> : vector<2xf32>
    %656 = vector.multi_reduction <maximumf>, %655, %cst_171 [1] : vector<2x2xf32> to vector<2xf32>
    %657 = vector.shape_cast %656 : vector<2xf32> to vector<2x1xf32>
    %658 = vector.broadcast %657 : vector<2x1xf32> to vector<2x2xf32>
    %659 = arith.subf %655, %658 : vector<2x2xf32>
    %660 = math.exp %659 : vector<2x2xf32>
    %cst_172 = arith.constant dense<0.000000e+00> : vector<2xf32>
    %661 = vector.multi_reduction <add>, %660, %cst_172 [1] : vector<2x2xf32> to vector<2xf32>
    %662 = vector.shape_cast %661 : vector<2xf32> to vector<2x1xf32>
    %663 = tpu.reciprocal %662 {approx = true} : vector<2x1xf32> -> vector<2x1xf32>
    %664 = vector.broadcast %663 : vector<2x1xf32> to vector<2x2xf32>
    %665 = arith.mulf %660, %664 : vector<2x2xf32>
    %666 = vector.extract_strided_slice %652 {offsets = [0, 0], sizes = [2, 1], strides = [1, 1]} : vector<2x3xf32> to vector<2x1xf32>
    %667 = vector.extract_strided_slice %652 {offsets = [0, 1], sizes = [2, 1], strides = [1, 1]} : vector<2x3xf32> to vector<2x1xf32>
    %668 = vector.extract_strided_slice %652 {offsets = [0, 2], sizes = [2, 1], strides = [1, 1]} : vector<2x3xf32> to vector<2x1xf32>
    %669 = vector.shape_cast %591 : vector<2x20xf32> to vector<2x20x1xf32>
    %670 = vector.broadcast %669 : vector<2x20x1xf32> to vector<2x20x256xf32>
    %671 = arith.mulf %670, %574 : vector<2x20x256xf32>
    %cst_173 = arith.constant dense<0.000000e+00> : vector<2x256xf32>
    %672 = vector.multi_reduction <add>, %671, %cst_173 [1] : vector<2x20x256xf32> to vector<2x256xf32>
    %cst_174 = arith.constant dense<0.000000e+00> : vector<2x40xf32>
    %673 = tpu.matmul %591, %55, %cst_174 {dimension_numbers = #tpu.dot_dimension_numbers<[1], [0], [0], [1], [0, 0, 1, 1], [], []>} : vector<2x20xf32>, vector<20x40xf32>, vector<2x40xf32> -> vector<2x40xf32>
    %674 = vector.extract_strided_slice %673 {offsets = [0, 0], sizes = [2, 20], strides = [1, 1]} : vector<2x40xf32> to vector<2x20xf32>
    %675 = vector.extract_strided_slice %673 {offsets = [0, 20], sizes = [2, 20], strides = [1, 1]} : vector<2x40xf32> to vector<2x20xf32>
    %676 = vector.broadcast %666 : vector<2x1xf32> to vector<2x20xf32>
    %677 = arith.mulf %676, %674 : vector<2x20xf32>
    %678 = vector.shape_cast %677 : vector<2x20xf32> to vector<2x20x1xf32>
    %679 = vector.shape_cast %615 : vector<2x256xf32> to vector<2x1x256xf32>
    %680 = vector.broadcast %679 : vector<2x1x256xf32> to vector<2x20x256xf32>
    %681 = arith.subf %680, %574 : vector<2x20x256xf32>
    %682 = vector.broadcast %678 : vector<2x20x1xf32> to vector<2x20x256xf32>
    %683 = arith.mulf %682, %681 : vector<2x20x256xf32>
    %684 = arith.addf %574, %683 : vector<2x20x256xf32>
    %685 = vector.broadcast %666 : vector<2x1xf32> to vector<2x20xf32>
    %686 = arith.mulf %685, %674 : vector<2x20xf32>
    %687 = vector.broadcast %667 : vector<2x1xf32> to vector<2x20xf32>
    %688 = arith.mulf %687, %675 : vector<2x20xf32>
    %689 = arith.addf %686, %688 : vector<2x20xf32>
    %690 = vector.broadcast %668 : vector<2x1xf32> to vector<2x20xf32>
    %691 = arith.mulf %690, %591 : vector<2x20xf32>
    %692 = arith.addf %689, %691 : vector<2x20xf32>
    %cst_175 = arith.constant 0.000000e+00 : f32
    %693 = vector.broadcast %cst_175 : f32 to vector<2x20xf32>
    %694 = arith.maximumf %692, %693 : vector<2x20xf32>
    %695 = arith.mulf %694, %694 : vector<2x20xf32>
    %696 = arith.mulf %695, %695 : vector<2x20xf32>
    %697 = arith.mulf %694, %696 : vector<2x20xf32>
    %cst_176 = arith.constant dense<0.000000e+00> : vector<2xf32>
    %698 = vector.multi_reduction <add>, %697, %cst_176 [1] : vector<2x20xf32> to vector<2xf32>
    %699 = vector.shape_cast %698 : vector<2xf32> to vector<2x1xf32>
    %700 = vector.broadcast %699 : vector<2x1xf32> to vector<2x20xf32>
    %701 = arith.divf %697, %700 : vector<2x20xf32>
    %c0_177 = arith.constant 0 : index
    %c0_178 = arith.constant 0 : index
    %702 = vector.load %arg6[%c0_177, %c0_178] : memref<256x16xf32, #tpu.memory_space<vmem>>, vector<256x16xf32>
    %cst_179 = arith.constant dense<0.000000e+00> : vector<2x16xf32>
    %703 = tpu.matmul %672, %702, %cst_179 {dimension_numbers = #tpu.dot_dimension_numbers<[1], [0], [0], [1], [0, 0, 1, 1], [], []>} : vector<2x256xf32>, vector<256x16xf32>, vector<2x16xf32> -> vector<2x16xf32>
    %704 = arith.mulf %672, %672 : vector<2x256xf32>
    %cst_180 = arith.constant dense<0.000000e+00> : vector<2xf32>
    %705 = vector.multi_reduction <add>, %704, %cst_180 [1] : vector<2x256xf32> to vector<2xf32>
    %706 = vector.shape_cast %705 : vector<2xf32> to vector<2x1xf32>
    %cst_181 = arith.constant 1.000000e-16 : f32
    %707 = vector.broadcast %cst_181 : f32 to vector<2x1xf32>
    %708 = arith.maximumf %706, %707 : vector<2x1xf32>
    %709 = math.rsqrt %708 : vector<2x1xf32>
    %710 = vector.broadcast %709 : vector<2x1xf32> to vector<2x16xf32>
    %711 = arith.mulf %703, %710 : vector<2x16xf32>
    %712 = vector.extract_strided_slice %665 {offsets = [0, 0], sizes = [2, 1], strides = [1, 1]} : vector<2x2xf32> to vector<2x1xf32>
    %713 = vector.broadcast %712 : vector<2x1xf32> to vector<2x16xf32>
    %714 = arith.mulf %713, %640 : vector<2x16xf32>
    %715 = vector.extract_strided_slice %665 {offsets = [0, 1], sizes = [2, 1], strides = [1, 1]} : vector<2x2xf32> to vector<2x1xf32>
    %716 = vector.broadcast %715 : vector<2x1xf32> to vector<2x16xf32>
    %717 = arith.mulf %716, %711 : vector<2x16xf32>
    %718 = arith.addf %714, %717 : vector<2x16xf32>
    %719 = arith.index_cast %c5_i32 : i32 to index
    %c0_182 = arith.constant 0 : index
    %c0_183 = arith.constant 0 : index
    %720 = vector.load %arg8[%719, %c0_182, %c0_183] : memref<8x2x16xf32, #tpu.memory_space<vmem>>, vector<1x2x16xf32>
    %721 = vector.shape_cast %720 : vector<1x2x16xf32> to vector<2x16xf32>
    %722 = vector.shape_cast %718 : vector<2x16xf32> to vector<1x2x16xf32>
    tpu.vector_store %arg8[%719, %c0_182, %c0_183], %722 {strides = array<i32>} : memref<8x2x16xf32, #tpu.memory_space<vmem>>, vector<1x2x16xf32>,
    %c6_i32 = arith.constant 6 : i32
    %723 = arith.index_cast %c6_i32 : i32 to index
    %c0_184 = arith.constant 0 : index
    %c0_185 = arith.constant 0 : index
    %724 = vector.load %arg1[%723, %c0_184, %c0_185] : memref<8x2x256xf32, #tpu.memory_space<vmem>>, vector<1x2x256xf32>
    %725 = vector.shape_cast %724 : vector<1x2x256xf32> to vector<2x256xf32>
    %726 = arith.index_cast %c6_i32 : i32 to index
    %c0_186 = arith.constant 0 : index
    %c0_187 = arith.constant 0 : index
    %727 = vector.load %arg2[%726, %c0_186, %c0_187] : memref<8x2x32xf32, #tpu.memory_space<vmem>>, vector<1x2x32xf32>
    %728 = vector.shape_cast %727 : vector<1x2x32xf32> to vector<2x32xf32>
    %729 = arith.index_cast %c6_i32 : i32 to index
    %c0_188 = arith.constant 0 : index
    %c0_189 = arith.constant 0 : index
    %730 = vector.load %arg3[%729, %c0_188, %c0_189] : memref<8x2x5xf32, #tpu.memory_space<vmem>>, vector<1x2x5xf32>
    %731 = vector.shape_cast %730 : vector<1x2x5xf32> to vector<2x5xf32>
    %cst_190 = arith.constant dense<0.000000e+00> : vector<2x32xf32>
    %732 = tpu.matmul %624, %0, %cst_190 {dimension_numbers = #tpu.dot_dimension_numbers<[1], [0], [0], [1], [0, 0, 1, 1], [], []>} : vector<2x32xf32>, vector<32x32xf32>, vector<2x32xf32> -> vector<2x32xf32>
    %733 = arith.addf %728, %732 : vector<2x32xf32>
    %734 = math.tanh %733 : vector<2x32xf32>
    %cst_191 = arith.constant 0.000000e+00 : f32
    %735 = vector.broadcast %cst_191 : f32 to vector<2x32xf32>
    %736 = arith.maximumf %734, %735 : vector<2x32xf32>
    %cst_192 = arith.constant 1.000000e+00 : f32
    %737 = vector.broadcast %cst_192 : f32 to vector<2x32xf32>
    %738 = arith.subf %737, %736 : vector<2x32xf32>
    %cst_193 = arith.constant dense<0.000000e+00> : vector<2x21xf32>
    %739 = tpu.matmul %738, %1, %cst_193 {dimension_numbers = #tpu.dot_dimension_numbers<[1], [0], [0], [1], [0, 0, 1, 1], [], []>} : vector<2x32xf32>, vector<32x21xf32>, vector<2x21xf32> -> vector<2x21xf32>
    %740 = vector.extract_strided_slice %739 {offsets = [0, 0], sizes = [2, 16], strides = [1, 1]} : vector<2x21xf32> to vector<2x16xf32>
    %cst_194 = arith.constant dense<0xFF800000> : vector<2xf32>
    %741 = vector.multi_reduction <maximumf>, %740, %cst_194 [1] : vector<2x16xf32> to vector<2xf32>
    %742 = vector.shape_cast %741 : vector<2xf32> to vector<2x1xf32>
    %743 = vector.broadcast %742 : vector<2x1xf32> to vector<2x16xf32>
    %744 = arith.subf %740, %743 : vector<2x16xf32>
    %745 = math.exp %744 : vector<2x16xf32>
    %cst_195 = arith.constant dense<0.000000e+00> : vector<2xf32>
    %746 = vector.multi_reduction <add>, %745, %cst_195 [1] : vector<2x16xf32> to vector<2xf32>
    %747 = vector.shape_cast %746 : vector<2xf32> to vector<2x1xf32>
    %748 = tpu.reciprocal %747 {approx = true} : vector<2x1xf32> -> vector<2x1xf32>
    %749 = vector.broadcast %748 : vector<2x1xf32> to vector<2x16xf32>
    %750 = arith.mulf %745, %749 : vector<2x16xf32>
    %751 = vector.extract_strided_slice %739 {offsets = [0, 16], sizes = [2, 3], strides = [1, 1]} : vector<2x21xf32> to vector<2x3xf32>
    %752 = vector.extract_strided_slice %731 {offsets = [0, 0], sizes = [2, 3], strides = [1, 1]} : vector<2x5xf32> to vector<2x3xf32>
    %753 = arith.addf %751, %752 : vector<2x3xf32>
    %cst_196 = arith.constant dense<0xFF800000> : vector<2xf32>
    %754 = vector.multi_reduction <maximumf>, %753, %cst_196 [1] : vector<2x3xf32> to vector<2xf32>
    %755 = vector.shape_cast %754 : vector<2xf32> to vector<2x1xf32>
    %756 = vector.broadcast %755 : vector<2x1xf32> to vector<2x3xf32>
    %757 = arith.subf %753, %756 : vector<2x3xf32>
    %758 = math.exp %757 : vector<2x3xf32>
    %cst_197 = arith.constant dense<0.000000e+00> : vector<2xf32>
    %759 = vector.multi_reduction <add>, %758, %cst_197 [1] : vector<2x3xf32> to vector<2xf32>
    %760 = vector.shape_cast %759 : vector<2xf32> to vector<2x1xf32>
    %761 = vector.broadcast %760 : vector<2x1xf32> to vector<2x3xf32>
    %762 = arith.divf %758, %761 : vector<2x3xf32>
    %763 = vector.extract_strided_slice %739 {offsets = [0, 19], sizes = [2, 2], strides = [1, 1]} : vector<2x21xf32> to vector<2x2xf32>
    %764 = vector.extract_strided_slice %731 {offsets = [0, 3], sizes = [2, 2], strides = [1, 1]} : vector<2x5xf32> to vector<2x2xf32>
    %765 = arith.addf %763, %764 : vector<2x2xf32>
    %cst_198 = arith.constant dense<0xFF800000> : vector<2xf32>
    %766 = vector.multi_reduction <maximumf>, %765, %cst_198 [1] : vector<2x2xf32> to vector<2xf32>
    %767 = vector.shape_cast %766 : vector<2xf32> to vector<2x1xf32>
    %768 = vector.broadcast %767 : vector<2x1xf32> to vector<2x2xf32>
    %769 = arith.subf %765, %768 : vector<2x2xf32>
    %770 = math.exp %769 : vector<2x2xf32>
    %cst_199 = arith.constant dense<0.000000e+00> : vector<2xf32>
    %771 = vector.multi_reduction <add>, %770, %cst_199 [1] : vector<2x2xf32> to vector<2xf32>
    %772 = vector.shape_cast %771 : vector<2xf32> to vector<2x1xf32>
    %773 = tpu.reciprocal %772 {approx = true} : vector<2x1xf32> -> vector<2x1xf32>
    %774 = vector.broadcast %773 : vector<2x1xf32> to vector<2x2xf32>
    %775 = arith.mulf %770, %774 : vector<2x2xf32>
    %776 = vector.extract_strided_slice %762 {offsets = [0, 0], sizes = [2, 1], strides = [1, 1]} : vector<2x3xf32> to vector<2x1xf32>
    %777 = vector.extract_strided_slice %762 {offsets = [0, 1], sizes = [2, 1], strides = [1, 1]} : vector<2x3xf32> to vector<2x1xf32>
    %778 = vector.extract_strided_slice %762 {offsets = [0, 2], sizes = [2, 1], strides = [1, 1]} : vector<2x3xf32> to vector<2x1xf32>
    %779 = vector.shape_cast %701 : vector<2x20xf32> to vector<2x20x1xf32>
    %780 = vector.broadcast %779 : vector<2x20x1xf32> to vector<2x20x256xf32>
    %781 = arith.mulf %780, %684 : vector<2x20x256xf32>
    %cst_200 = arith.constant dense<0.000000e+00> : vector<2x256xf32>
    %782 = vector.multi_reduction <add>, %781, %cst_200 [1] : vector<2x20x256xf32> to vector<2x256xf32>
    %cst_201 = arith.constant dense<0.000000e+00> : vector<2x40xf32>
    %783 = tpu.matmul %701, %55, %cst_201 {dimension_numbers = #tpu.dot_dimension_numbers<[1], [0], [0], [1], [0, 0, 1, 1], [], []>} : vector<2x20xf32>, vector<20x40xf32>, vector<2x40xf32> -> vector<2x40xf32>
    %784 = vector.extract_strided_slice %783 {offsets = [0, 0], sizes = [2, 20], strides = [1, 1]} : vector<2x40xf32> to vector<2x20xf32>
    %785 = vector.extract_strided_slice %783 {offsets = [0, 20], sizes = [2, 20], strides = [1, 1]} : vector<2x40xf32> to vector<2x20xf32>
    %786 = vector.broadcast %776 : vector<2x1xf32> to vector<2x20xf32>
    %787 = arith.mulf %786, %784 : vector<2x20xf32>
    %788 = vector.shape_cast %787 : vector<2x20xf32> to vector<2x20x1xf32>
    %789 = vector.shape_cast %725 : vector<2x256xf32> to vector<2x1x256xf32>
    %790 = vector.broadcast %789 : vector<2x1x256xf32> to vector<2x20x256xf32>
    %791 = arith.subf %790, %684 : vector<2x20x256xf32>
    %792 = vector.broadcast %788 : vector<2x20x1xf32> to vector<2x20x256xf32>
    %793 = arith.mulf %792, %791 : vector<2x20x256xf32>
    %794 = arith.addf %684, %793 : vector<2x20x256xf32>
    %795 = vector.broadcast %776 : vector<2x1xf32> to vector<2x20xf32>
    %796 = arith.mulf %795, %784 : vector<2x20xf32>
    %797 = vector.broadcast %777 : vector<2x1xf32> to vector<2x20xf32>
    %798 = arith.mulf %797, %785 : vector<2x20xf32>
    %799 = arith.addf %796, %798 : vector<2x20xf32>
    %800 = vector.broadcast %778 : vector<2x1xf32> to vector<2x20xf32>
    %801 = arith.mulf %800, %701 : vector<2x20xf32>
    %802 = arith.addf %799, %801 : vector<2x20xf32>
    %cst_202 = arith.constant 0.000000e+00 : f32
    %803 = vector.broadcast %cst_202 : f32 to vector<2x20xf32>
    %804 = arith.maximumf %802, %803 : vector<2x20xf32>
    %805 = arith.mulf %804, %804 : vector<2x20xf32>
    %806 = arith.mulf %805, %805 : vector<2x20xf32>
    %807 = arith.mulf %804, %806 : vector<2x20xf32>
    %cst_203 = arith.constant dense<0.000000e+00> : vector<2xf32>
    %808 = vector.multi_reduction <add>, %807, %cst_203 [1] : vector<2x20xf32> to vector<2xf32>
    %809 = vector.shape_cast %808 : vector<2xf32> to vector<2x1xf32>
    %810 = vector.broadcast %809 : vector<2x1xf32> to vector<2x20xf32>
    %811 = arith.divf %807, %810 : vector<2x20xf32>
    %c0_204 = arith.constant 0 : index
    %c0_205 = arith.constant 0 : index
    %812 = vector.load %arg6[%c0_204, %c0_205] : memref<256x16xf32, #tpu.memory_space<vmem>>, vector<256x16xf32>
    %cst_206 = arith.constant dense<0.000000e+00> : vector<2x16xf32>
    %813 = tpu.matmul %782, %812, %cst_206 {dimension_numbers = #tpu.dot_dimension_numbers<[1], [0], [0], [1], [0, 0, 1, 1], [], []>} : vector<2x256xf32>, vector<256x16xf32>, vector<2x16xf32> -> vector<2x16xf32>
    %814 = arith.mulf %782, %782 : vector<2x256xf32>
    %cst_207 = arith.constant dense<0.000000e+00> : vector<2xf32>
    %815 = vector.multi_reduction <add>, %814, %cst_207 [1] : vector<2x256xf32> to vector<2xf32>
    %816 = vector.shape_cast %815 : vector<2xf32> to vector<2x1xf32>
    %cst_208 = arith.constant 1.000000e-16 : f32
    %817 = vector.broadcast %cst_208 : f32 to vector<2x1xf32>
    %818 = arith.maximumf %816, %817 : vector<2x1xf32>
    %819 = math.rsqrt %818 : vector<2x1xf32>
    %820 = vector.broadcast %819 : vector<2x1xf32> to vector<2x16xf32>
    %821 = arith.mulf %813, %820 : vector<2x16xf32>
    %822 = vector.extract_strided_slice %775 {offsets = [0, 0], sizes = [2, 1], strides = [1, 1]} : vector<2x2xf32> to vector<2x1xf32>
    %823 = vector.broadcast %822 : vector<2x1xf32> to vector<2x16xf32>
    %824 = arith.mulf %823, %750 : vector<2x16xf32>
    %825 = vector.extract_strided_slice %775 {offsets = [0, 1], sizes = [2, 1], strides = [1, 1]} : vector<2x2xf32> to vector<2x1xf32>
    %826 = vector.broadcast %825 : vector<2x1xf32> to vector<2x16xf32>
    %827 = arith.mulf %826, %821 : vector<2x16xf32>
    %828 = arith.addf %824, %827 : vector<2x16xf32>
    %829 = arith.index_cast %c6_i32 : i32 to index
    %c0_209 = arith.constant 0 : index
    %c0_210 = arith.constant 0 : index
    %830 = vector.load %arg8[%829, %c0_209, %c0_210] : memref<8x2x16xf32, #tpu.memory_space<vmem>>, vector<1x2x16xf32>
    %831 = vector.shape_cast %830 : vector<1x2x16xf32> to vector<2x16xf32>
    %832 = vector.shape_cast %828 : vector<2x16xf32> to vector<1x2x16xf32>
    tpu.vector_store %arg8[%829, %c0_209, %c0_210], %832 {strides = array<i32>} : memref<8x2x16xf32, #tpu.memory_space<vmem>>, vector<1x2x16xf32>,
    %c7_i32 = arith.constant 7 : i32
    %833 = arith.index_cast %c7_i32 : i32 to index
    %c0_211 = arith.constant 0 : index
    %c0_212 = arith.constant 0 : index
    %834 = vector.load %arg1[%833, %c0_211, %c0_212] : memref<8x2x256xf32, #tpu.memory_space<vmem>>, vector<1x2x256xf32>
    %835 = vector.shape_cast %834 : vector<1x2x256xf32> to vector<2x256xf32>
    %836 = arith.index_cast %c7_i32 : i32 to index
    %c0_213 = arith.constant 0 : index
    %c0_214 = arith.constant 0 : index
    %837 = vector.load %arg2[%836, %c0_213, %c0_214] : memref<8x2x32xf32, #tpu.memory_space<vmem>>, vector<1x2x32xf32>
    %838 = vector.shape_cast %837 : vector<1x2x32xf32> to vector<2x32xf32>
    %839 = arith.index_cast %c7_i32 : i32 to index
    %c0_215 = arith.constant 0 : index
    %c0_216 = arith.constant 0 : index
    %840 = vector.load %arg3[%839, %c0_215, %c0_216] : memref<8x2x5xf32, #tpu.memory_space<vmem>>, vector<1x2x5xf32>
    %841 = vector.shape_cast %840 : vector<1x2x5xf32> to vector<2x5xf32>
    %cst_217 = arith.constant dense<0.000000e+00> : vector<2x32xf32>
    %842 = tpu.matmul %734, %0, %cst_217 {dimension_numbers = #tpu.dot_dimension_numbers<[1], [0], [0], [1], [0, 0, 1, 1], [], []>} : vector<2x32xf32>, vector<32x32xf32>, vector<2x32xf32> -> vector<2x32xf32>
    %843 = arith.addf %838, %842 : vector<2x32xf32>
    %844 = math.tanh %843 : vector<2x32xf32>
    %cst_218 = arith.constant 0.000000e+00 : f32
    %845 = vector.broadcast %cst_218 : f32 to vector<2x32xf32>
    %846 = arith.maximumf %844, %845 : vector<2x32xf32>
    %cst_219 = arith.constant 1.000000e+00 : f32
    %847 = vector.broadcast %cst_219 : f32 to vector<2x32xf32>
    %848 = arith.subf %847, %846 : vector<2x32xf32>
    %cst_220 = arith.constant dense<0.000000e+00> : vector<2x21xf32>
    %849 = tpu.matmul %848, %1, %cst_220 {dimension_numbers = #tpu.dot_dimension_numbers<[1], [0], [0], [1], [0, 0, 1, 1], [], []>} : vector<2x32xf32>, vector<32x21xf32>, vector<2x21xf32> -> vector<2x21xf32>
    %850 = vector.extract_strided_slice %849 {offsets = [0, 0], sizes = [2, 16], strides = [1, 1]} : vector<2x21xf32> to vector<2x16xf32>
    %cst_221 = arith.constant dense<0xFF800000> : vector<2xf32>
    %851 = vector.multi_reduction <maximumf>, %850, %cst_221 [1] : vector<2x16xf32> to vector<2xf32>
    %852 = vector.shape_cast %851 : vector<2xf32> to vector<2x1xf32>
    %853 = vector.broadcast %852 : vector<2x1xf32> to vector<2x16xf32>
    %854 = arith.subf %850, %853 : vector<2x16xf32>
    %855 = math.exp %854 : vector<2x16xf32>
    %cst_222 = arith.constant dense<0.000000e+00> : vector<2xf32>
    %856 = vector.multi_reduction <add>, %855, %cst_222 [1] : vector<2x16xf32> to vector<2xf32>
    %857 = vector.shape_cast %856 : vector<2xf32> to vector<2x1xf32>
    %858 = tpu.reciprocal %857 {approx = true} : vector<2x1xf32> -> vector<2x1xf32>
    %859 = vector.broadcast %858 : vector<2x1xf32> to vector<2x16xf32>
    %860 = arith.mulf %855, %859 : vector<2x16xf32>
    %861 = vector.extract_strided_slice %849 {offsets = [0, 16], sizes = [2, 3], strides = [1, 1]} : vector<2x21xf32> to vector<2x3xf32>
    %862 = vector.extract_strided_slice %841 {offsets = [0, 0], sizes = [2, 3], strides = [1, 1]} : vector<2x5xf32> to vector<2x3xf32>
    %863 = arith.addf %861, %862 : vector<2x3xf32>
    %cst_223 = arith.constant dense<0xFF800000> : vector<2xf32>
    %864 = vector.multi_reduction <maximumf>, %863, %cst_223 [1] : vector<2x3xf32> to vector<2xf32>
    %865 = vector.shape_cast %864 : vector<2xf32> to vector<2x1xf32>
    %866 = vector.broadcast %865 : vector<2x1xf32> to vector<2x3xf32>
    %867 = arith.subf %863, %866 : vector<2x3xf32>
    %868 = math.exp %867 : vector<2x3xf32>
    %cst_224 = arith.constant dense<0.000000e+00> : vector<2xf32>
    %869 = vector.multi_reduction <add>, %868, %cst_224 [1] : vector<2x3xf32> to vector<2xf32>
    %870 = vector.shape_cast %869 : vector<2xf32> to vector<2x1xf32>
    %871 = vector.broadcast %870 : vector<2x1xf32> to vector<2x3xf32>
    %872 = arith.divf %868, %871 : vector<2x3xf32>
    %873 = vector.extract_strided_slice %849 {offsets = [0, 19], sizes = [2, 2], strides = [1, 1]} : vector<2x21xf32> to vector<2x2xf32>
    %874 = vector.extract_strided_slice %841 {offsets = [0, 3], sizes = [2, 2], strides = [1, 1]} : vector<2x5xf32> to vector<2x2xf32>
    %875 = arith.addf %873, %874 : vector<2x2xf32>
    %cst_225 = arith.constant dense<0xFF800000> : vector<2xf32>
    %876 = vector.multi_reduction <maximumf>, %875, %cst_225 [1] : vector<2x2xf32> to vector<2xf32>
    %877 = vector.shape_cast %876 : vector<2xf32> to vector<2x1xf32>
    %878 = vector.broadcast %877 : vector<2x1xf32> to vector<2x2xf32>
    %879 = arith.subf %875, %878 : vector<2x2xf32>
    %880 = math.exp %879 : vector<2x2xf32>
    %cst_226 = arith.constant dense<0.000000e+00> : vector<2xf32>
    %881 = vector.multi_reduction <add>, %880, %cst_226 [1] : vector<2x2xf32> to vector<2xf32>
    %882 = vector.shape_cast %881 : vector<2xf32> to vector<2x1xf32>
    %883 = tpu.reciprocal %882 {approx = true} : vector<2x1xf32> -> vector<2x1xf32>
    %884 = vector.broadcast %883 : vector<2x1xf32> to vector<2x2xf32>
    %885 = arith.mulf %880, %884 : vector<2x2xf32>
    %886 = vector.extract_strided_slice %872 {offsets = [0, 0], sizes = [2, 1], strides = [1, 1]} : vector<2x3xf32> to vector<2x1xf32>
    %887 = vector.extract_strided_slice %872 {offsets = [0, 1], sizes = [2, 1], strides = [1, 1]} : vector<2x3xf32> to vector<2x1xf32>
    %888 = vector.extract_strided_slice %872 {offsets = [0, 2], sizes = [2, 1], strides = [1, 1]} : vector<2x3xf32> to vector<2x1xf32>
    %889 = vector.shape_cast %811 : vector<2x20xf32> to vector<2x20x1xf32>
    %890 = vector.broadcast %889 : vector<2x20x1xf32> to vector<2x20x256xf32>
    %891 = arith.mulf %890, %794 : vector<2x20x256xf32>
    %cst_227 = arith.constant dense<0.000000e+00> : vector<2x256xf32>
    %892 = vector.multi_reduction <add>, %891, %cst_227 [1] : vector<2x20x256xf32> to vector<2x256xf32>
    %cst_228 = arith.constant dense<0.000000e+00> : vector<2x40xf32>
    %893 = tpu.matmul %811, %55, %cst_228 {dimension_numbers = #tpu.dot_dimension_numbers<[1], [0], [0], [1], [0, 0, 1, 1], [], []>} : vector<2x20xf32>, vector<20x40xf32>, vector<2x40xf32> -> vector<2x40xf32>
    %894 = vector.extract_strided_slice %893 {offsets = [0, 0], sizes = [2, 20], strides = [1, 1]} : vector<2x40xf32> to vector<2x20xf32>
    %895 = vector.extract_strided_slice %893 {offsets = [0, 20], sizes = [2, 20], strides = [1, 1]} : vector<2x40xf32> to vector<2x20xf32>
    %896 = vector.broadcast %886 : vector<2x1xf32> to vector<2x20xf32>
    %897 = arith.mulf %896, %894 : vector<2x20xf32>
    %898 = vector.shape_cast %897 : vector<2x20xf32> to vector<2x20x1xf32>
    %899 = vector.shape_cast %835 : vector<2x256xf32> to vector<2x1x256xf32>
    %900 = vector.broadcast %899 : vector<2x1x256xf32> to vector<2x20x256xf32>
    %901 = arith.subf %900, %794 : vector<2x20x256xf32>
    %902 = vector.broadcast %898 : vector<2x20x1xf32> to vector<2x20x256xf32>
    %903 = arith.mulf %902, %901 : vector<2x20x256xf32>
    %904 = arith.addf %794, %903 : vector<2x20x256xf32>
    %905 = vector.broadcast %886 : vector<2x1xf32> to vector<2x20xf32>
    %906 = arith.mulf %905, %894 : vector<2x20xf32>
    %907 = vector.broadcast %887 : vector<2x1xf32> to vector<2x20xf32>
    %908 = arith.mulf %907, %895 : vector<2x20xf32>
    %909 = arith.addf %906, %908 : vector<2x20xf32>
    %910 = vector.broadcast %888 : vector<2x1xf32> to vector<2x20xf32>
    %911 = arith.mulf %910, %811 : vector<2x20xf32>
    %912 = arith.addf %909, %911 : vector<2x20xf32>
    %cst_229 = arith.constant 0.000000e+00 : f32
    %913 = vector.broadcast %cst_229 : f32 to vector<2x20xf32>
    %914 = arith.maximumf %912, %913 : vector<2x20xf32>
    %915 = arith.mulf %914, %914 : vector<2x20xf32>
    %916 = arith.mulf %915, %915 : vector<2x20xf32>
    %917 = arith.mulf %914, %916 : vector<2x20xf32>
    %cst_230 = arith.constant dense<0.000000e+00> : vector<2xf32>
    %918 = vector.multi_reduction <add>, %917, %cst_230 [1] : vector<2x20xf32> to vector<2xf32>
    %919 = vector.shape_cast %918 : vector<2xf32> to vector<2x1xf32>
    %920 = vector.broadcast %919 : vector<2x1xf32> to vector<2x20xf32>
    %921 = arith.divf %917, %920 : vector<2x20xf32>
    %c0_231 = arith.constant 0 : index
    %c0_232 = arith.constant 0 : index
    %922 = vector.load %arg6[%c0_231, %c0_232] : memref<256x16xf32, #tpu.memory_space<vmem>>, vector<256x16xf32>
    %cst_233 = arith.constant dense<0.000000e+00> : vector<2x16xf32>
    %923 = tpu.matmul %892, %922, %cst_233 {dimension_numbers = #tpu.dot_dimension_numbers<[1], [0], [0], [1], [0, 0, 1, 1], [], []>} : vector<2x256xf32>, vector<256x16xf32>, vector<2x16xf32> -> vector<2x16xf32>
    %924 = arith.mulf %892, %892 : vector<2x256xf32>
    %cst_234 = arith.constant dense<0.000000e+00> : vector<2xf32>
    %925 = vector.multi_reduction <add>, %924, %cst_234 [1] : vector<2x256xf32> to vector<2xf32>
    %926 = vector.shape_cast %925 : vector<2xf32> to vector<2x1xf32>
    %cst_235 = arith.constant 1.000000e-16 : f32
    %927 = vector.broadcast %cst_235 : f32 to vector<2x1xf32>
    %928 = arith.maximumf %926, %927 : vector<2x1xf32>
    %929 = math.rsqrt %928 : vector<2x1xf32>
    %930 = vector.broadcast %929 : vector<2x1xf32> to vector<2x16xf32>
    %931 = arith.mulf %923, %930 : vector<2x16xf32>
    %932 = vector.extract_strided_slice %885 {offsets = [0, 0], sizes = [2, 1], strides = [1, 1]} : vector<2x2xf32> to vector<2x1xf32>
    %933 = vector.broadcast %932 : vector<2x1xf32> to vector<2x16xf32>
    %934 = arith.mulf %933, %860 : vector<2x16xf32>
    %935 = vector.extract_strided_slice %885 {offsets = [0, 1], sizes = [2, 1], strides = [1, 1]} : vector<2x2xf32> to vector<2x1xf32>
    %936 = vector.broadcast %935 : vector<2x1xf32> to vector<2x16xf32>
    %937 = arith.mulf %936, %931 : vector<2x16xf32>
    %938 = arith.addf %934, %937 : vector<2x16xf32>
    %939 = arith.index_cast %c7_i32 : i32 to index
    %c0_236 = arith.constant 0 : index
    %c0_237 = arith.constant 0 : index
    %940 = vector.load %arg8[%939, %c0_236, %c0_237] : memref<8x2x16xf32, #tpu.memory_space<vmem>>, vector<1x2x16xf32>
    %941 = vector.shape_cast %940 : vector<1x2x16xf32> to vector<2x16xf32>
    %942 = vector.shape_cast %938 : vector<2x16xf32> to vector<1x2x16xf32>
    tpu.vector_store %arg8[%939, %c0_236, %c0_237], %942 {strides = array<i32>} : memref<8x2x16xf32, #tpu.memory_space<vmem>>, vector<1x2x16xf32>,
    %c8_i32 = arith.constant 8 : i32
    return
  }
  func.func @transform_0(%arg0: i32) -> (i32, i32, i32) {
    %c0_i32 = arith.constant 0 : i32
    %c0_i32_0 = arith.constant 0 : i32
    %c0_i32_1 = arith.constant 0 : i32
    %c0_i32_2 = arith.constant 0 : i32
    return %c0_i32, %c0_i32_0, %c0_i32_1 : i32, i32, i32
  }
  func.func @transform_1(%arg0: i32) -> (i32, i32, i32) {
    %c0_i32 = arith.constant 0 : i32
    %c0_i32_0 = arith.constant 0 : i32
    %c0_i32_1 = arith.constant 0 : i32
    %c0_i32_2 = arith.constant 0 : i32
    return %c0_i32, %c0_i32_0, %c0_i32_1 : i32, i32, i32
  }
  func.func @transform_2(%arg0: i32) -> (i32, i32, i32) {
    %c0_i32 = arith.constant 0 : i32
    %c0_i32_0 = arith.constant 0 : i32
    %c0_i32_1 = arith.constant 0 : i32
    %c0_i32_2 = arith.constant 0 : i32
    return %c0_i32, %c0_i32_0, %c0_i32_1 : i32, i32, i32
  }
  func.func @transform_3(%arg0: i32) -> (i32, i32) {
    %c0_i32 = arith.constant 0 : i32
    %c0_i32_0 = arith.constant 0 : i32
    %c0_i32_1 = arith.constant 0 : i32
    return %c0_i32, %c0_i32_0 : i32, i32
  }
  func.func @transform_4(%arg0: i32) -> (i32, i32) {
    %c0_i32 = arith.constant 0 : i32
    %c0_i32_0 = arith.constant 0 : i32
    %c0_i32_1 = arith.constant 0 : i32
    return %c0_i32, %c0_i32_0 : i32, i32
  }
  func.func @transform_5(%arg0: i32) -> (i32, i32) {
    %c0_i32 = arith.constant 0 : i32
    %c0_i32_0 = arith.constant 0 : i32
    %c0_i32_1 = arith.constant 0 : i32
    return %c0_i32, %c0_i32_0 : i32, i32
  }
  func.func @transform_6(%arg0: i32) -> i32 {
    %c0_i32 = arith.constant 0 : i32
    %c0_i32_0 = arith.constant 0 : i32
    return %c0_i32 : i32
  }
  func.func @transform_7(%arg0: i32) -> (i32, i32, i32) {
    %c0_i32 = arith.constant 0 : i32
    %c0_i32_0 = arith.constant 0 : i32
    %c0_i32_1 = arith.constant 0 : i32
    %c0_i32_2 = arith.constant 0 : i32
    return %c0_i32, %c0_i32_0, %c0_i32_1 : i32, i32, i32
  }
}

</mosaic_0001>

<bundles_post_ra>
// kernel: tpu_custom_call.1
= control target key start
LH: loop header
LB: loop body
LE: loop exit
PB: predicated region body
PF: predicated region fallthrough
CT: control target
= control target key end

     0   :  { %v8207_v3 = vmov 0.0|0.0   ;;  %vm6139_vm0 = vmmov 0   ;;  %v8209_v6 = vmov 0.0   ;;  %s8193_s0 = inlined_call_operand.vmem [shape: f32[8,2,256], index: 0, kind: input, shape index: {}]   ;;  %s8194_s1 = inlined_call_operand.vmem [shape: f32[8,2,32], index: 1, kind: input, shape index: {}]   ;;  %s8195_s2 = inlined_call_operand.vmem [shape: f32[8,2,5], index: 2, kind: input, shape index: {}]   ;;  %s8196_s3 = inlined_call_operand.vmem [shape: f32[32,32], index: 3, kind: input, shape index: {}]   ;;  %s8197_s4 = inlined_call_operand.vmem [shape: f32[32,21], index: 4, kind: input, shape index: {}]   ;;  %s8198_s5 = inlined_call_operand.vmem [shape: f32[256,16], index: 5, kind: input, shape index: {}]   ;;  %s8199_s6 = inlined_call_operand.<no memory space> [shape: f32[1], index: 6, kind: input, shape index: {}]   ;;  %s8200_s7 = inlined_call_operand.hbm [shape: f32[8,2,16], index: 7, kind: output, shape index: {}]  }
   0x1   :  { %v28_v0 = vld [vmem:[%s8196_s3] sm:$0xff]  ;;  %v29_v1 = vld [vmem:[%s8196_s3 + $0x8] sm:$0xff]  ;;  %v30_v2 = vld [vmem:[%s8196_s3 + $0x10] sm:$0xff]  ;;  %5559 = vmatprep.subr.bf16.mxu1 %v8207_v3  ;;  %5328 = vmatprep.mubr.msk.f32.mxu1 %vm6139_vm0, %v8209_v6 }
   0x2   :  { %v6204_v4 = vpack.c.bf16 %v29_v1, %v28_v0  ;;  %v31_v5 = vld [vmem:[%s8196_s3 + $0x18] sm:$0xff] }
   0x3   :  { %13 = vsyncpa [#allocation4], 0  ;;  %5571 = vmatprep.subr.bf16.mxu0 %v8207_v3  ;;  %5348 = vmatprep.mubr.msk.f32.mxu0 %vm6139_vm0, %v8209_v6  ;;  %v6215_v7 = vpack.c.bf16 %v31_v5, %v30_v2  ;;  %v36_v8 = vlaneseq  ;;  %v8201_v47 = vmov 1.0|1.0   ;;  %v32_v49 = vld [vmem:[%s8197_s4] sm:$0xff]  ;;  %v33_v50 = vld [vmem:[%s8197_s4 + $0x8] sm:$0xff] }
   0x4   :  { %5561 = vmatpush3.bf16.msra.mxu1 %v6204_v4  ;;  %v6286_v51 = vpack.c.bf16 %v33_v50, %v32_v49  ;;  %v34_v54 = vld [vmem:[%s8197_s4 + $0x10] sm:$0xff]  ;;  %v35_v55 = vld [vmem:[%s8197_s4 + $0x18] sm:$0xff]  ;;  %v140_v57 = vld [vmem:[%s8195_s2] sm:$0x3]  ;;  %s6142_s16 = smov 16   ;;  %s6143_s21 = smov 112  }
   0x5   :  { %5562 = vmatprep.subr.bf16.mxu1 %v8207_v3  ;;  %v6223_v9 = vand.u32 127, %v36_v8  ;;  %v6225_v10 = vshrl.u32 %v36_v8, 7  ;;  %v6307_v56 = vpack.c.bf16 %v35_v55, %v34_v54  ;;  %305 = vrot.lane.b32.xlu0 %v140_v57, %s6142_s16  ;;  %v139_v58 = vld [vmem:[%s8194_s1] sm:$0x3]  ;;  %v4869_v5 = vld [vmem:[%s8194_s1 + $0x2] sm:$0x3] }
   0x6   :  { %v586_v49 = vld [vmem:[%s8198_s5 + $0xb8] sm:$0xff]  ;;  %v569_v54 = vld [vmem:[%s8198_s5 + $0x30] sm:$0xff]  ;;  %s6147_s15 = smov 108   ;;  %s6148_s30 = smov 109  }
   0x7   :  { %v4853_v11 = vadd.s32 4294967276, %v6223_v9  ;;  %v38_v12 = vadd.s32 8, %v6225_v10  ;;  %vm42_vm1 = vcmp.lt.s32.totalorder %v6223_v9, 20  ;;  %v45_v14 = vadd.s32 1, %v6225_v10  ;;  %v570_v55 = vld [vmem:[%s8198_s5 + $0x38] sm:$0xff] }
   0x8   :  { %5564 = vmatpush3.bf16.msra.mxu1 %v6215_v7  ;;  %v39_v23 = vadd.s32 16, %v6225_v10  ;;  %vm102_vm13 = vcmp.ge.s32.totalorder %v6223_v9, 20  ;;  %v6434_v57 = vpack.c.bf16 %v570_v55, %v569_v54 }
   0x9   :  { %5565 = vmatprep.subr.bf16.mxu1 %v8207_v3  ;;  %v6233_v13 = vsel %vm42_vm1, %v6223_v9, %v4853_v11  ;;  %v46_v15 = vadd.s32 1, %v38_v12  ;;  %v6237_v17 = vmul.u32.u64.low 3435973837, %v45_v14  ;;  %v6238_v18 = vmul.u32.u64.high 3435973837, %v45_v14, %v6237_v17 }
   0xa   :  { %v103_v16 = vadd.s32 1, %v6233_v13  ;;  %v47_v24 = vadd.s32 1, %v39_v23 }
   0xb   :  { %5329 = vmatmul.mubr.f32.vlgmr.msra.gmra.mrb[0].mxu1 %v8209_v6  ;;  %v6240_v19 = vmul.u32.u64.low 3435973837, %v46_v15  ;;  %v6241_v20 = vmul.u32.u64.high 3435973837, %v46_v15, %v6240_v19  ;;  %v54_v25 = vshrl.u32 %v6238_v18, 4 }
   0xc   :  { %5339 = vmatprep.mubr.msk.f32.mxu1 %vm6139_vm0, %v8209_v6  ;;  %v6243_v21 = vmul.u32.u64.low 3435973837, %v103_v16  ;;  %v6244_v22 = vmul.u32.u64.high 3435973837, %v103_v16, %v6243_v21  ;;  %v6250_v28 = vmul.u32.u64.low 3435973837, %v47_v24  ;;  %v6251_v29 = vmul.u32.u64.high 3435973837, %v47_v24, %v6250_v28  ;;  %5567 = vmatpush3.bf16.msra.mxu1 %v6286_v51 }
   0xd   :  { %v65_v26 = vshrl.u32 %v6241_v20, 4  ;;  %v55_v30 = vmul.u32 20, %v54_v25  ;;  %5568 = vmatprep.subr.bf16.mxu1 %v8207_v3  ;;  %v580_v25 = vld [vmem:[%s8198_s5 + $0x88] sm:$0xff] }
   0xe   :  { %v110_v27 = vshrl.u32 %v6244_v22, 4  ;;  %v76_v36 = vshrl.u32 %v6251_v29, 4  ;;  %v564_v28 = vld [vmem:[%s8198_s5 + $0x8] sm:$0xff]  ;;  %v581_v29 = vld [vmem:[%s8198_s5 + $0x90] sm:$0xff] }
   0xf   :  { %v66_v31 = vmul.u32 20, %v65_v26  ;;  %v56_v33 = vsub.s32 %v45_v14, %v55_v30  ;;  %v563_v26 = vld [vmem:[%s8198_s5] sm:$0xff]  ;;  %v582_v30 = vld [vmem:[%s8198_s5 + $0x98] sm:$0xff] }
  0x10   :  { %v111_v32 = vmul.u32 20, %v110_v27  ;;  %v77_v40 = vmul.u32 20, %v76_v36  ;;  %5570 = vmatpush3.bf16.msra.mxu1 %v6307_v56  ;;  %v584_v36 = vld [vmem:[%s8198_s5 + $0xa8] sm:$0xff] }
  0x11   :  { %v67_v34 = vsub.s32 %v46_v15, %v66_v31  ;;  %vm81_vm2 = vcmp.ne.s32.totalorder %v56_v33, 0  ;;  %vm84_vm4 = vcmp.lt.s32.totalorder %v56_v33, 0  ;;  %v90_v37 = vadd.s32 20, %v56_v33 }
  0x12   :  { %v112_v35 = vsub.s32 %v103_v16, %v111_v32  ;;  %vm87_vm6 = vmand %vm84_vm4, %vm81_vm2  ;;  %v78_v44 = vsub.s32 %v47_v24, %v77_v40  ;;  %v579_v24 = vld [vmem:[%s8198_s5 + $0x80] sm:$0xff]  ;;  %v6382_v31 = vpack.c.bf16 %v564_v28, %v563_v26  ;;  %v6384_v32 = vpack.c.bf16 %v582_v30, %v581_v29  ;;  %v568_v40 = vld [vmem:[%s8198_s5 + $0x28] sm:$0xff] }
  0x13   :  { %vm82_vm3 = vcmp.ne.s32.totalorder %v67_v34, 0  ;;  %vm85_vm5 = vcmp.lt.s32.totalorder %v67_v34, 0  ;;  %v91_v38 = vadd.s32 20, %v67_v34  ;;  %v93_v41 = vsel %vm87_vm6, %v90_v37, %v56_v33  ;;  %v565_v33 = vld [vmem:[%s8198_s5 + $0x10] sm:$0xff]  ;;  %v578_v29 = vld [vmem:[%s8198_s5 + $0x78] sm:$0xff] }
  0x14   :  { %vm115_vm7 = vcmp.ne.s32.totalorder %v112_v35, 0  ;;  %vm116_vm8 = vcmp.lt.s32.totalorder %v112_v35, 0  ;;  %vm88_vm9 = vmand %vm85_vm5, %vm82_vm3  ;;  %v118_v39 = vadd.s32 20, %v112_v35  ;;  %vm96_vm11 = vcmp.eq.s32.totalorder %v93_v41, %v6233_v13  ;;  %v577_v28 = vld [vmem:[%s8198_s5 + $0x70] sm:$0xff] }
  0x15   :  { %v94_v42 = vsel %vm88_vm9, %v91_v38, %v67_v34  ;;  %vm117_vm10 = vmand %vm116_vm8, %vm115_vm7  ;;  %vm83_vm7 = vcmp.ne.s32.totalorder %v78_v44, 0  ;;  %vm86_vm8 = vcmp.lt.s32.totalorder %v78_v44, 0  ;;  %v92_v45 = vadd.s32 20, %v78_v44  ;;  %v566_v34 = vld [vmem:[%s8198_s5 + $0x18] sm:$0xff] }
  0x16   :  { %vm97_vm12 = vcmp.eq.s32.totalorder %v94_v42, %v6233_v13  ;;  %v119_v43 = vsel %vm117_vm10, %v118_v39, %v112_v35  ;;  %vm99_vm14 = vmand %vm42_vm1, %vm96_vm11  ;;  %v6371_v27 = vpack.c.bf16 %v580_v25, %v579_v24  ;;  %v583_v35 = vld [vmem:[%s8198_s5 + $0xa0] sm:$0xff]  ;;  %v6401_v37 = vpack.c.bf16 %v566_v34, %v565_v33  ;;  %v593_v24 = vld [vmem:[%s8198_s5 + $0xf0] sm:$0xff] }
  0x17   :  { %vm120_vm15 = vcmp.eq.s32.totalorder %v119_v43, %v6225_v10  ;;  %vm121_vm2 = vcmp.eq.s32.totalorder %v119_v43, %v38_v12  ;;  %vm100_vm3 = vmand %vm42_vm1, %vm97_vm12  ;;  %vm122_vm10 = vcmp.eq.s32.totalorder %v119_v43, %v39_v23  ;;  %v6404_v38 = vpack.c.bf16 %v584_v36, %v583_v35  ;;  %v567_v39 = vld [vmem:[%s8198_s5 + $0x20] sm:$0xff]  ;;  %v594_v25 = vld [vmem:[%s8198_s5 + $0xf8] sm:$0xff] }
  0x18   :  { %vm123_vm4 = vmand %vm102_vm13, %vm120_vm15  ;;  %vm135_vm15 = vcmp.eq.s32.totalorder %v6223_v9, 0  ;;  %5575 = vmatprep.subr.bf16.mxu1 %v6371_v27  ;;  %v6413_v41 = vpack.c.bf16 %v568_v40, %v567_v39  ;;  %v6501_v26 = vpack.c.bf16 %v594_v25, %v593_v24  ;;  %v6509_v30 = vpack.c.bf16 %v578_v29, %v577_v28  ;;  %v4879_v28 = vld [vmem:[%s8194_s1 + $0x4] sm:$0x3] }
  0x19   :  { %vm124_vm5 = vmand %vm102_vm13, %vm121_vm2  ;;  %v6289_v52 = vsel %vm135_vm15, 1.0, %v8209_v6 }
  0x1a   :  { %vm126_vm6 = vmor %vm99_vm14, %vm123_vm4  ;;  %vm358_vm4 = vcmask 1043456  }
  0x1b   :  { %vm127_vm9 = vmor %vm100_vm3, %vm124_vm5 }
  0x1c   :  { %vm6266_vm11 = vmpackc.low %vm127_vm9, %vm126_vm6  ;;  %vm309_vm6 = vcmask 148608   ;;  %vm596_vm9 = vcmask 1041409  }
  0x1d   :  { %5573 = vmatpush3.bf16.msk.msra.mxu0 %vm6266_vm11, %v8201_v47  ;;  %vm89_vm12 = vmand %vm86_vm8, %vm83_vm7  ;;  %vm320_vm7 = vcmask 17408   ;;  %vm557_vm8 = vcmask 156672  }
  0x1e   :  { %5346 = vmatprep.subr.mxu0 %v8209_v6  ;;  %v95_v48 = vsel %vm89_vm12, %v92_v45, %v78_v44  ;;  %vm125_vm14 = vmand %vm102_vm13, %vm122_vm10  ;;  %vm367_vm13 = vcmask 162816   ;;  %vm671_vm10 = vcmask 1041408   ;;  %vm326_vm12 = vcmask 165016  }
  0x1f   :  { %vm98_vm2 = vcmp.eq.s32.totalorder %v95_v48, %v6233_v13  ;;  %v585_v48 = vld [vmem:[%s8198_s5 + $0xb0] sm:$0xff] }
  0x20   :  { %vm101_vm3 = vmand %vm42_vm1, %vm98_vm2  ;;  %vm141_vm1 = vcmask 261120   ;;  %v6426_v50 = vpack.c.bf16 %v586_v49, %v585_v48 }
  0x21   :  { %vm128_vm5 = vmor %vm101_vm3, %vm125_vm14  ;;  %vm337_vm14 = vcmask 9216  }
  0x22   :  { %v6292_v53 = vsel %vm128_vm5, 1.0, %v8209_v6 }
  0x23   :  { %5347 = vmatpush3.msk.msra.mxu0 %vm358_vm4, %v6292_v53 }
  0x24   :  { %5606 = vmatprep.subr.bf16.mxu0 %v8207_v3  ;;  %5349 = vmatmul.mubr.msk.f32.vlgmr.msra.gmra.mrb[0].mxu0 %vm367_vm13, %v6289_v52 }
  0x25   :  { %5608 = vmatpush3.bf16.msra.mxu0 %v6204_v4  ;;  %5359 = vmatprep.mubr.msk.f32.mxu0 %vm6139_vm0, %v8209_v6 }
  0x26   :  { %5609 = vmatprep.subr.bf16.mxu0 %v8207_v3 }
  0x29   :  { %5611 = vmatpush3.bf16.msra.mxu0 %v6215_v7 }
  0x2a   :  { %5612 = vmatprep.subr.bf16.mxu0 %v8207_v3 }
  0x77   :  { %v306_v12 = vpop.permute.xlu0 %305 }
  0xde   :  { %v211_v59 = vpop.f32.mrb[0].mxu1 }
  0xdf   :  { %v215_v60 = vadd.f32 %v211_v59, %v139_v58  ;;  %v5330_v61 = vpop.f32.mrb[1].mxu1  ;;  %v587_v58 = vld [vmem:[%s8198_s5 + $0xc0] sm:$0xff]  ;;  %v588_v59 = vld [vmem:[%s8198_s5 + $0xc8] sm:$0xff] }
  0xe0   :  { %v571_v61 = vld [vmem:[%s8198_s5 + $0x40] sm:$0xff] }
  0xe1   :  { %5976 = vtanh.f32 %v215_v60  ;;  %v6445_v60 = vpack.c.bf16 %v588_v59, %v587_v58 }
  0xeb   :  { %v5977_v62 = vpop.eup %5976 }
  0xec   :  { %v217_v63 = vmax.f32 %v5977_v62, 0.0  ;;  %5360 = vmatmul.mubr.msk.f32.vlgmr.msra.gmra.mrb[2].mxu0 %vm141_vm1, %v5977_v62  ;;  %v572_v62 = vld [vmem:[%s8198_s5 + $0x48] sm:$0xff] }
  0xed   :  { %5614 = vmatpush3.bf16.msra.mxu0 %v6286_v51  ;;  %5370 = vmatprep.mubr.msk.f32.mxu0 %vm6139_vm0, %v8209_v6 }
  0xee   :  { %v218_v0 = vsub.f32 1.0, %v217_v63  ;;  %5615 = vmatprep.subr.bf16.mxu0 %v8207_v3  ;;  %v6453_v63 = vpack.c.bf16 %v572_v62, %v571_v61  ;;  %v4870_v61 = vld [vmem:[%s8195_s2 + $0x2] sm:$0x3] }
  0xf0   :  { %5340 = vmatmul.mubr.msk.f32.vlgmr.msra.gmra.mrb[2].mxu1 %vm141_vm1, %v218_v0  ;;  %v589_v0 = vld [vmem:[%s8198_s5 + $0xd0] sm:$0xff] }
  0xf1   :  { %5617 = vmatpush3.bf16.msra.mxu0 %v6307_v56  ;;  %5577 = vmatpush3.bf16.msra.mxu1 %v6382_v31 }
  0xf2   :  { %5618 = vmatprep.subr.bf16.mxu0 %v8207_v3  ;;  %5579 = vmatprep.subr.bf16.mxu1 %v6384_v32 }
  0xf5   :  { %5581 = vmatpush3.bf16.msra.mxu1 %v6401_v37 }
  0xf6   :  { %5583 = vmatprep.subr.bf16.mxu1 %v6404_v38 }
  0xf7   :  { %v6331_v1 = vpop.f32.mrb[0].mxu0 }
  0xf8   :  { %v5350_v2 = vpop.f32.mrb[1].mxu0 }
  0xf9   :  { %5585 = vmatpush3.bf16.msra.mxu1 %v6413_v41  ;;  %v590_v2 = vld [vmem:[%s8198_s5 + $0xd8] sm:$0xff] }
  0xfa   :  { %5587 = vmatprep.subr.bf16.mxu1 %v6426_v50 }
  0xfd   :  { %5589 = vmatpush3.bf16.msra.mxu1 %v6434_v57 }
  0xfe   :  { %5591 = vmatprep.subr.bf16.mxu1 %v6445_v60 }
 0x101   :  { %5593 = vmatpush3.bf16.msra.mxu1 %v6453_v63 }
 0x1bf   :  { %v767_v8 = vpop.f32.mrb[2].mxu0 }
 0x1c0   :  { %v771_v9 = vadd.f32 %v4869_v5, %v767_v8  ;;  %v5361_v11 = vpop.f32.mrb[3].mxu0  ;;  %v6463_v5 = vpack.c.bf16 %v590_v2, %v589_v0  ;;  %v573_v8 = vld [vmem:[%s8198_s5 + $0x50] sm:$0xff]  ;;  %v8205_v0 = vmov 18  }
 0x1c2   :  { %5978 = vtanh.f32 %v771_v9  ;;  %v574_v9 = vld [vmem:[%s8198_s5 + $0x58] sm:$0xff]  ;;  %5595 = vmatprep.subr.bf16.mxu1 %v6463_v5 }
 0x1c3   :  { %v6336_v13 = vpop.f32.mrb[2].mxu1  ;;  %v6471_v11 = vpack.c.bf16 %v574_v9, %v573_v8 }
 0x1c4   :  { %8250 = vst [vmem:[#allocation6_spill] sm:$0xff] %v6336_v13  ;;  %v6339_v14 = vadd.f32 %v306_v12, %v6336_v13  ;;  %v5341_v15 = vpop.f32.mrb[3].mxu1  ;;  %v591_v12 = vld [vmem:[%s8198_s5 + $0xe0] sm:$0xff] }
 0x1c5   :  { %5597 = vmatpush3.bf16.msra.mxu1 %v6471_v11  ;;  %v592_v15 = vld [vmem:[%s8198_s5 + $0xe8] sm:$0xff] }
 0x1c6   :  { %8251 = vst [vmem:[#allocation7_spill] sm:$0xff] %v6339_v14  ;;  %v310_v16 = vsel %vm309_vm6, %v6339_v14, -inf }
 0x1c7   :  { %311 = vmax.xlane.f32.xlu0 %v310_v16  ;;  %v8203_v16 = vmov 17  }
 0x1c8   :  { %5956 = vset.pattern.permute.xlu1 %v8203_v16 }
 0x1cc   :  { %v6343_v17 = vpop.eup %5978 }
 0x1cd   :  { %v773_v18 = vmax.f32 %v6343_v17, 0.0 }
 0x1cf   :  { %v774_v19 = vsub.f32 1.0, %v773_v18  ;;  %v8211_v18 = vmov 16  }
 0x1d0   :  { %5957 = vset.pattern.permute.xlu0 %v8211_v18 }
 0x1d1   :  { %5371 = vmatmul.mubr.msk.f32.vlgmr.msra.gmra.mrb[4].mxu0 %vm141_vm1, %v774_v19  ;;  %v6483_v19 = vpack.c.bf16 %v592_v15, %v591_v12 }
 0x1d2   :  { %5620 = vmatpush3.bf16.msk.msra.mxu0 %vm6266_vm11, %v8201_v47  ;;  %5379 = vmatprep.mubr.msk.f32.mxu0 %vm6139_vm0, %v8209_v6 }
 0x1d3   :  { %5377 = vmatprep.subr.mxu0 %v8209_v6  ;;  %5599 = vmatprep.subr.bf16.mxu1 %v6483_v19 }
 0x1d6   :  { %5378 = vmatpush3.msk.msra.mxu0 %vm358_vm4, %v6292_v53 }
 0x1d7   :  { %5622 = vmatprep.subr.bf16.mxu0 %v6371_v27 }
 0x1dd   :  { %344 = vbcast.lane.b32.xlu0 %v6289_v52, 256 }
 0x1e1   :  { %352 = vbcast.lane.b32.xlu0 %v6289_v52, 272 }
 0x254   :  { %v312_v20 = vpop.xlane.xlu0 %311 }
 0x255   :  { %v313_v21 = vsub.f32 %v6339_v14, %v312_v20  ;;  %v575_v20 = vld [vmem:[%s8198_s5 + $0x60] sm:$0xff] }
 0x257   :  { %v314_v22 = vmul.f32 1.442695, %v313_v21  ;;  %v576_v21 = vld [vmem:[%s8198_s5 + $0x68] sm:$0xff] }
 0x258   :  { %v345_v33 = vpop.permute.xlu0 %344 }
 0x259   :  { %5980 = vpow2.f32 %v314_v22  ;;  %v6491_v22 = vpack.c.bf16 %v576_v21, %v575_v20  ;;  %v354_v39 = vmul.f32 0.001, %v345_v33 }
 0x25b   :  { %5601 = vmatpush3.bf16.msra.mxu1 %v6491_v22 }
 0x25c   :  { %5603 = vmatprep.subr.bf16.mxu1 %v6501_v26  ;;  %v353_v34 = vpop.permute.xlu0 %352 }
 0x25d   :  { %v356_v36 = vmul.f32 0.001, %v353_v34 }
 0x25f   :  { %5605 = vmatpush3.bf16.msra.mxu1 %v6509_v30 }
 0x260   :  { %5653 = vmatprep.subr.bf16.mxu1 %v8207_v3 }
 0x263   :  { %v6358_v23 = vpop.eup %5980 }
 0x264   :  { %317 = vrot.lane.b32.xlu1 %v6358_v23, %s6143_s21 }
 0x2a4   :  { %v6417_v42 = vpop.f32.mrb[4].mxu0 }
 0x2a5   :  { %8252 = vst [vmem:[#allocation8_spill] sm:$0xff] %v6417_v42  ;;  %v5372_v43 = vpop.f32.mrb[5].mxu0 }
 0x2d6   :  { %v318_v44 = vpop.permute.xlu1 %317 }
 0x2d7   :  { %v321_v45 = vsel %vm320_vm7, %v318_v44, 0.0  ;;  %v359_v44 = vsel %vm358_vm4, %v356_v36, 0.0 }
 0x2d8   :  { %322 = vadd.xlane.f32.xlu1 %v321_v45 }
 0x2e9   :  { %348 = vbcast.lane.b32.xlu1 %v6289_v52, 264 }
 0x365   :  { %v323_v35 = vpop.xlane.xlu1 %322 }
 0x366   :  { %5982 = vrcp.f32 %v323_v35 }
 0x369   :  { %v349_v40 = vpop.permute.xlu1 %348 }
 0x36a   :  { %v355_v43 = vmul.f32 0.001, %v349_v40 }
 0x36c   :  { %v357_v45 = vadd.f32 %v355_v43, %v354_v39 }
 0x36e   :  { %v360_v48 = vadd.f32 %v359_v44, %v357_v45 }
 0x370   :  { %v5983_v49 = vpop.eup %5982  ;;  %v361_v54 = vrot.slane %v360_v48, 4 }
 0x371   :  { %v325_v55 = vmul.f32 %v5983_v49, %v6358_v23 }
 0x372   :  { %v362_v58 = vadd.f32 %v361_v54, %v360_v48 }
 0x373   :  { %446 = vperm.xlu0 %5957, %v325_v55   ;;  %538 = vperm.xlu1 %5956, %v325_v55  }
 0x374   :  { %v363_v59 = vrot.slane %v362_v58, 2 }
 0x376   :  { %v364_v62 = vadd.f32 %v363_v59, %v362_v58 }
 0x377   :  { %5958 = vset.pattern.permute.xlu1 %v8205_v0  ;;  %860 = vrot.lane.b32.xlu0 %v4870_v61, %s6142_s16 }
 0x378   :  { %548 = vperm.xlu1 %5958, %v325_v55   ;;  %v365_v2 = vrot.slane %v364_v62, 1 }
 0x37a   :  { %v6521_v8 = vadd.f32 %v365_v2, %v364_v62  ;;  %v6570_v2 = vsub.s32 0, %v6225_v10 }
 0x37c   :  { %8253 = vst [vmem:[#allocation9_spill] sm:$0xff] %v6521_v8  ;;  %662 = vmatprep.mubr.f32.mxu1 %v6521_v8  ;;  %5959 = vset.pattern.permute.xlu1 %v8203_v16 }
 0x37d   :  { %663 = vmatmul.mubr.f32.vlgmr.msra.gmra.mrb[4].mxu1 %v6521_v8 }
 0x37e   :  { %5655 = vmatpush3.bf16.msra.mxu1 %v6204_v4  ;;  %5390 = vmatprep.mubr.msk.f32.mxu1 %vm6139_vm0, %v8209_v6 }
 0x37f   :  { %5656 = vmatprep.subr.bf16.mxu1 %v8207_v3 }
 0x382   :  { %5658 = vmatpush3.bf16.msra.mxu1 %v6215_v7 }
 0x383   :  { %5659 = vmatprep.subr.bf16.mxu1 %v8207_v3 }
 0x385   :  { %5391 = vmatmul.mubr.msk.f32.vlgmr.msra.gmra.mrb[6].mxu1 %vm141_vm1, %v6343_v17 }
 0x386   :  { %5661 = vmatpush3.bf16.msra.mxu1 %v6286_v51  ;;  %5401 = vmatprep.mubr.msk.f32.mxu1 %vm6139_vm0, %v8209_v6 }
 0x387   :  { %5662 = vmatprep.subr.bf16.mxu1 %v8207_v3 }
 0x38a   :  { %5664 = vmatpush3.bf16.msra.mxu1 %v6307_v56 }
 0x38b   :  { %5665 = vmatprep.subr.bf16.mxu1 %v8207_v3 }
 0x3f2   :  { %v539_v23 = vpop.permute.xlu1 %538  ;;  %v447_v9 = vpop.permute.xlu0 %446 }
 0x3f3   :  { %v541_v12 = vmul.f32 %v539_v23, %v6331_v1  ;;  %v449_v39 = vmul.f32 %v447_v9, %v6331_v1 }
 0x3f5   :  { %543 = vrot.lane.b32.xlu1 %v541_v12, %s6147_s15  ;;  %v453_v9 = vrot.slane %v449_v39, %v6570_v2 }
 0x3f6   :  { %v861_v15 = vpop.permute.xlu0 %860 }
 0x3f7   :  { %v6543_v17 = vadd.f32 %v861_v15, %v6417_v42  ;;  %v549_v35 = vpop.permute.xlu1 %548 }
 0x3f8   :  { %v551_v44 = vmul.f32 %v6289_v52, %v549_v35 }
 0x3f9   :  { %8254 = vst [vmem:[#allocation10_spill] sm:$0xff] %v6543_v17  ;;  %v864_v20 = vsel %vm309_vm6, %v6543_v17, -inf }
 0x3fa   :  { %865 = vmax.xlane.f32.xlu0 %v864_v20 }
 0x450   :  { %v4978_v21 = vpop.f32.mrb[4].mxu1 }
 0x451   :  { %v4979_v24 = vpop.f32.mrb[5].mxu1 }
 0x452   :  { %v6547_v25 = vadd.f32 %v4979_v24, %v4978_v21 }
 0x454   :  { %8255 = vst [vmem:[#allocation11_spill] sm:$0xff] %v6547_v25 }
 0x458   :  { %v1390_v29 = vpop.f32.mrb[6].mxu1 }
 0x459   :  { %v1394_v33 = vadd.f32 %v4879_v28, %v1390_v29  ;;  %v5392_v34 = vpop.f32.mrb[7].mxu1 }
 0x45b   :  { %5984 = vtanh.f32 %v1394_v33 }
 0x465   :  { %v6552_v36 = vpop.eup %5984 }
 0x466   :  { %v1396_v40 = vmax.f32 %v6552_v36, 0.0 }
 0x467   :  { %v544_v43 = vpop.permute.xlu1 %543 }
 0x468   :  { %v546_v45 = vadd.f32 %v544_v43, %v449_v39  ;;  %v1397_v48 = vsub.f32 1.0, %v1396_v40 }
 0x46a   :  { %v552_v49 = vadd.f32 %v551_v44, %v546_v45  ;;  %5402 = vmatmul.mubr.msk.f32.vlgmr.msra.gmra.mrb[8].mxu1 %vm141_vm1, %v1397_v48 }
 0x46b   :  { %5667 = vmatpush3.bf16.msk.msra.mxu1 %vm6266_vm11, %v8201_v47  ;;  %5410 = vmatprep.mubr.msk.f32.mxu1 %vm6139_vm0, %v8209_v6 }
 0x46c   :  { %v553_v54 = vmax.f32 %v552_v49, 0.0  ;;  %5408 = vmatprep.subr.mxu1 %v8209_v6 }
 0x46e   :  { %v554_v1 = vmul.f32 %v553_v54, %v553_v54 }
 0x46f   :  { %5409 = vmatpush3.msk.msra.mxu1 %vm358_vm4, %v6292_v53 }
 0x470   :  { %v555_v52 = vmul.f32 %v554_v1, %v554_v1  ;;  %5669 = vmatprep.subr.bf16.mxu1 %v6371_v27  ;;  %v6577_v27 = vsub.s32 1, %v6225_v10 }
 0x472   :  { %v556_v55 = vmul.f32 %v555_v52, %v553_v54  ;;  %v468_v12 = vrot.slane %v449_v39, %v6577_v27 }
 0x474   :  { %v558_v58 = vsel %vm557_vm8, %v556_v55, 0.0 }
 0x475   :  { %559 = vadd.xlane.f32.xlu1 %v558_v58 }
 0x487   :  { %v866_v59 = vpop.xlane.xlu0 %865 }
 0x488   :  { %v867_v61 = vsub.f32 %v6543_v17, %v866_v59 }
 0x48a   :  { %v868_v62 = vmul.f32 1.442695, %v867_v61 }
 0x48c   :  { %5986 = vpow2.f32 %v868_v62 }
 0x496   :  { %v6572_v23 = vpop.eup %5986 }
 0x497   :  { %871 = vrot.lane.b32.xlu0 %v6572_v23, %s6143_s21 }
 0x49b   :  { %459 = vbcast.lane.b32.xlu0 %v453_v9, 264 }
 0x49f   :  { %474 = vbcast.lane.b32.xlu0 %v468_v12, 264 }
 0x4a3   :  { %478 = vbcast.lane.b32.xlu0 %v468_v12, 272 }
 0x502   :  { %v560_v15 = vpop.xlane.xlu1 %559 }
 0x503   :  { %5988 = vrcp.f32 %v560_v15 }
 0x509   :  { %v872_v20 = vpop.permute.xlu0 %871 }
 0x50a   :  { %v874_v21 = vsel %vm320_vm7, %v872_v20, 0.0 }
 0x50b   :  { %875 = vadd.xlane.f32.xlu1 %v874_v21 }
 0x50d   :  { %v5989_v24 = vpop.eup %5988 }
 0x50e   :  { %v6582_v28 = vmul.f32 %v5989_v24, %v556_v55 }
 0x510   :  { %5380 = vmatmul.mubr.msk.f32.vlgmr.msra.gmra.mrb[6].mxu0 %vm367_vm13, %v6582_v28  ;;  %v897_v10 = vrot.slane %v6582_v28, %v6570_v2  ;;  %v912_v29 = vrot.slane %v6582_v28, %v6577_v27 }
 0x511   :  { %5624 = vmatpush3.bf16.msra.mxu0 %v6382_v31 }
 0x512   :  { %903 = vbcast.lane.b32.xlu0 %v897_v10, 264  ;;  %5626 = vmatprep.subr.bf16.mxu0 %v6384_v32 }
 0x515   :  { %5628 = vmatpush3.bf16.msra.mxu0 %v6401_v37 }
 0x516   :  { %918 = vbcast.lane.b32.xlu0 %v912_v29, 264  ;;  %5630 = vmatprep.subr.bf16.mxu0 %v6404_v38 }
 0x519   :  { %5632 = vmatpush3.bf16.msra.mxu0 %v6413_v41 }
 0x51a   :  { %922 = vbcast.lane.b32.xlu0 %v912_v29, 272  ;;  %5634 = vmatprep.subr.bf16.mxu0 %v6426_v50 }
 0x51c   :  { %455 = vbcast.lane.b32.xlu1 %v453_v9, 256 }
 0x51d   :  { %5636 = vmatpush3.bf16.msra.mxu0 %v6434_v57 }
 0x51e   :  { %5638 = vmatprep.subr.bf16.mxu0 %v6445_v60 }
 0x520   :  { %470 = vbcast.lane.b32.xlu1 %v468_v12, 256 }
 0x521   :  { %5640 = vmatpush3.bf16.msra.mxu0 %v6453_v63 }
 0x522   :  { %5642 = vmatprep.subr.bf16.mxu0 %v6463_v5  ;;  %v460_v5 = vpop.permute.xlu0 %459 }
 0x524   :  { %463 = vbcast.lane.b32.xlu1 %v453_v9, 272 }
 0x525   :  { %5644 = vmatpush3.bf16.msra.mxu0 %v6471_v11  ;;  %v4863_v11 = vld.sshfl [vmem:[%s8193_s0] sm:$0x33 pattern:$0x75316420] }
 0x526   :  { %5646 = vmatprep.subr.bf16.mxu0 %v6483_v19  ;;  %v475_v33 = vpop.permute.xlu0 %474  ;;  %v488_v35 = vcombine.high %v4863_v11, %v4863_v11  ;;  %v492_v49 = vrot.slane %v4863_v11, %v6570_v2  ;;  %v496_v1 = vrot.slane %v4863_v11, %v6577_v27 }
 0x528   :  { %899 = vbcast.lane.b32.xlu1 %v897_v10, 256  ;;  %v500_v43 = vrot.slane %v488_v35, %v6570_v2  ;;  %v504_v45 = vrot.slane %v488_v35, %v6577_v27  ;;  %v4864_v62 = vadd.f32 -0.001, %v492_v49  ;;  %v4865_v12 = vadd.f32 -0.001, %v496_v1 }
 0x529   :  { %5648 = vmatpush3.bf16.msra.mxu0 %v6491_v22 }
 0x52a   :  { %5650 = vmatprep.subr.bf16.mxu0 %v6501_v26  ;;  %v479_v39 = vpop.permute.xlu0 %478  ;;  %v4866_v54 = vadd.f32 -0.001, %v500_v43  ;;  %v4867_v52 = vadd.f32 -0.001, %v504_v45  ;;  %v515_v11 = vmul.f32 %v4864_v62, %v460_v5  ;;  %v516_v45 = vmul.f32 %v4865_v12, %v460_v5 }
 0x52c   :  { %914 = vbcast.lane.b32.xlu1 %v912_v29, 256  ;;  %v521_v9 = vmul.f32 %v4866_v54, %v475_v33  ;;  %v522_v15 = vmul.f32 %v4867_v52, %v475_v33  ;;  %v523_v20 = vmul.f32 %v4866_v54, %v479_v39  ;;  %v524_v21 = vmul.f32 %v4867_v52, %v479_v39 }
 0x52d   :  { %5652 = vmatpush3.bf16.msra.mxu0 %v6509_v30 }
 0x52e   :  { %5700 = vmatprep.subr.bf16.mxu0 %v8207_v3  ;;  %v6616_v35 = vadd.f32 0.001, %v521_v9  ;;  %v6618_v47 = vadd.f32 0.001, %v522_v15  ;;  %v6622_v49 = vadd.f32 0.001, %v524_v21 }
 0x52f   :  { %v4880_v9 = vld [vmem:[%s8195_s2 + $0x4] sm:$0x3] }
 0x530   :  { %907 = vbcast.lane.b32.xlu1 %v897_v10, 272 }
 0x53d   :  { %v6606_v60 = vpop.f32.mrb[8].mxu1 }
 0x53e   :  { %8256 = vst [vmem:[#allocation12_spill] sm:$0xff] %v6606_v60  ;;  %v5403_v63 = vpop.f32.mrb[9].mxu1 }
 0x584   :  { %v904_v44 = vpop.permute.xlu0 %903 }
 0x588   :  { %v919_v58 = vpop.permute.xlu0 %918 }
 0x589   :  { %v932_v15 = vmul.f32 %v919_v58, %v6616_v35 }
 0x58c   :  { %v923_v43 = vpop.permute.xlu0 %922 }
 0x58d   :  { %v935_v5 = vmul.f32 %v923_v43, %v6622_v49 }
 0x598   :  { %v876_v34 = vpop.xlane.xlu1 %875 }
 0x599   :  { %5990 = vrcp.f32 %v876_v34 }
 0x59c   :  { %v456_v40 = vpop.permute.xlu1 %455 }
 0x59d   :  { %v513_v29 = vmul.f32 %v4864_v62, %v456_v40  ;;  %v514_v63 = vmul.f32 %v4865_v12, %v456_v40 }
 0x59f   :  { %v6632_v1 = vadd.f32 0.001, %v513_v29 }
 0x5a0   :  { %v471_v48 = vpop.permute.xlu1 %470 }
 0x5a1   :  { %v519_v24 = vmul.f32 %v4866_v54, %v471_v48  ;;  %v520_v10 = vmul.f32 %v4867_v52, %v471_v48  ;;  %v6634_v52 = vadd.f32 0.001, %v514_v63 }
 0x5a3   :  { %v5991_v55 = vpop.eup %5990  ;;  %v6626_v33 = vadd.f32 0.001, %v519_v24  ;;  %v6628_v39 = vadd.f32 0.001, %v520_v10 }
 0x5a4   :  { %v464_v59 = vpop.permute.xlu1 %463  ;;  %v878_v61 = vmul.f32 %v5991_v55, %v6572_v23  ;;  %v6620_v23 = vadd.f32 0.001, %v523_v20  ;;  %v933_v20 = vmul.f32 %v919_v58, %v6618_v47 }
 0x5a5   :  { %v517_v40 = vmul.f32 %v4864_v62, %v464_v59  ;;  %v518_v48 = vmul.f32 %v4865_v12, %v464_v59  ;;  %v6643_v62 = vadd.f32 0.001, %v515_v11  ;;  %v6645_v12 = vadd.f32 0.001, %v516_v45 }
 0x5a6   :  { %1047 = vperm.xlu0 %5957, %v878_v61   ;;  %1147 = vperm.xlu1 %5959, %v878_v61   ;;  %v934_v54 = vmul.f32 %v923_v43, %v6620_v23  ;;  %v964_v45 = vsel %vm358_vm4, %v935_v5, 0.0 }
 0x5a7   :  { %v6649_v10 = vadd.f32 0.001, %v517_v40  ;;  %v6651_v29 = vadd.f32 0.001, %v518_v48  ;;  %v926_v58 = vmul.f32 %v904_v44, %v6643_v62 }
 0x5a8   :  { %v900_v34 = vpop.permute.xlu1 %899  ;;  %v955_v11 = vsel %vm358_vm4, %v934_v54, 0.0 }
 0x5a9   :  { %v924_v21 = vmul.f32 %v900_v34, %v6632_v1  ;;  %v925_v24 = vmul.f32 %v900_v34, %v6634_v52 }
 0x5aa   :  { %5960 = vset.pattern.permute.xlu1 %v8205_v0  ;;  %5961 = vset.pattern.permute.xlu0 %v8203_v16 }
 0x5ab   :  { %1157 = vperm.xlu1 %5960, %v878_v61  }
 0x5ac   :  { %v915_v55 = vpop.permute.xlu1 %914 }
 0x5ad   :  { %v930_v59 = vmul.f32 %v915_v55, %v6626_v33  ;;  %v931_v61 = vmul.f32 %v915_v55, %v6628_v39  ;;  %v927_v55 = vmul.f32 %v904_v44, %v6645_v12 }
 0x5af   :  { %v954_v63 = vadd.f32 %v932_v15, %v930_v59  ;;  %v963_v43 = vadd.f32 %v933_v20, %v931_v61  ;;  %1483 = vrot.lane.b32.xlu1 %v4880_v9, %s6142_s16  ;;  %v936_v20 = vadd.f32 %v926_v58, %v924_v21  ;;  %v945_v59 = vadd.f32 %v927_v55, %v925_v24 }
 0x5b0   :  { %v908_v16 = vpop.permute.xlu1 %907  ;;  %5962 = vset.pattern.permute.xlu1 %v8211_v18 }
 0x5b1   :  { %v956_v34 = vadd.f32 %v955_v11, %v954_v63  ;;  %v965_v40 = vadd.f32 %v964_v45, %v963_v43  ;;  %v928_v48 = vmul.f32 %v908_v16, %v6649_v10  ;;  %v929_v15 = vmul.f32 %v908_v16, %v6651_v29 }
 0x5b3   :  { %v957_v9 = vrot.slane %v956_v34, 4  ;;  %v966_v61 = vrot.slane %v965_v40, 4  ;;  %v937_v0 = vsel %vm358_vm4, %v928_v48, 0.0  ;;  %v946_v44 = vsel %vm358_vm4, %v929_v15, 0.0 }
 0x5b4   :  { %v938_v54 = vadd.f32 %v937_v0, %v936_v20  ;;  %v947_v3 = vadd.f32 %v946_v44, %v945_v59  ;;  %v8257_v44 = vmov 0.0  }
 0x5b5   :  { %v958_v5 = vadd.f32 %v957_v9, %v956_v34  ;;  %v967_v6 = vadd.f32 %v966_v61, %v965_v40 }
 0x5b6   :  { %v939_v25 = vrot.slane %v938_v54, 4  ;;  %v948_v18 = vrot.slane %v947_v3, 4 }
 0x5b7   :  { %v959_v63 = vrot.slane %v958_v5, 2  ;;  %v968_v43 = vrot.slane %v967_v6, 2 }
 0x5b8   :  { %v940_v11 = vadd.f32 %v939_v25, %v938_v54  ;;  %v949_v45 = vadd.f32 %v948_v18, %v947_v3  ;;  %v8258_v54 = vmov 0.0|0.0  }
 0x5b9   :  { %v969_v17 = vadd.f32 %v968_v43, %v967_v6  ;;  %v960_v16 = vadd.f32 %v959_v63, %v958_v5 }
 0x5ba   :  { %v941_v21 = vrot.slane %v940_v11, 2  ;;  %v950_v24 = vrot.slane %v949_v45, 2 }
 0x5bb   :  { %v970_v58 = vrot.slane %v969_v17, 1  ;;  %v961_v55 = vrot.slane %v960_v16, 1 }
 0x5bc   :  { %v951_v42 = vadd.f32 %v950_v24, %v949_v45  ;;  %v942_v48 = vadd.f32 %v941_v21, %v940_v11 }
 0x5bd   :  { %v971_v8 = vadd.f32 %v970_v58, %v969_v17  ;;  %v962_v15 = vadd.f32 %v961_v55, %v960_v16 }
 0x5be   :  { %v952_v0 = vrot.slane %v951_v42, 1  ;;  %v943_v20 = vrot.slane %v942_v48, 1 }
 0x5bf   :  { %v1284_v59 = vmul.f32 %v971_v8, %v971_v8  ;;  %v1283_v9 = vmul.f32 %v962_v15, %v962_v15 }
 0x5c0   :  { %v953_v34 = vadd.f32 %v952_v0, %v951_v42  ;;  %v944_v40 = vadd.f32 %v943_v20, %v942_v48 }
 0x5c2   :  { %v1208_v25 = vsel %vm596_vm9, %v971_v8, %v953_v34  ;;  %v1282_v3 = vmul.f32 %v953_v34, %v953_v34  ;;  %v1207_v6 = vsel %vm596_vm9, %v962_v15, %v944_v40  ;;  %v1281_v18 = vmul.f32 %v944_v40, %v944_v40 }
 0x5c3   :  { %1275 = vmatprep.mubr.f32.mxu0 %v1208_v25 }
 0x5c4   :  { %1276 = vmatmul.mubr.f32.vlgmr.msra.gmra.mrb[8].mxu0 %v1207_v6  ;;  %v1289_v61 = vsel %vm596_vm9, %v1283_v9, %v1281_v18  ;;  %v1290_v17 = vsel %vm596_vm9, %v1284_v59, %v1282_v3  ;;  %v4889_v9 = vld [vmem:[%s8194_s1 + $0x6] sm:$0x3] }
 0x5c5   :  { %5702 = vmatpush3.bf16.msra.mxu0 %v6204_v4  ;;  %5421 = vmatprep.mubr.msk.f32.mxu0 %vm6139_vm0, %v8257_v44  ;;  %v1293_v42 = vsel %vm671_vm10, %v1289_v61, 0.0  ;;  %v1294_v8 = vsel %vm671_vm10, %v1290_v17, 0.0 }
 0x5c6   :  { %5703 = vmatprep.subr.bf16.mxu0 %v8258_v54  ;;  %v6673_v5 = vadd.f32 %v1294_v8, %v1293_v42 }
 0x5c8   :  { %8259 = vst [vmem:[#allocation13_spill] sm:$0xff] %v6673_v5 }
 0x5c9   :  { %5705 = vmatpush3.bf16.msra.mxu0 %v6215_v7 }
 0x5ca   :  { %5706 = vmatprep.subr.bf16.mxu0 %v8258_v54 }
 0x5cc   :  { %5422 = vmatmul.mubr.msk.f32.vlgmr.msra.gmra.mrb[10].mxu0 %vm141_vm1, %v6552_v36 }
 0x5cd   :  { %5708 = vmatpush3.bf16.msra.mxu0 %v6286_v51  ;;  %5432 = vmatprep.mubr.msk.f32.mxu0 %vm6139_vm0, %v8257_v44 }
 0x5ce   :  { %5709 = vmatprep.subr.bf16.mxu0 %v8258_v54 }
 0x5d1   :  { %5711 = vmatpush3.bf16.msra.mxu0 %v6307_v56 }
 0x5d2   :  { %5712 = vmatprep.subr.bf16.mxu0 %v8258_v54 }
 0x5e3   :  { %v1041_v63 = vpop.f32.mrb[6].mxu0 }
 0x5e4   :  { %v5381_v43 = vpop.f32.mrb[7].mxu0 }
 0x625   :  { %v1148_v11 = vpop.permute.xlu1 %1147  ;;  %v1048_v58 = vpop.permute.xlu0 %1047 }
 0x626   :  { %v1150_v45 = vmul.f32 %v1148_v11, %v1041_v63  ;;  %v1050_v15 = vmul.f32 %v1048_v58, %v1041_v63  ;;  %v8262_v11 = vmov 1.0|1.0  }
 0x628   :  { %1152 = vrot.lane.b32.xlu0 %v1150_v45, %s6147_s15  ;;  %v1054_v58 = vrot.slane %v1050_v15, %v6570_v2 }
 0x62a   :  { %v1158_v16 = vpop.permute.xlu1 %1157 }
 0x62b   :  { %v1160_v34 = vmul.f32 %v1158_v16, %v6582_v28 }
 0x62e   :  { %v1484_v21 = vpop.permute.xlu1 %1483 }
 0x62f   :  { %v6687_v36 = vadd.f32 %v1484_v21, %v6606_v60 }
 0x631   :  { %8260 = vst [vmem:[#allocation14_spill] sm:$0xff] %v6687_v36  ;;  %v1487_v24 = vsel %vm309_vm6, %v6687_v36, -inf }
 0x632   :  { %1488 = vmax.xlane.f32.xlu1 %v1487_v24 }
 0x697   :  { %v5027_v55 = vpop.f32.mrb[8].mxu0 }
 0x698   :  { %v5028_v48 = vpop.f32.mrb[9].mxu0 }
 0x699   :  { %v6691_v0 = vadd.f32 %v5028_v48, %v5027_v55  ;;  %v1069_v55 = vrot.slane %v1050_v15, %v6577_v27 }
 0x69a   :  { %v1153_v20 = vpop.permute.xlu0 %1152 }
 0x69b   :  { %8261 = vst [vmem:[#allocation15_spill] sm:$0xff] %v6691_v0  ;;  %v1155_v40 = vadd.f32 %v1153_v20, %v1050_v15 }
 0x69d   :  { %v1161_v59 = vadd.f32 %v1160_v34, %v1155_v40 }
 0x69f   :  { %v1162_v25 = vmax.f32 %v1161_v59, 0.0  ;;  %v2013_v3 = vpop.f32.mrb[10].mxu0 }
 0x6a0   :  { %v2017_v6 = vadd.f32 %v4889_v9, %v2013_v3  ;;  %v5423_v18 = vpop.f32.mrb[11].mxu0 }
 0x6a1   :  { %v1163_v61 = vmul.f32 %v1162_v25, %v1162_v25  ;;  %v1805_v18 = vld [vmem:[%s8198_s5 + $0x58] sm:$0xff] }
 0x6a2   :  { %5992 = vtanh.f32 %v2017_v6  ;;  %v1804_v6 = vld [vmem:[%s8198_s5 + $0x50] sm:$0xff] }
 0x6a3   :  { %v1164_v17 = vmul.f32 %v1163_v61, %v1163_v61  ;;  %v6765_v61 = vpack.c.bf16 %v1805_v18, %v1804_v6 }
 0x6a5   :  { %v1165_v42 = vmul.f32 %v1164_v17, %v1162_v25  ;;  %v1821_v25 = vld [vmem:[%s8198_s5 + $0xd8] sm:$0xff] }
 0x6a7   :  { %v1166_v8 = vsel %vm557_vm8, %v1165_v42, 0.0 }
 0x6a8   :  { %1167 = vadd.xlane.f32.xlu0 %v1166_v8 }
 0x6ac   :  { %v6698_v63 = vpop.eup %5992 }
 0x6ad   :  { %v2019_v28 = vmax.f32 %v6698_v63, 0.0 }
 0x6af   :  { %v2020_v43 = vsub.f32 1.0, %v2019_v28 }
 0x6b1   :  { %5433 = vmatmul.mubr.msk.f32.vlgmr.msra.gmra.mrb[12].mxu0 %vm141_vm1, %v2020_v43 }
 0x6b2   :  { %5714 = vmatpush3.bf16.msk.msra.mxu0 %vm6266_vm11, %v8262_v11  ;;  %5441 = vmatprep.mubr.msk.f32.mxu0 %vm6139_vm0, %v8257_v44 }
 0x6b3   :  { %5439 = vmatprep.subr.mxu0 %v8257_v44 }
 0x6b6   :  { %5440 = vmatpush3.msk.msra.mxu0 %vm358_vm4, %v6292_v53 }
 0x6bf   :  { %v1489_v45 = vpop.xlane.xlu1 %1488 }
 0x6c0   :  { %v1490_v16 = vsub.f32 %v6687_v36, %v1489_v45 }
 0x6c2   :  { %v1491_v21 = vmul.f32 1.442695, %v1490_v16 }
 0x6c4   :  { %5994 = vpow2.f32 %v1491_v21 }
 0x6ce   :  { %v6711_v24 = vpop.eup %5994 }
 0x6cf   :  { %1494 = vrot.lane.b32.xlu0 %v6711_v24, %s6143_s21 }
 0x6d3   :  { %1060 = vbcast.lane.b32.xlu0 %v1054_v58, 264 }
 0x6d7   :  { %1071 = vbcast.lane.b32.xlu0 %v1069_v55, 256 }
 0x6db   :  { %1064 = vbcast.lane.b32.xlu0 %v1054_v58, 272 }
 0x735   :  { %v1168_v48 = vpop.xlane.xlu0 %1167 }
 0x736   :  { %5996 = vrcp.f32 %v1168_v48 }
 0x740   :  { %v5997_v20 = vpop.eup %5996 }
 0x741   :  { %v1495_v34 = vpop.permute.xlu0 %1494  ;;  %v6717_v40 = vmul.f32 %v5997_v20, %v1165_v42 }
 0x742   :  { %v1497_v59 = vsel %vm320_vm7, %v1495_v34, 0.0 }
 0x743   :  { %5411 = vmatmul.mubr.msk.f32.vlgmr.msra.gmra.mrb[10].mxu1 %vm367_vm13, %v6717_v40  ;;  %1498 = vadd.xlane.f32.xlu1 %v1497_v59  ;;  %v1520_v9 = vrot.slane %v6717_v40, %v6570_v2  ;;  %v1535_v15 = vrot.slane %v6717_v40, %v6577_v27 }
 0x744   :  { %5671 = vmatpush3.bf16.msra.mxu1 %v6382_v31  ;;  %v1818_v31 = vld [vmem:[%s8198_s5 + $0xc0] sm:$0xff] }
 0x745   :  { %1522 = vbcast.lane.b32.xlu0 %v1520_v9, 256  ;;  %5673 = vmatprep.subr.bf16.mxu1 %v6384_v32  ;;  %v1819_v32 = vld [vmem:[%s8198_s5 + $0xc8] sm:$0xff]  ;;  %v1061_v8 = vpop.permute.xlu0 %1060 }
 0x748   :  { %5675 = vmatpush3.bf16.msra.mxu1 %v6401_v37  ;;  %v6739_v37 = vpack.c.bf16 %v1819_v32, %v1818_v31 }
 0x749   :  { %1537 = vbcast.lane.b32.xlu0 %v1535_v15, 256  ;;  %5677 = vmatprep.subr.bf16.mxu1 %v6404_v38  ;;  %v1802_v38 = vld [vmem:[%s8198_s5 + $0x40] sm:$0xff]  ;;  %v1072_v28 = vpop.permute.xlu0 %1071 }
 0x74c   :  { %5679 = vmatpush3.bf16.msra.mxu1 %v6413_v41  ;;  %v1803_v41 = vld [vmem:[%s8198_s5 + $0x48] sm:$0xff] }
 0x74d   :  { %1530 = vbcast.lane.b32.xlu0 %v1520_v9, 272  ;;  %5681 = vmatprep.subr.bf16.mxu1 %v6426_v50  ;;  %v6747_v50 = vpack.c.bf16 %v1803_v41, %v1802_v38  ;;  %v1065_v43 = vpop.permute.xlu0 %1064 }
 0x750   :  { %5683 = vmatpush3.bf16.msra.mxu1 %v6434_v57  ;;  %v1820_v57 = vld [vmem:[%s8198_s5 + $0xd0] sm:$0xff] }
 0x751   :  { %5685 = vmatprep.subr.bf16.mxu1 %v6739_v37  ;;  %v6757_v3 = vpack.c.bf16 %v1821_v25, %v1820_v57 }
 0x754   :  { %1056 = vbcast.lane.b32.xlu1 %v1054_v58, 256  ;;  %5687 = vmatpush3.bf16.msra.mxu1 %v6747_v50 }
 0x755   :  { %5689 = vmatprep.subr.bf16.mxu1 %v6757_v3 }
 0x758   :  { %1075 = vbcast.lane.b32.xlu1 %v1069_v55, 264  ;;  %5691 = vmatpush3.bf16.msra.mxu1 %v6765_v61 }
 0x759   :  { %5693 = vmatprep.subr.bf16.mxu1 %v6483_v19  ;;  %v4877_v19 = vld.sshfl [vmem:[%s8193_s0 + $0x4] sm:$0x33 pattern:$0x75316420] }
 0x75c   :  { %1079 = vbcast.lane.b32.xlu1 %v1069_v55, 272  ;;  %5695 = vmatpush3.bf16.msra.mxu1 %v6491_v22  ;;  %v1089_v22 = vcombine.high %v4877_v19, %v4877_v19 }
 0x75d   :  { %5697 = vmatprep.subr.bf16.mxu1 %v6501_v26  ;;  %v1093_v26 = vrot.slane %v4877_v19, %v6570_v2 }
 0x75e   :  { %v1101_v20 = vrot.slane %v1089_v22, %v6570_v2  ;;  %v1105_v34 = vrot.slane %v1089_v22, %v6577_v27 }
 0x75f   :  { %v1110_v55 = vsub.f32 %v1093_v26, %v6632_v1  ;;  %v1114_v59 = vsub.f32 %v1093_v26, %v6649_v10  ;;  %v1112_v31 = vsub.f32 %v1093_v26, %v6643_v62 }
 0x760   :  { %1526 = vbcast.lane.b32.xlu1 %v1520_v9, 264  ;;  %5699 = vmatpush3.bf16.msra.mxu1 %v6509_v30  ;;  %v1097_v30 = vrot.slane %v4877_v19, %v6577_v27 }
 0x761   :  { %5747 = vmatprep.subr.bf16.mxu1 %v8258_v54  ;;  %v1126_v57 = vmul.f32 %v1114_v59, %v1065_v43  ;;  %v1124_v18 = vmul.f32 %v1112_v31, %v1061_v8 }
 0x762   :  { %v1111_v48 = vsub.f32 %v1097_v30, %v6634_v52  ;;  %v1115_v9 = vsub.f32 %v1097_v30, %v6651_v29  ;;  %v1113_v32 = vsub.f32 %v1097_v30, %v6645_v12  ;;  %v1119_v30 = vsub.f32 %v1105_v34, %v6618_v47 }
 0x764   :  { %1541 = vbcast.lane.b32.xlu1 %v1535_v15, 264  ;;  %v1127_v25 = vmul.f32 %v1115_v9, %v1065_v43  ;;  %v6802_v43 = vadd.f32 %v1126_v57, %v6649_v10 }
 0x768   :  { %1545 = vbcast.lane.b32.xlu1 %v1535_v15, 272 }
 0x784   :  { %v6774_v17 = vpop.f32.mrb[12].mxu0 }
 0x785   :  { %8263 = vst [vmem:[#allocation16_spill] sm:$0xff] %v6774_v17  ;;  %v5434_v42 = vpop.f32.mrb[13].mxu0 }
 0x786   :  { %v1125_v42 = vmul.f32 %v1113_v32, %v1061_v8  ;;  %v6805_v8 = vadd.f32 %v1127_v25, %v6651_v29 }
 0x7b7   :  { %v1523_v16 = vpop.permute.xlu0 %1522 }
 0x7bb   :  { %v6781_v58 = vpop.permute.xlu0 %1537 }
 0x7bf   :  { %v1531_v0 = vpop.permute.xlu0 %1530 }
 0x7c0   :  { %v1551_v10 = vmul.f32 %v1531_v0, %v6802_v43  ;;  %v1552_v59 = vmul.f32 %v1531_v0, %v6805_v8 }
 0x7c2   :  { %v1560_v0 = vsel %vm358_vm4, %v1551_v10, 0.0 }
 0x7d0   :  { %v1499_v45 = vpop.xlane.xlu1 %1498 }
 0x7d1   :  { %5998 = vrcp.f32 %v1499_v45  ;;  %v1118_v45 = vsub.f32 %v1101_v20, %v6616_v35 }
 0x7d4   :  { %v1057_v21 = vpop.permute.xlu1 %1056 }
 0x7d5   :  { %v1122_v38 = vmul.f32 %v1110_v55, %v1057_v21  ;;  %v1123_v41 = vmul.f32 %v1111_v48, %v1057_v21  ;;  %v1120_v21 = vsub.f32 %v1101_v20, %v6620_v23  ;;  %v1121_v55 = vsub.f32 %v1105_v34, %v6622_v49 }
 0x7d6   :  { %v1117_v48 = vsub.f32 %v1105_v34, %v6628_v39 }
 0x7d7   :  { %v6794_v36 = vadd.f32 %v1122_v38, %v6632_v1  ;;  %v6797_v26 = vadd.f32 %v1123_v41, %v6634_v52  ;;  %v6809_v1 = vadd.f32 %v1124_v18, %v6643_v62  ;;  %v6812_v52 = vadd.f32 %v1125_v42, %v6645_v12 }
 0x7d8   :  { %v1076_v15 = vpop.permute.xlu1 %1075  ;;  %v1129_v57 = vmul.f32 %v1117_v48, %v1072_v28 }
 0x7d9   :  { %v1130_v29 = vmul.f32 %v1118_v45, %v1076_v15  ;;  %v1131_v9 = vmul.f32 %v1119_v30, %v1076_v15  ;;  %v1547_v32 = vmul.f32 %v1523_v16, %v6794_v36  ;;  %v1548_v38 = vmul.f32 %v1523_v16, %v6797_v26 }
 0x7da   :  { %v1569_v15 = vsel %vm358_vm4, %v1552_v59, 0.0 }
 0x7db   :  { %v5999_v6 = vpop.eup %5998  ;;  %v6826_v42 = vadd.f32 %v1130_v29, %v6616_v35  ;;  %v6829_v16 = vadd.f32 %v1131_v9, %v6618_v47  ;;  %v8265_v29 = vmov 16  }
 0x7dc   :  { %v1080_v19 = vpop.permute.xlu1 %1079  ;;  %v1501_v22 = vmul.f32 %v5999_v6, %v6711_v24  ;;  %v1116_v24 = vsub.f32 %v1101_v20, %v6626_v33  ;;  %v8264_v20 = vmov 18  }
 0x7dd   :  { %v1132_v34 = vmul.f32 %v1120_v21, %v1080_v19  ;;  %v1133_v25 = vmul.f32 %v1121_v55, %v1080_v19 }
 0x7de   :  { %1670 = vperm.xlu1 %5962, %v1501_v22   ;;  %1770 = vperm.xlu0 %5961, %v1501_v22   ;;  %v1128_v41 = vmul.f32 %v1116_v24, %v1072_v28  ;;  %v4890_v28 = vld [vmem:[%s8195_s2 + $0x6] sm:$0x3] }
 0x7df   :  { %v6843_v47 = vadd.f32 %v1132_v34, %v6620_v23  ;;  %v6846_v24 = vadd.f32 %v1133_v25, %v6622_v49 }
 0x7e0   :  { %v1527_v31 = vpop.permute.xlu1 %1526  ;;  %v6835_v21 = vadd.f32 %v1128_v41, %v6626_v33 }
 0x7e1   :  { %v1549_v62 = vmul.f32 %v1527_v31, %v6809_v1  ;;  %v1550_v12 = vmul.f32 %v1527_v31, %v6812_v52 }
 0x7e2   :  { %5963 = vset.pattern.permute.xlu1 %v8264_v20  ;;  %v1553_v33 = vmul.f32 %v6781_v58, %v6835_v21 }
 0x7e3   :  { %v1559_v6 = vadd.f32 %v1549_v62, %v1547_v32  ;;  %v1568_v18 = vadd.f32 %v1550_v12, %v1548_v38  ;;  %1780 = vperm.xlu1 %5963, %v1501_v22   ;;  %v6838_v22 = vadd.f32 %v1129_v57, %v6628_v39 }
 0x7e4   :  { %v1542_v45 = vpop.permute.xlu1 %1541 }
 0x7e5   :  { %v1561_v30 = vadd.f32 %v1560_v0, %v1559_v6  ;;  %v1570_v19 = vadd.f32 %v1569_v15, %v1568_v18  ;;  %v1555_v55 = vmul.f32 %v1542_v45, %v6826_v42  ;;  %v1556_v35 = vmul.f32 %v1542_v45, %v6829_v16 }
 0x7e6   :  { %v1554_v39 = vmul.f32 %v6781_v58, %v6838_v22 }
 0x7e7   :  { %v1562_v48 = vrot.slane %v1561_v30, 4  ;;  %v1571_v10 = vrot.slane %v1570_v19, 4  ;;  %2106 = vrot.lane.b32.xlu1 %v4890_v28, %s6142_s16  ;;  %v1577_v32 = vadd.f32 %v1555_v55, %v1553_v33 }
 0x7e8   :  { %v1546_v59 = vpop.permute.xlu1 %1545  ;;  %5964 = vset.pattern.permute.xlu1 %v8265_v29  ;;  %v1586_v38 = vadd.f32 %v1556_v35, %v1554_v39 }
 0x7e9   :  { %v1563_v9 = vadd.f32 %v1562_v48, %v1561_v30  ;;  %v1572_v31 = vadd.f32 %v1571_v10, %v1570_v19  ;;  %v1557_v23 = vmul.f32 %v1546_v59, %v6843_v47  ;;  %v1558_v49 = vmul.f32 %v1546_v59, %v6846_v24 }
 0x7eb   :  { %v1564_v62 = vrot.slane %v1563_v9, 2  ;;  %v1578_v12 = vsel %vm358_vm4, %v1557_v23, 0.0  ;;  %v1587_v41 = vsel %vm358_vm4, %v1558_v49, 0.0  ;;  %v1573_v57 = vrot.slane %v1572_v31, 2 }
 0x7ec   :  { %v1579_v34 = vadd.f32 %v1578_v12, %v1577_v32  ;;  %v1588_v25 = vadd.f32 %v1587_v41, %v1586_v38 }
 0x7ed   :  { %v1574_v58 = vadd.f32 %v1573_v57, %v1572_v31  ;;  %v1565_v6 = vadd.f32 %v1564_v62, %v1563_v9 }
 0x7ee   :  { %v1580_v18 = vrot.slane %v1579_v34, 4  ;;  %v1589_v0 = vrot.slane %v1588_v25, 4 }
 0x7ef   :  { %v1575_v28 = vrot.slane %v1574_v58, 1  ;;  %v1566_v30 = vrot.slane %v1565_v6, 1 }
 0x7f0   :  { %v1581_v15 = vadd.f32 %v1580_v18, %v1579_v34  ;;  %v1590_v45 = vadd.f32 %v1589_v0, %v1588_v25 }
 0x7f1   :  { %v1576_v10 = vadd.f32 %v1575_v28, %v1574_v58  ;;  %v1567_v33 = vadd.f32 %v1566_v30, %v1565_v6 }
 0x7f2   :  { %v1582_v19 = vrot.slane %v1581_v15, 2  ;;  %v1591_v48 = vrot.slane %v1590_v45, 2 }
 0x7f3   :  { %v1905_v32 = vmul.f32 %v1576_v10, %v1576_v10  ;;  %v1904_v38 = vmul.f32 %v1567_v33, %v1567_v33 }
 0x7f4   :  { %v1592_v55 = vadd.f32 %v1591_v48, %v1590_v45  ;;  %v1583_v35 = vadd.f32 %v1582_v19, %v1581_v15 }
 0x7f6   :  { %v1593_v39 = vrot.slane %v1592_v55, 1  ;;  %v1584_v59 = vrot.slane %v1583_v35, 1 }
 0x7f8   :  { %v1594_v23 = vadd.f32 %v1593_v39, %v1592_v55  ;;  %v1585_v49 = vadd.f32 %v1584_v59, %v1583_v35 }
 0x7fa   :  { %v1831_v9 = vsel %vm596_vm9, %v1594_v23, %v1576_v10  ;;  %v1907_v31 = vmul.f32 %v1594_v23, %v1594_v23  ;;  %v1830_v62 = vsel %vm596_vm9, %v1585_v49, %v1567_v33  ;;  %v1906_v12 = vmul.f32 %v1585_v49, %v1585_v49  ;;  %v4899_v49 = vld [vmem:[%s8194_s1 + $0x8] sm:$0x3] }
 0x7fb   :  { %1898 = vmatprep.mubr.f32.mxu1 %v1831_v9 }
 0x7fc   :  { %1899 = vmatmul.mubr.f32.vlgmr.msra.gmra.mrb[12].mxu1 %v1830_v62  ;;  %v1912_v41 = vsel %vm596_vm9, %v1906_v12, %v1904_v38  ;;  %v1913_v57 = vsel %vm596_vm9, %v1907_v31, %v1905_v32 }
 0x7fd   :  { %5749 = vmatpush3.bf16.msra.mxu1 %v6204_v4  ;;  %5452 = vmatprep.mubr.msk.f32.mxu1 %vm6139_vm0, %v8257_v44  ;;  %v1916_v34 = vsel %vm671_vm10, %v1912_v41, 0.0  ;;  %v1917_v25 = vsel %vm671_vm10, %v1913_v57, 0.0 }
 0x7fe   :  { %5750 = vmatprep.subr.bf16.mxu1 %v8258_v54  ;;  %v6868_v58 = vadd.f32 %v1917_v25, %v1916_v34 }
 0x800   :  { %8266 = vst [vmem:[#allocation17_spill] sm:$0xff] %v6868_v58 }
 0x801   :  { %5752 = vmatpush3.bf16.msra.mxu1 %v6215_v7 }
 0x802   :  { %5753 = vmatprep.subr.bf16.mxu1 %v8258_v54 }
 0x804   :  { %5453 = vmatmul.mubr.msk.f32.vlgmr.msra.gmra.mrb[14].mxu1 %vm141_vm1, %v6698_v63 }
 0x805   :  { %5755 = vmatpush3.bf16.msra.mxu1 %v6286_v51  ;;  %5463 = vmatprep.mubr.msk.f32.mxu1 %vm6139_vm0, %v8257_v44 }
 0x806   :  { %5756 = vmatprep.subr.bf16.mxu1 %v8258_v54 }
 0x809   :  { %5758 = vmatpush3.bf16.msra.mxu1 %v6307_v56 }
 0x80a   :  { %5759 = vmatprep.subr.bf16.mxu1 %v8258_v54 }
 0x816   :  { %v1664_v6 = vpop.f32.mrb[10].mxu1 }
 0x817   :  { %v5412_v18 = vpop.f32.mrb[11].mxu1 }
 0x85d   :  { %v1671_v0 = vpop.permute.xlu1 %1670  ;;  %v1771_v15 = vpop.permute.xlu0 %1770 }
 0x85e   :  { %v1773_v45 = vmul.f32 %v1771_v15, %v1664_v6  ;;  %v1673_v35 = vmul.f32 %v1671_v0, %v1664_v6 }
 0x860   :  { %1775 = vrot.lane.b32.xlu0 %v1773_v45, %s6147_s15  ;;  %v1677_v45 = vrot.slane %v1673_v35, %v6570_v2 }
 0x862   :  { %v1781_v28 = vpop.permute.xlu1 %1780 }
 0x863   :  { %v1783_v39 = vmul.f32 %v1781_v28, %v6717_v40  ;;  %v1692_v28 = vrot.slane %v1673_v35, %v6577_v27 }
 0x866   :  { %v2107_v63 = vpop.permute.xlu1 %2106 }
 0x867   :  { %v6882_v30 = vadd.f32 %v2107_v63, %v6774_v17 }
 0x869   :  { %8267 = vst [vmem:[#allocation18_spill] sm:$0xff] %v6882_v30  ;;  %v2110_v19 = vsel %vm309_vm6, %v6882_v30, -inf }
 0x86a   :  { %2111 = vmax.xlane.f32.xlu1 %v2110_v19 }
 0x8cf   :  { %v5076_v48 = vpop.f32.mrb[12].mxu1 }
 0x8d0   :  { %v5077_v55 = vpop.f32.mrb[13].mxu1 }
 0x8d1   :  { %v6886_v10 = vadd.f32 %v5077_v55, %v5076_v48 }
 0x8d2   :  { %v1776_v33 = vpop.permute.xlu0 %1775 }
 0x8d3   :  { %8268 = vst [vmem:[#allocation19_spill] sm:$0xff] %v6886_v10  ;;  %v1778_v59 = vadd.f32 %v1776_v33, %v1673_v35 }
 0x8d5   :  { %v1784_v23 = vadd.f32 %v1783_v39, %v1778_v59  ;;  %v2433_v59 = vld [vmem:[%s8198_s5 + $0x80] sm:$0xff] }
 0x8d7   :  { %v1785_v32 = vmax.f32 %v1784_v23, 0.0  ;;  %v2636_v38 = vpop.f32.mrb[14].mxu1  ;;  %v2434_v23 = vld [vmem:[%s8198_s5 + $0x88] sm:$0xff] }
 0x8d8   :  { %v2640_v9 = vadd.f32 %v4899_v49, %v2636_v38  ;;  %v5454_v31 = vpop.f32.mrb[15].mxu1  ;;  %v5715_v49 = vpack.c.bf16 %v2434_v23, %v2433_v59  ;;  %v2418_v38 = vld [vmem:[%s8198_s5 + $0x8] sm:$0xff]  ;;  %v2445_v23 = vld [vmem:[%s8198_s5 + $0xe0] sm:$0xff] }
 0x8d9   :  { %v1786_v62 = vmul.f32 %v1785_v32, %v1785_v32  ;;  %v2435_v31 = vld [vmem:[%s8198_s5 + $0x90] sm:$0xff] }
 0x8da   :  { %6000 = vtanh.f32 %v2640_v9  ;;  %5716 = vmatprep.subr.bf16.mxu0 %v5715_v49 }
 0x8db   :  { %v1787_v12 = vmul.f32 %v1786_v62, %v1786_v62  ;;  %v2436_v62 = vld [vmem:[%s8198_s5 + $0x98] sm:$0xff] }
 0x8dd   :  { %v1788_v41 = vmul.f32 %v1787_v12, %v1785_v32  ;;  %v2417_v32 = vld [vmem:[%s8198_s5] sm:$0xff]  ;;  %v6942_v12 = vpack.c.bf16 %v2436_v62, %v2435_v31  ;;  %v2432_v31 = vld [vmem:[%s8198_s5 + $0x78] sm:$0xff] }
 0x8de   :  { %v6933_v9 = vpack.c.bf16 %v2418_v38, %v2417_v32  ;;  %v2448_v32 = vld [vmem:[%s8198_s5 + $0xf8] sm:$0xff]  ;;  %v2431_v38 = vld [vmem:[%s8198_s5 + $0x70] sm:$0xff] }
 0x8df   :  { %v1789_v57 = vsel %vm557_vm8, %v1788_v41, 0.0 }
 0x8e0   :  { %1790 = vadd.xlane.f32.xlu0 %v1789_v57  ;;  %v2420_v57 = vld [vmem:[%s8198_s5 + $0x18] sm:$0xff] }
 0x8e4   :  { %v6893_v34 = vpop.eup %6000 }
 0x8e5   :  { %v2642_v40 = vmax.f32 %v6893_v34, 0.0 }
 0x8e7   :  { %v2643_v25 = vsub.f32 1.0, %v2642_v40 }
 0x8e9   :  { %5464 = vmatmul.mubr.msk.f32.vlgmr.msra.gmra.mrb[16].mxu1 %vm141_vm1, %v2643_v25  ;;  %v2437_v25 = vld [vmem:[%s8198_s5 + $0xa0] sm:$0xff] }
 0x8ea   :  { %5761 = vmatpush3.bf16.msk.msra.mxu1 %vm6266_vm11, %v8262_v11  ;;  %5472 = vmatprep.mubr.msk.f32.mxu1 %vm6139_vm0, %v8257_v44 }
 0x8eb   :  { %5470 = vmatprep.subr.mxu1 %v8257_v44 }
 0x8ee   :  { %5471 = vmatpush3.msk.msra.mxu1 %vm358_vm4, %v6292_v53 }
 0x8ef   :  { %5763 = vmatprep.subr.bf16.mxu1 %v5715_v49 }
 0x8f7   :  { %v2112_v6 = vpop.xlane.xlu1 %2111 }
 0x8f8   :  { %v2113_v18 = vsub.f32 %v6882_v30, %v2112_v6  ;;  %v2438_v6 = vld [vmem:[%s8198_s5 + $0xa8] sm:$0xff] }
 0x8fa   :  { %v2114_v0 = vmul.f32 1.442695, %v2113_v18  ;;  %v6960_v18 = vpack.c.bf16 %v2438_v6, %v2437_v25 }
 0x8fc   :  { %6002 = vpow2.f32 %v2114_v0  ;;  %v2421_v0 = vld [vmem:[%s8198_s5 + $0x20] sm:$0xff] }
 0x906   :  { %v6906_v15 = vpop.eup %6002 }
 0x907   :  { %2117 = vrot.lane.b32.xlu0 %v6906_v15, %s6143_s21 }
 0x90b   :  { %1683 = vbcast.lane.b32.xlu0 %v1677_v45, 264 }
 0x90f   :  { %1694 = vbcast.lane.b32.xlu0 %v1692_v28, 256 }
 0x913   :  { %1687 = vbcast.lane.b32.xlu0 %v1677_v45, 272 }
 0x96d   :  { %v1791_v63 = vpop.xlane.xlu0 %1790 }
 0x96e   :  { %6004 = vrcp.f32 %v1791_v63  ;;  %v2439_v63 = vld [vmem:[%s8198_s5 + $0xb0] sm:$0xff] }
 0x978   :  { %v6005_v19 = vpop.eup %6004 }
 0x979   :  { %v2118_v48 = vpop.permute.xlu0 %2117  ;;  %v6912_v55 = vmul.f32 %v6005_v19, %v1788_v41  ;;  %v2419_v41 = vld [vmem:[%s8198_s5 + $0x10] sm:$0xff]  ;;  %v2440_v19 = vld [vmem:[%s8198_s5 + $0xb8] sm:$0xff] }
 0x97a   :  { %v2120_v33 = vsel %vm320_vm7, %v2118_v48, 0.0  ;;  %v6950_v40 = vpack.c.bf16 %v2420_v57, %v2419_v41  ;;  %v6978_v48 = vpack.c.bf16 %v2440_v19, %v2439_v63  ;;  %v7026_v41 = vpack.c.bf16 %v2432_v31, %v2431_v38 }
 0x97b   :  { %5442 = vmatmul.mubr.msk.f32.vlgmr.msra.gmra.mrb[14].mxu0 %vm367_vm13, %v6912_v55  ;;  %2121 = vadd.xlane.f32.xlu1 %v2120_v33  ;;  %v2143_v39 = vrot.slane %v6912_v55, %v6570_v2  ;;  %v2158_v35 = vrot.slane %v6912_v55, %v6577_v27  ;;  %v2423_v33 = vld [vmem:[%s8198_s5 + $0x30] sm:$0xff] }
 0x97c   :  { %5718 = vmatpush3.bf16.msra.mxu0 %v6933_v9  ;;  %8273 = vst [vmem:[#allocation24_spill] sm:$0xff] %v7026_v41 }
 0x97d   :  { %2145 = vbcast.lane.b32.xlu0 %v2143_v39, 256  ;;  %5720 = vmatprep.subr.bf16.mxu0 %v6942_v12  ;;  %v1684_v6 = vpop.permute.xlu0 %1683 }
 0x980   :  { %5722 = vmatpush3.bf16.msra.mxu0 %v6950_v40 }
 0x981   :  { %2160 = vbcast.lane.b32.xlu0 %v2158_v35, 256  ;;  %5724 = vmatprep.subr.bf16.mxu0 %v6960_v18 }
 0x985   :  { %2153 = vbcast.lane.b32.xlu0 %v2143_v39, 272 }
 0x98c   :  { %1679 = vbcast.lane.b32.xlu1 %v1677_v45, 256  ;;  %v2422_v45 = vld [vmem:[%s8198_s5 + $0x28] sm:$0xff] }
 0x990   :  { %1698 = vbcast.lane.b32.xlu1 %v1692_v28, 264 }
 0x994   :  { %1702 = vbcast.lane.b32.xlu1 %v1692_v28, 272  ;;  %v6968_v28 = vpack.c.bf16 %v2422_v45, %v2421_v0  ;;  %v1695_v0 = vpop.permute.xlu0 %1694 }
 0x996   :  { %5726 = vmatpush3.bf16.msra.mxu0 %v6968_v28 }
 0x997   :  { %5728 = vmatprep.subr.bf16.mxu0 %v6978_v48 }
 0x998   :  { %2149 = vbcast.lane.b32.xlu1 %v2143_v39, 264  ;;  %v2424_v39 = vld [vmem:[%s8198_s5 + $0x38] sm:$0xff]  ;;  %v1688_v45 = vpop.permute.xlu0 %1687 }
 0x999   :  { %v6986_v59 = vpack.c.bf16 %v2424_v39, %v2423_v33  ;;  %v4887_v33 = vld.sshfl [vmem:[%s8193_s0 + $0x8] sm:$0x33 pattern:$0x75316420] }
 0x99a   :  { %v1712_v39 = vcombine.high %v4887_v33, %v4887_v33 }
 0x99b   :  { %8269 = vst [vmem:[#allocation20_spill] sm:$0xff] %v6986_v59  ;;  %5730 = vmatpush3.bf16.msra.mxu0 %v6986_v59 }
 0x99c   :  { %2164 = vbcast.lane.b32.xlu1 %v2158_v35, 264  ;;  %5732 = vmatprep.subr.bf16.mxu0 %v6739_v37  ;;  %v2429_v37 = vld [vmem:[%s8198_s5 + $0x60] sm:$0xff]  ;;  %v1724_v38 = vrot.slane %v1712_v39, %v6570_v2  ;;  %v1728_v31 = vrot.slane %v1712_v39, %v6577_v27 }
 0x99f   :  { %5734 = vmatpush3.bf16.msra.mxu0 %v6747_v50  ;;  %v2430_v50 = vld [vmem:[%s8198_s5 + $0x68] sm:$0xff] }
 0x9a0   :  { %2168 = vbcast.lane.b32.xlu1 %v2158_v35, 272  ;;  %5736 = vmatprep.subr.bf16.mxu0 %v6757_v3  ;;  %v2446_v35 = vld [vmem:[%s8198_s5 + $0xe8] sm:$0xff]  ;;  %v2447_v3 = vld [vmem:[%s8198_s5 + $0xf0] sm:$0xff] }
 0x9a1   :  { %v7000_v49 = vpack.c.bf16 %v2446_v35, %v2445_v23  ;;  %v7023_v62 = vpack.c.bf16 %v2448_v32, %v2447_v3  ;;  %v1716_v35 = vrot.slane %v4887_v33, %v6570_v2 }
 0x9a3   :  { %5738 = vmatpush3.bf16.msra.mxu0 %v6765_v61  ;;  %8270 = vst [vmem:[#allocation21_spill] sm:$0xff] %v7000_v49  ;;  %v7011_v61 = vpack.c.bf16 %v2430_v50, %v2429_v37  ;;  %8272 = vst [vmem:[#allocation23_spill] sm:$0xff] %v7023_v62  ;;  %v1720_v37 = vrot.slane %v4887_v33, %v6577_v27  ;;  %v1733_v3 = vsub.f32 %v1716_v35, %v6794_v36 }
 0x9a4   :  { %5740 = vmatprep.subr.bf16.mxu0 %v7000_v49  ;;  %v1735_v17 = vsub.f32 %v1716_v35, %v6809_v1 }
 0x9a5   :  { %8271 = vst [vmem:[#allocation22_spill] sm:$0xff] %v7011_v61  ;;  %v1734_v32 = vsub.f32 %v1720_v37, %v6797_v26  ;;  %v1736_v10 = vsub.f32 %v1720_v37, %v6812_v52 }
 0x9a6   :  { %v1747_v14 = vmul.f32 %v1735_v17, %v1684_v6 }
 0x9a7   :  { %5742 = vmatpush3.bf16.msra.mxu0 %v7011_v61  ;;  %v1748_v13 = vmul.f32 %v1736_v10, %v1684_v6  ;;  %v1740_v61 = vsub.f32 %v1728_v31, %v6838_v22  ;;  %v1742_v10 = vsub.f32 %v1728_v31, %v6829_v16 }
 0x9a8   :  { %5744 = vmatprep.subr.bf16.mxu0 %v7023_v62 }
 0x9ab   :  { %5746 = vmatpush3.bf16.msra.mxu0 %v7026_v41  ;;  %v1739_v41 = vsub.f32 %v1724_v38, %v6835_v21 }
 0x9ac   :  { %5794 = vmatprep.subr.bf16.mxu0 %v8258_v54 }
 0x9bc   :  { %v7031_v57 = vpop.f32.mrb[16].mxu1 }
 0x9bd   :  { %8274 = vst [vmem:[#allocation25_spill] sm:$0xff] %v7031_v57  ;;  %v5465_v25 = vpop.f32.mrb[17].mxu1 }
 0x9be   :  { %v1737_v25 = vsub.f32 %v1716_v35, %v6802_v43 }
 0x9c0   :  { %v1749_v60 = vmul.f32 %v1737_v25, %v1688_v45 }
 0x9ef   :  { %v2146_v19 = vpop.permute.xlu0 %2145 }
 0x9f3   :  { %v7038_v50 = vpop.permute.xlu0 %2160 }
 0x9f7   :  { %v2154_v49 = vpop.permute.xlu0 %2153 }
 0xa08   :  { %v2122_v63 = vpop.xlane.xlu1 %2121 }
 0xa09   :  { %6006 = vrcp.f32 %v2122_v63  ;;  %v1738_v63 = vsub.f32 %v1720_v37, %v6805_v8 }
 0xa0b   :  { %v1750_v5 = vmul.f32 %v1738_v63, %v1688_v45  ;;  %v7059_v45 = vadd.f32 %v1749_v60, %v6802_v43 }
 0xa0c   :  { %v1680_v23 = vpop.permute.xlu1 %1679 }
 0xa0d   :  { %v1745_v33 = vmul.f32 %v1733_v3, %v1680_v23  ;;  %v1746_v58 = vmul.f32 %v1734_v32, %v1680_v23  ;;  %v1741_v23 = vsub.f32 %v1724_v38, %v6826_v42  ;;  %v7062_v17 = vadd.f32 %v1750_v5, %v6805_v8 }
 0xa0e   :  { %v2174_v60 = vmul.f32 %v2154_v49, %v7059_v45 }
 0xa0f   :  { %v7052_v59 = vadd.f32 %v1745_v33, %v6794_v36  ;;  %v7055_v35 = vadd.f32 %v1746_v58, %v6797_v26  ;;  %v7069_v36 = vadd.f32 %v1748_v13, %v6812_v52  ;;  %v1743_v26 = vsub.f32 %v1724_v38, %v6843_v47 }
 0xa10   :  { %v1699_v30 = vpop.permute.xlu1 %1698  ;;  %v1744_v58 = vsub.f32 %v1728_v31, %v6846_v24  ;;  %v2175_v43 = vmul.f32 %v2154_v49, %v7062_v17  ;;  %v1752_v52 = vmul.f32 %v1740_v61, %v1695_v0 }
 0xa11   :  { %v1753_v5 = vmul.f32 %v1741_v23, %v1699_v30  ;;  %v1754_v8 = vmul.f32 %v1742_v10, %v1699_v30  ;;  %v2170_v6 = vmul.f32 %v2146_v19, %v7052_v59  ;;  %v2171_v37 = vmul.f32 %v2146_v19, %v7055_v35 }
 0xa12   :  { %v2183_v30 = vsel %vm358_vm4, %v2174_v60, 0.0  ;;  %v2192_v49 = vsel %vm358_vm4, %v2175_v43, 0.0 }
 0xa13   :  { %v6007_v29 = vpop.eup %6006  ;;  %v7083_v25 = vadd.f32 %v1753_v5, %v6826_v42  ;;  %v7086_v19 = vadd.f32 %v1754_v8, %v6829_v16 }
 0xa14   :  { %v1703_v62 = vpop.permute.xlu1 %1702  ;;  %v2124_v39 = vmul.f32 %v6007_v29, %v6906_v15  ;;  %v7066_v29 = vadd.f32 %v1747_v14, %v6809_v1  ;;  %v1751_v1 = vmul.f32 %v1739_v41, %v1695_v0 }
 0xa15   :  { %v1755_v3 = vmul.f32 %v1743_v26, %v1703_v62  ;;  %v1756_v32 = vmul.f32 %v1744_v58, %v1703_v62  ;;  %v7092_v62 = vadd.f32 %v1752_v52, %v6838_v22  ;;  %v8275_v26 = vmov 17  }
 0xa16   :  { %2393 = vperm.xlu0 %5961, %v2124_v39   ;;  %2293 = vperm.xlu1 %5964, %v2124_v39   ;;  %v7089_v0 = vadd.f32 %v1751_v1, %v6835_v21 }
 0xa17   :  { %v7097_v23 = vadd.f32 %v1755_v3, %v6843_v47  ;;  %v7100_v42 = vadd.f32 %v1756_v32, %v6846_v24  ;;  %v2177_v22 = vmul.f32 %v7038_v50, %v7092_v62 }
 0xa18   :  { %v2150_v15 = vpop.permute.xlu1 %2149  ;;  %v2176_v21 = vmul.f32 %v7038_v50, %v7089_v0 }
 0xa19   :  { %v2172_v14 = vmul.f32 %v2150_v15, %v7066_v29  ;;  %v2173_v13 = vmul.f32 %v2150_v15, %v7069_v36 }
 0xa1a   :  { %5965 = vset.pattern.permute.xlu0 %v8264_v20 }
 0xa1b   :  { %v2182_v38 = vadd.f32 %v2172_v14, %v2170_v6  ;;  %v2191_v31 = vadd.f32 %v2173_v13, %v2171_v37  ;;  %2403 = vperm.xlu0 %5965, %v2124_v39  }
 0xa1c   :  { %v2165_v63 = vpop.permute.xlu1 %2164 }
 0xa1d   :  { %v2184_v41 = vadd.f32 %v2183_v30, %v2182_v38  ;;  %v2193_v61 = vadd.f32 %v2192_v49, %v2191_v31  ;;  %v2178_v33 = vmul.f32 %v2165_v63, %v7083_v25  ;;  %v2179_v39 = vmul.f32 %v2165_v63, %v7086_v19 }
 0xa1f   :  { %v2185_v16 = vrot.slane %v2184_v41, 4  ;;  %v2194_v10 = vrot.slane %v2193_v61, 4  ;;  %5966 = vset.pattern.permute.xlu0 %v8275_v26  ;;  %v2200_v8 = vadd.f32 %v2178_v33, %v2176_v21  ;;  %v2209_v24 = vadd.f32 %v2179_v39, %v2177_v22 }
 0xa20   :  { %v2169_v58 = vpop.permute.xlu1 %2168 }
 0xa21   :  { %v2186_v60 = vadd.f32 %v2185_v16, %v2184_v41  ;;  %v2195_v43 = vadd.f32 %v2194_v10, %v2193_v61  ;;  %v2180_v5 = vmul.f32 %v2169_v58, %v7097_v23  ;;  %v2181_v47 = vmul.f32 %v2169_v58, %v7100_v42 }
 0xa23   :  { %v2187_v15 = vrot.slane %v2186_v60, 2  ;;  %v2201_v6 = vsel %vm358_vm4, %v2180_v5, 0.0  ;;  %v2210_v37 = vsel %vm358_vm4, %v2181_v47, 0.0  ;;  %v2196_v14 = vrot.slane %v2195_v43, 2 }
 0xa24   :  { %v2202_v13 = vadd.f32 %v2201_v6, %v2200_v8  ;;  %v2211_v1 = vadd.f32 %v2210_v37, %v2209_v24 }
 0xa25   :  { %v2197_v52 = vadd.f32 %v2196_v14, %v2195_v43  ;;  %v2188_v3 = vadd.f32 %v2187_v15, %v2186_v60 }
 0xa26   :  { %v2203_v50 = vrot.slane %v2202_v13, 4  ;;  %v2212_v32 = vrot.slane %v2211_v1, 4 }
 0xa27   :  { %v2198_v30 = vrot.slane %v2197_v52, 1  ;;  %v2189_v49 = vrot.slane %v2188_v3, 1 }
 0xa28   :  { %v2204_v38 = vadd.f32 %v2203_v50, %v2202_v13  ;;  %v2213_v31 = vadd.f32 %v2212_v32, %v2211_v1 }
 0xa29   :  { %v2199_v39 = vadd.f32 %v2198_v30, %v2197_v52  ;;  %v2190_v16 = vadd.f32 %v2189_v49, %v2188_v3 }
 0xa2a   :  { %v2205_v63 = vrot.slane %v2204_v38, 2  ;;  %v2214_v41 = vrot.slane %v2213_v31, 2 }
 0xa2b   :  { %v2528_v5 = vmul.f32 %v2199_v39, %v2199_v39  ;;  %v2527_v47 = vmul.f32 %v2190_v16, %v2190_v16 }
 0xa2c   :  { %v2215_v61 = vadd.f32 %v2214_v41, %v2213_v31  ;;  %v2206_v33 = vadd.f32 %v2205_v63, %v2204_v38 }
 0xa2e   :  { %v2216_v10 = vrot.slane %v2215_v61, 1  ;;  %v2207_v21 = vrot.slane %v2206_v33, 1 }
 0xa30   :  { %v2217_v22 = vadd.f32 %v2216_v10, %v2215_v61  ;;  %v2208_v58 = vadd.f32 %v2207_v21, %v2206_v33 }
 0xa32   :  { %v2454_v60 = vsel %vm596_vm9, %v2217_v22, %v2199_v39  ;;  %v2530_v43 = vmul.f32 %v2217_v22, %v2217_v22  ;;  %v2453_v8 = vsel %vm596_vm9, %v2208_v58, %v2190_v16  ;;  %v2529_v24 = vmul.f32 %v2208_v58, %v2208_v58  ;;  %v4909_v16 = vld [vmem:[%s8194_s1 + $0xa] sm:$0x3] }
 0xa33   :  { %2521 = vmatprep.mubr.f32.mxu0 %v2454_v60 }
 0xa34   :  { %2522 = vmatmul.mubr.f32.vlgmr.msra.gmra.mrb[16].mxu0 %v2453_v8  ;;  %v2535_v15 = vsel %vm596_vm9, %v2529_v24, %v2527_v47  ;;  %v2536_v6 = vsel %vm596_vm9, %v2530_v43, %v2528_v5 }
 0xa35   :  { %5796 = vmatpush3.bf16.msra.mxu0 %v6204_v4  ;;  %5483 = vmatprep.mubr.msk.f32.mxu0 %vm6139_vm0, %v8257_v44  ;;  %v2539_v37 = vsel %vm671_vm10, %v2535_v15, 0.0  ;;  %v2540_v14 = vsel %vm671_vm10, %v2536_v6, 0.0 }
 0xa36   :  { %5797 = vmatprep.subr.bf16.mxu0 %v8258_v54  ;;  %v7121_v13 = vadd.f32 %v2540_v14, %v2539_v37 }
 0xa38   :  { %8276 = vst [vmem:[#allocation26_spill] sm:$0xff] %v7121_v13 }
 0xa39   :  { %5799 = vmatpush3.bf16.msra.mxu0 %v6215_v7 }
 0xa3a   :  { %5800 = vmatprep.subr.bf16.mxu0 %v8258_v54 }
 0xa3c   :  { %5484 = vmatmul.mubr.msk.f32.vlgmr.msra.gmra.mrb[18].mxu0 %vm141_vm1, %v6893_v34  ;;  %v4900_v34 = vld [vmem:[%s8195_s2 + $0x8] sm:$0x3] }
 0xa3d   :  { %5802 = vmatpush3.bf16.msra.mxu0 %v6286_v51  ;;  %5494 = vmatprep.mubr.msk.f32.mxu0 %vm6139_vm0, %v8257_v44 }
 0xa3e   :  { %5803 = vmatprep.subr.bf16.mxu0 %v8258_v54 }
 0xa41   :  { %5805 = vmatpush3.bf16.msra.mxu0 %v6307_v56 }
 0xa42   :  { %5806 = vmatprep.subr.bf16.mxu0 %v8258_v54 }
 0xa4e   :  { %v2287_v1 = vpop.f32.mrb[14].mxu0 }
 0xa4f   :  { %v5443_v52 = vpop.f32.mrb[15].mxu0 }
 0xa95   :  { %v2394_v3 = vpop.permute.xlu0 %2393  ;;  %v2294_v32 = vpop.permute.xlu1 %2293 }
 0xa96   :  { %v2396_v50 = vmul.f32 %v2394_v3, %v2287_v1  ;;  %v2296_v49 = vmul.f32 %v2294_v32, %v2287_v1 }
 0xa98   :  { %2398 = vrot.lane.b32.xlu1 %v2396_v50, %s6147_s15 }
 0xa9a   :  { %v2404_v31 = vpop.permute.xlu0 %2403 }
 0xa9b   :  { %v2406_v61 = vmul.f32 %v2404_v31, %v6912_v55  ;;  %v2315_v31 = vrot.slane %v2296_v49, %v6577_v27 }
 0xa9c   :  { %2729 = vrot.lane.b32.xlu1 %v4900_v34, %s6142_s16 }
 0xb07   :  { %v5125_v38 = vpop.f32.mrb[16].mxu0 }
 0xb08   :  { %v5126_v30 = vpop.f32.mrb[17].mxu0 }
 0xb09   :  { %v7138_v63 = vadd.f32 %v5126_v30, %v5125_v38  ;;  %v2300_v38 = vrot.slane %v2296_v49, %v6570_v2 }
 0xb0a   :  { %v2399_v41 = vpop.permute.xlu1 %2398 }
 0xb0b   :  { %8277 = vst [vmem:[#allocation27_spill] sm:$0xff] %v7138_v63  ;;  %v2401_v33 = vadd.f32 %v2399_v41, %v2296_v49  ;;  %v8279_v41 = vld [vmem:[#allocation20_spill] sm:$0xff] }
 0xb0d   :  { %v2407_v39 = vadd.f32 %v2406_v61, %v2401_v33  ;;  %v3048_v33 = vld [vmem:[%s8198_s5 + $0x40] sm:$0xff] }
 0xb0e   :  { %v2730_v10 = vpop.permute.xlu1 %2729 }
 0xb0f   :  { %v2408_v21 = vmax.f32 %v2407_v39, 0.0  ;;  %v7145_v22 = vadd.f32 %v2730_v10, %v7031_v57  ;;  %v3259_v58 = vpop.f32.mrb[18].mxu0  ;;  %v3049_v39 = vld [vmem:[%s8198_s5 + $0x48] sm:$0xff]  ;;  %v3066_v10 = vld [vmem:[%s8198_s5 + $0xd0] sm:$0xff] }
 0xb10   :  { %v3263_v5 = vadd.f32 %v4909_v16, %v3259_v58  ;;  %v5485_v47 = vpop.f32.mrb[19].mxu0  ;;  %v7201_v16 = vpack.c.bf16 %v3049_v39, %v3048_v33 }
 0xb11   :  { %8278 = vst [vmem:[#allocation28_spill] sm:$0xff] %v7145_v22  ;;  %v2733_v60 = vsel %vm309_vm6, %v7145_v22, -inf  ;;  %v2409_v43 = vmul.f32 %v2408_v21, %v2408_v21  ;;  %v3051_v47 = vld [vmem:[%s8198_s5 + $0x58] sm:$0xff] }
 0xb12   :  { %6008 = vtanh.f32 %v3263_v5  ;;  %2734 = vmax.xlane.f32.xlu1 %v2733_v60  ;;  %v3050_v5 = vld [vmem:[%s8198_s5 + $0x50] sm:$0xff] }
 0xb13   :  { %v2410_v55 = vmul.f32 %v2409_v43, %v2409_v43  ;;  %v7219_v60 = vpack.c.bf16 %v3051_v47, %v3050_v5  ;;  %v8280_v43 = vld [vmem:[#allocation21_spill] sm:$0xff] }
 0xb15   :  { %v2411_v8 = vmul.f32 %v2410_v55, %v2408_v21  ;;  %v3067_v21 = vld [vmem:[%s8198_s5 + $0xd8] sm:$0xff]  ;;  %v8281_v55 = vld [vmem:[#allocation22_spill] sm:$0xff] }
 0xb16   :  { %v7211_v58 = vpack.c.bf16 %v3067_v21, %v3066_v10 }
 0xb17   :  { %v2412_v24 = vsel %vm557_vm8, %v2411_v8, 0.0 }
 0xb18   :  { %2413 = vadd.xlane.f32.xlu0 %v2412_v24  ;;  %v8283_v24 = vld [vmem:[#allocation24_spill] sm:$0xff] }
 0xb1c   :  { %v7150_v15 = vpop.eup %6008 }
 0xb1d   :  { %v3265_v6 = vmax.f32 %v7150_v15, 0.0 }
 0xb1f   :  { %v3266_v37 = vsub.f32 1.0, %v3265_v6 }
 0xb21   :  { %5495 = vmatmul.mubr.msk.f32.vlgmr.msra.gmra.mrb[20].mxu0 %vm141_vm1, %v3266_v37 }
 0xb22   :  { %5808 = vmatpush3.bf16.msk.msra.mxu0 %vm6266_vm11, %v8262_v11  ;;  %5503 = vmatprep.mubr.msk.f32.mxu0 %vm6139_vm0, %v8257_v44 }
 0xb23   :  { %5501 = vmatprep.subr.mxu0 %v8257_v44 }
 0xb26   :  { %5502 = vmatpush3.msk.msra.mxu0 %vm358_vm4, %v6292_v53 }
 0xb9f   :  { %v2735_v14 = vpop.xlane.xlu1 %2734 }
 0xba0   :  { %v2736_v1 = vsub.f32 %v7145_v22, %v2735_v14 }
 0xba2   :  { %v2737_v52 = vmul.f32 1.442695, %v2736_v1 }
 0xba4   :  { %6010 = vpow2.f32 %v2737_v52 }
 0xba5   :  { %v2414_v3 = vpop.xlane.xlu0 %2413 }
 0xba6   :  { %6012 = vrcp.f32 %v2414_v3 }
 0xbae   :  { %v7163_v50 = vpop.eup %6010 }
 0xbaf   :  { %2740 = vrot.lane.b32.xlu0 %v7163_v50, %s6143_s21 }
 0xbb0   :  { %v6013_v34 = vpop.eup %6012 }
 0xbb1   :  { %v7167_v32 = vmul.f32 %v6013_v34, %v2411_v8  ;;  %v8282_v8 = vld [vmem:[#allocation23_spill] sm:$0xff] }
 0xbb3   :  { %5473 = vmatmul.mubr.msk.f32.vlgmr.msra.gmra.mrb[18].mxu1 %vm367_vm13, %v7167_v32  ;;  %2306 = vbcast.lane.b32.xlu0 %v2300_v38, 264  ;;  %v2766_v30 = vrot.slane %v7167_v32, %v6570_v2 }
 0xbb4   :  { %5765 = vmatpush3.bf16.msra.mxu1 %v6933_v9  ;;  %v2781_v9 = vrot.slane %v7167_v32, %v6577_v27 }
 0xbb5   :  { %5767 = vmatprep.subr.bf16.mxu1 %v6942_v12 }
 0xbb7   :  { %2317 = vbcast.lane.b32.xlu0 %v2315_v31, 256 }
 0xbb8   :  { %5769 = vmatpush3.bf16.msra.mxu1 %v6950_v40 }
 0xbb9   :  { %5771 = vmatprep.subr.bf16.mxu1 %v6960_v18 }
 0xbbb   :  { %2310 = vbcast.lane.b32.xlu0 %v2300_v38, 272 }
 0xbbc   :  { %5773 = vmatpush3.bf16.msra.mxu1 %v6968_v28  ;;  %v3064_v28 = vld [vmem:[%s8198_s5 + $0xc0] sm:$0xff] }
 0xbbd   :  { %5775 = vmatprep.subr.bf16.mxu1 %v6978_v48  ;;  %v3065_v48 = vld [vmem:[%s8198_s5 + $0xc8] sm:$0xff] }
 0xbbe   :  { %v7193_v61 = vpack.c.bf16 %v3065_v48, %v3064_v28 }
 0xbbf   :  { %2768 = vbcast.lane.b32.xlu0 %v2766_v30, 256 }
 0xbc0   :  { %5777 = vmatpush3.bf16.msra.mxu1 %v8279_v41 }
 0xbc1   :  { %5779 = vmatprep.subr.bf16.mxu1 %v7193_v61 }
 0xbc3   :  { %2783 = vbcast.lane.b32.xlu0 %v2781_v9, 256 }
 0xbc4   :  { %5781 = vmatpush3.bf16.msra.mxu1 %v7201_v16 }
 0xbc5   :  { %5783 = vmatprep.subr.bf16.mxu1 %v7211_v58 }
 0xbc7   :  { %2776 = vbcast.lane.b32.xlu0 %v2766_v30, 272 }
 0xbc8   :  { %5785 = vmatpush3.bf16.msra.mxu1 %v7219_v60 }
 0xbc9   :  { %5787 = vmatprep.subr.bf16.mxu1 %v8280_v43 }
 0xbcc   :  { %5789 = vmatpush3.bf16.msra.mxu1 %v8281_v55 }
 0xbcd   :  { %5791 = vmatprep.subr.bf16.mxu1 %v8282_v8 }
 0xbd0   :  { %5793 = vmatpush3.bf16.msra.mxu1 %v8283_v24 }
 0xbd1   :  { %5841 = vmatprep.subr.bf16.mxu1 %v8258_v54 }
 0xbf4   :  { %v7184_v12 = vpop.f32.mrb[20].mxu0 }
 0xbf5   :  { %v5496_v40 = vpop.f32.mrb[21].mxu0 }
 0xc21   :  { %v2741_v18 = vpop.permute.xlu0 %2740 }
 0xc22   :  { %v2743_v49 = vsel %vm320_vm7, %v2741_v18, 0.0 }
 0xc23   :  { %2744 = vadd.xlane.f32.xlu1 %v2743_v49 }
 0xc25   :  { %v2307_v14 = vpop.permute.xlu0 %2306 }
 0xc29   :  { %v2318_v1 = vpop.permute.xlu0 %2317 }
 0xc2d   :  { %v2311_v52 = vpop.permute.xlu0 %2310 }
 0xc31   :  { %v2769_v34 = vpop.permute.xlu0 %2768 }
 0xc34   :  { %2302 = vbcast.lane.b32.xlu1 %v2300_v38, 256  ;;  %v4897_v38 = vld.sshfl [vmem:[%s8193_s0 + $0xc] sm:$0x33 pattern:$0x75316420] }
 0xc35   :  { %v2339_v41 = vrot.slane %v4897_v38, %v6570_v2  ;;  %v7235_v40 = vpop.permute.xlu0 %2783 }
 0xc37   :  { %v2356_v18 = vsub.f32 %v2339_v41, %v7052_v59  ;;  %v2360_v33 = vsub.f32 %v2339_v41, %v7059_v45  ;;  %v2358_v21 = vsub.f32 %v2339_v41, %v7066_v29 }
 0xc38   :  { %2321 = vbcast.lane.b32.xlu1 %v2315_v31, 264 }
 0xc39   :  { %v2372_v55 = vmul.f32 %v2360_v33, %v2311_v52  ;;  %v2777_v57 = vpop.permute.xlu0 %2776 }
 0xc3c   :  { %2325 = vbcast.lane.b32.xlu1 %v2315_v31, 272  ;;  %v2335_v31 = vcombine.high %v4897_v38, %v4897_v38 }
 0xc3e   :  { %v2347_v28 = vrot.slane %v2335_v31, %v6570_v2  ;;  %v2351_v48 = vrot.slane %v2335_v31, %v6577_v27 }
 0xc40   :  { %2772 = vbcast.lane.b32.xlu1 %v2766_v30, 264  ;;  %v2363_v22 = vsub.f32 %v2351_v48, %v7092_v62 }
 0xc44   :  { %2787 = vbcast.lane.b32.xlu1 %v2781_v9, 264 }
 0xc48   :  { %2791 = vbcast.lane.b32.xlu1 %v2781_v9, 272  ;;  %v2343_v9 = vrot.slane %v4897_v38, %v6577_v27  ;;  %v2362_v38 = vsub.f32 %v2347_v28, %v7089_v0 }
 0xc4a   :  { %v2357_v49 = vsub.f32 %v2343_v9, %v7055_v35  ;;  %v2361_v39 = vsub.f32 %v2343_v9, %v7062_v17  ;;  %v2359_v5 = vsub.f32 %v2343_v9, %v7069_v36  ;;  %v2365_v9 = vsub.f32 %v2351_v48, %v7086_v19 }
 0xc4c   :  { %v2373_v8 = vmul.f32 %v2361_v39, %v2311_v52  ;;  %v7256_v52 = vadd.f32 %v2372_v55, %v7059_v45 }
 0xc4e   :  { %v2797_v45 = vmul.f32 %v2777_v57, %v7256_v52 }
 0xc86   :  { %v7228_v6 = vpop.f32.mrb[18].mxu1 }
 0xc87   :  { %v5474_v37 = vpop.f32.mrb[19].mxu1 }
 0xc88   :  { %v2370_v37 = vmul.f32 %v2358_v21, %v2307_v14 }
 0xcb0   :  { %v2745_v3 = vpop.xlane.xlu1 %2744 }
 0xcb1   :  { %6014 = vrcp.f32 %v2745_v3  ;;  %v2371_v3 = vmul.f32 %v2359_v5, %v2307_v14  ;;  %v7259_v14 = vadd.f32 %v2373_v8, %v7062_v17 }
 0xcb4   :  { %v2303_v30 = vpop.permute.xlu1 %2302 }
 0xcb5   :  { %v2368_v47 = vmul.f32 %v2356_v18, %v2303_v30  ;;  %v2369_v43 = vmul.f32 %v2357_v49, %v2303_v30  ;;  %v2364_v30 = vsub.f32 %v2347_v28, %v7083_v25  ;;  %v2367_v18 = vsub.f32 %v2351_v48, %v7100_v42 }
 0xcb6   :  { %v2798_v49 = vmul.f32 %v2777_v57, %v7259_v14  ;;  %v2806_v57 = vsel %vm358_vm4, %v2797_v45, 0.0 }
 0xcb7   :  { %v7249_v13 = vadd.f32 %v2368_v47, %v7052_v59  ;;  %v7252_v41 = vadd.f32 %v2369_v43, %v7055_v35  ;;  %v7266_v59 = vadd.f32 %v2371_v3, %v7069_v36  ;;  %v2366_v35 = vsub.f32 %v2347_v28, %v7097_v23 }
 0xcb8   :  { %v2322_v10 = vpop.permute.xlu1 %2321  ;;  %v2374_v47 = vmul.f32 %v2362_v38, %v2318_v1  ;;  %v2375_v43 = vmul.f32 %v2363_v22, %v2318_v1  ;;  %v4910_v22 = vld [vmem:[%s8195_s2 + $0xa] sm:$0x3] }
 0xcb9   :  { %v2376_v17 = vmul.f32 %v2364_v30, %v2322_v10  ;;  %v2377_v33 = vmul.f32 %v2365_v9, %v2322_v10  ;;  %v2793_v21 = vmul.f32 %v2769_v34, %v7249_v13  ;;  %v2794_v5 = vmul.f32 %v2769_v34, %v7252_v41 }
 0xcba   :  { %v2815_v10 = vsel %vm358_vm4, %v2798_v49, 0.0  ;;  %v7289_v3 = vadd.f32 %v2374_v47, %v7089_v0  ;;  %v7292_v38 = vadd.f32 %v2375_v43, %v7092_v62 }
 0xcbb   :  { %v6015_v24 = vpop.eup %6014  ;;  %v7283_v34 = vadd.f32 %v2377_v33, %v7086_v19 }
 0xcbc   :  { %v2326_v63 = vpop.permute.xlu1 %2325  ;;  %v2747_v31 = vmul.f32 %v6015_v24, %v7163_v50  ;;  %v7263_v50 = vadd.f32 %v2370_v37, %v7066_v29  ;;  %v7280_v24 = vadd.f32 %v2376_v17, %v7083_v25  ;;  %v2799_v0 = vmul.f32 %v7235_v40, %v7289_v3 }
 0xcbd   :  { %v2378_v28 = vmul.f32 %v2366_v35, %v2326_v63  ;;  %v2379_v48 = vmul.f32 %v2367_v18, %v2326_v63  ;;  %v2800_v62 = vmul.f32 %v7235_v40, %v7292_v38 }
 0xcbe   :  { %2916 = vperm.xlu1 %5964, %v2747_v31   ;;  %3016 = vperm.xlu0 %5966, %v2747_v31  }
 0xcbf   :  { %v7297_v19 = vadd.f32 %v2378_v28, %v7097_v23  ;;  %v7300_v30 = vadd.f32 %v2379_v48, %v7100_v42 }
 0xcc0   :  { %v2773_v39 = vpop.permute.xlu1 %2772 }
 0xcc1   :  { %v2795_v29 = vmul.f32 %v2773_v39, %v7263_v50  ;;  %v2796_v36 = vmul.f32 %v2773_v39, %v7266_v59 }
 0xcc2   :  { %5967 = vset.pattern.permute.xlu1 %v8264_v20 }
 0xcc3   :  { %v2805_v55 = vadd.f32 %v2795_v29, %v2793_v21  ;;  %v2814_v8 = vadd.f32 %v2796_v36, %v2794_v5  ;;  %3026 = vperm.xlu1 %5967, %v2747_v31  }
 0xcc4   :  { %v2788_v37 = vpop.permute.xlu1 %2787 }
 0xcc5   :  { %v2807_v1 = vadd.f32 %v2806_v57, %v2805_v55  ;;  %v2816_v63 = vadd.f32 %v2815_v10, %v2814_v8  ;;  %v2801_v31 = vmul.f32 %v2788_v37, %v7280_v24  ;;  %v2802_v25 = vmul.f32 %v2788_v37, %v7283_v34 }
 0xcc7   :  { %v2808_v9 = vrot.slane %v2807_v1, 4  ;;  %v2817_v35 = vrot.slane %v2816_v63, 4  ;;  %3352 = vrot.lane.b32.xlu1 %v4910_v22, %s6142_s16  ;;  %v2823_v33 = vadd.f32 %v2801_v31, %v2799_v0  ;;  %v2832_v42 = vadd.f32 %v2802_v25, %v2800_v62 }
 0xcc8   :  { %v2792_v18 = vpop.permute.xlu1 %2791 }
 0xcc9   :  { %v2809_v45 = vadd.f32 %v2808_v9, %v2807_v1  ;;  %v2818_v49 = vadd.f32 %v2817_v35, %v2816_v63  ;;  %v2803_v17 = vmul.f32 %v2792_v18, %v7297_v19  ;;  %v2804_v23 = vmul.f32 %v2792_v18, %v7300_v30 }
 0xccb   :  { %v2810_v39 = vrot.slane %v2809_v45, 2  ;;  %v2824_v21 = vsel %vm358_vm4, %v2803_v17, 0.0  ;;  %v2833_v5 = vsel %vm358_vm4, %v2804_v23, 0.0  ;;  %v2819_v29 = vrot.slane %v2818_v49, 2 }
 0xccc   :  { %v2825_v36 = vadd.f32 %v2824_v21, %v2823_v33  ;;  %v2834_v47 = vadd.f32 %v2833_v5, %v2832_v42 }
 0xccd   :  { %v2820_v43 = vadd.f32 %v2819_v29, %v2818_v49  ;;  %v2811_v28 = vadd.f32 %v2810_v39, %v2809_v45 }
 0xcce   :  { %v2826_v40 = vrot.slane %v2825_v36, 4  ;;  %v2835_v48 = vrot.slane %v2834_v47, 4 }
 0xccf   :  { %v2821_v57 = vrot.slane %v2820_v43, 1  ;;  %v2812_v10 = vrot.slane %v2811_v28, 1 }
 0xcd0   :  { %v2827_v55 = vadd.f32 %v2826_v40, %v2825_v36  ;;  %v2836_v8 = vadd.f32 %v2835_v48, %v2834_v47 }
 0xcd1   :  { %v2822_v31 = vadd.f32 %v2821_v57, %v2820_v43  ;;  %v2813_v25 = vadd.f32 %v2812_v10, %v2811_v28 }
 0xcd2   :  { %v2828_v37 = vrot.slane %v2827_v55, 2  ;;  %v2837_v22 = vrot.slane %v2836_v8, 2 }
 0xcd3   :  { %v3151_v18 = vmul.f32 %v2822_v31, %v2822_v31  ;;  %v3150_v17 = vmul.f32 %v2813_v25, %v2813_v25 }
 0xcd4   :  { %v2838_v1 = vadd.f32 %v2837_v22, %v2836_v8  ;;  %v2829_v63 = vadd.f32 %v2828_v37, %v2827_v55 }
 0xcd6   :  { %v2839_v9 = vrot.slane %v2838_v1, 1  ;;  %v2830_v35 = vrot.slane %v2829_v63, 1 }
 0xcd8   :  { %v2840_v0 = vadd.f32 %v2839_v9, %v2838_v1  ;;  %v2831_v62 = vadd.f32 %v2830_v35, %v2829_v63 }
 0xcda   :  { %v3077_v45 = vsel %vm596_vm9, %v2840_v0, %v2822_v31  ;;  %v3153_v49 = vmul.f32 %v2840_v0, %v2840_v0  ;;  %v3076_v23 = vsel %vm596_vm9, %v2831_v62, %v2813_v25  ;;  %v3152_v33 = vmul.f32 %v2831_v62, %v2831_v62  ;;  %v4919_v31 = vld [vmem:[%s8194_s1 + $0xc] sm:$0x3] }
 0xcdb   :  { %3144 = vmatprep.mubr.f32.mxu1 %v3077_v45 }
 0xcdc   :  { %3145 = vmatmul.mubr.f32.vlgmr.msra.gmra.mrb[20].mxu1 %v3076_v23  ;;  %v3158_v42 = vsel %vm596_vm9, %v3152_v33, %v3150_v17  ;;  %v3159_v39 = vsel %vm596_vm9, %v3153_v49, %v3151_v18 }
 0xcdd   :  { %5843 = vmatpush3.bf16.msra.mxu1 %v6204_v4  ;;  %5514 = vmatprep.mubr.msk.f32.mxu1 %vm6139_vm0, %v8257_v44  ;;  %v3162_v21 = vsel %vm671_vm10, %v3158_v42, 0.0  ;;  %v3163_v5 = vsel %vm671_vm10, %v3159_v39, 0.0 }
 0xcde   :  { %5844 = vmatprep.subr.bf16.mxu1 %v8258_v54  ;;  %v7321_v29 = vadd.f32 %v3163_v5, %v3162_v21 }
 0xce1   :  { %5846 = vmatpush3.bf16.msra.mxu1 %v6215_v7 }
 0xce2   :  { %5847 = vmatprep.subr.bf16.mxu1 %v8258_v54 }
 0xce4   :  { %5515 = vmatmul.mubr.msk.f32.vlgmr.msra.gmra.mrb[22].mxu1 %vm141_vm1, %v7150_v15 }
 0xce5   :  { %5849 = vmatpush3.bf16.msra.mxu1 %v6286_v51  ;;  %5525 = vmatprep.mubr.msk.f32.mxu1 %vm6139_vm0, %v8257_v44 }
 0xce6   :  { %5850 = vmatprep.subr.bf16.mxu1 %v8258_v54 }
 0xce9   :  { %5852 = vmatpush3.bf16.msra.mxu1 %v6307_v56 }
 0xcea   :  { %5853 = vmatprep.subr.bf16.mxu1 %v8258_v54 }
 0xd3d   :  { %v2917_v36 = vpop.permute.xlu1 %2916  ;;  %v3017_v47 = vpop.permute.xlu0 %3016 }
 0xd3e   :  { %v3019_v43 = vmul.f32 %v3017_v47, %v7228_v6  ;;  %v7341_v57 = vmul.f32 %v2917_v36, %v7228_v6 }
 0xd40   :  { %3021 = vrot.lane.b32.xlu0 %v3019_v43, %s6147_s15 }
 0xd42   :  { %v3027_v28 = vpop.permute.xlu1 %3026 }
 0xd43   :  { %v3029_v22 = vmul.f32 %v3027_v28, %v7167_v32 }
 0xd46   :  { %v3353_v40 = vpop.permute.xlu1 %3352 }
 0xd47   :  { %v7336_v15 = vadd.f32 %v3353_v40, %v7184_v12 }
 0xd49   :  { %v3356_v48 = vsel %vm309_vm6, %v7336_v15, -inf }
 0xd4a   :  { %3357 = vmax.xlane.f32.xlu1 %v3356_v48 }
 0xdaf   :  { %v5174_v55 = vpop.f32.mrb[20].mxu1 }
 0xdb0   :  { %v5175_v8 = vpop.f32.mrb[21].mxu1 }
 0xdb1   :  { %v7343_v10 = vadd.f32 %v5175_v8, %v5174_v55 }
 0xdb2   :  { %v3022_v37 = vpop.permute.xlu0 %3021 }
 0xdb3   :  { %8284 = vst [vmem:[#allocation20_spill] sm:$0xff] %v7343_v10  ;;  %v3024_v1 = vadd.f32 %v3022_v37, %v7341_v57 }
 0xdb5   :  { %v3030_v63 = vadd.f32 %v3029_v22, %v3024_v1  ;;  %v8287_v1 = vld [vmem:[#allocation7_spill] sm:$0xff] }
 0xdb7   :  { %v3031_v25 = vmax.f32 %v3030_v63, 0.0  ;;  %v3882_v9 = vpop.f32.mrb[22].mxu1  ;;  %v327_v63 = vsel %vm326_vm12, %v8287_v1, -inf }
 0xdb8   :  { %v3886_v35 = vadd.f32 %v4919_v31, %v3882_v9  ;;  %v5516_v0 = vpop.f32.mrb[23].mxu1 }
 0xdb9   :  { %v3032_v62 = vmul.f32 %v3031_v25, %v3031_v25 }
 0xdba   :  { %6016 = vtanh.f32 %v3886_v35 }
 0xdbb   :  { %v3033_v6 = vmul.f32 %v3032_v62, %v3032_v62 }
 0xdbd   :  { %v3034_v18 = vmul.f32 %v3033_v6, %v3031_v25 }
 0xdbf   :  { %v3035_v17 = vsel %vm557_vm8, %v3034_v18, 0.0 }
 0xdc0   :  { %3036 = vadd.xlane.f32.xlu0 %v3035_v17 }
 0xdc4   :  { %v7351_v45 = vpop.eup %6016 }
 0xdc5   :  { %v3888_v32 = vmax.f32 %v7351_v45, 0.0 }
 0xdc7   :  { %v3889_v49 = vsub.f32 1.0, %v3888_v32 }
 0xdc9   :  { %5526 = vmatmul.mubr.msk.f32.vlgmr.msra.gmra.mrb[24].mxu1 %vm141_vm1, %v3889_v49 }
 0xdca   :  { %5855 = vmatpush3.bf16.msk.msra.mxu1 %vm6266_vm11, %v8262_v11  ;;  %5534 = vmatprep.mubr.msk.f32.mxu1 %vm6139_vm0, %v8257_v44  ;;  %vm292_vm11 = vcmask 123904  }
 0xdcb   :  { %5532 = vmatprep.subr.mxu1 %v8257_v44 }
 0xdce   :  { %5533 = vmatpush3.msk.msra.mxu1 %vm358_vm4, %v6292_v53  ;;  %v8285_v53 = vld [vmem:[#allocation6_spill] sm:$0xff] }
 0xdcf   :  { %v293_v47 = vsel %vm292_vm11, %v8285_v53, -inf }
 0xdd7   :  { %v3358_v23 = vpop.xlane.xlu1 %3357 }
 0xdd8   :  { %v3359_v33 = vsub.f32 %v7336_v15, %v3358_v23  ;;  %v8289_v23 = vld [vmem:[#allocation8_spill] sm:$0xff] }
 0xdda   :  { %v3360_v42 = vmul.f32 1.442695, %v3359_v33  ;;  %v848_v33 = vsel %vm292_vm11, %v8289_v23, -inf }
 0xddc   :  { %6018 = vpow2.f32 %v3360_v42  ;;  %v8290_v42 = vld [vmem:[#allocation10_spill] sm:$0xff] }
 0xde6   :  { %v6019_v39 = vpop.eup %6018 }
 0xde7   :  { %3363 = vrot.lane.b32.xlu0 %v6019_v39, %s6143_s21 }
 0xe4d   :  { %v3037_v21 = vpop.xlane.xlu0 %3036 }
 0xe4e   :  { %6020 = vrcp.f32 %v3037_v21  ;;  %v879_v21 = vsel %vm326_vm12, %v8290_v42, -inf }
 0xe58   :  { %v6021_v46 = vpop.eup %6020 }
 0xe59   :  { %v3364_v11 = vpop.permute.xlu0 %3363  ;;  %v7365_v5 = vmul.f32 %v6021_v46, %v3034_v18  ;;  %v8288_v18 = vld [vmem:[#allocation9_spill] sm:$0xff] }
 0xe5a   :  { %v3366_v36 = vsel %vm320_vm7, %v3364_v11, 0.0  ;;  %v668_v17 = vmul.f32 %v8288_v18, %v8288_v18 }
 0xe5b   :  { %5504 = vmatmul.mubr.msk.f32.vlgmr.msra.gmra.mrb[22].mxu0 %vm367_vm13, %v7365_v5  ;;  %3367 = vadd.xlane.f32.xlu1 %v3366_v36  ;;  %v3404_v18 = vrot.slane %v7365_v5, %v6577_v27 }
 0xe5c   :  { %v672_v32 = vsel %vm671_vm10, %v668_v17, 0.0  ;;  %v3679_v17 = vld [vmem:[%s8198_s5 + $0x80] sm:$0xff] }
 0xe5d   :  { %v673_v49 = vadd.f32 %v672_v32, %v672_v32  ;;  %v3680_v32 = vld [vmem:[%s8198_s5 + $0x88] sm:$0xff] }
 0xe5f   :  { %294 = vmax.xlane.f32.xlu1 %v293_v47  ;;  %v8291_v47 = vmov 16  }
 0xe9c   :  { %v7372_v43 = vpop.f32.mrb[24].mxu1 }
 0xe9d   :  { %v5527_v28 = vpop.f32.mrb[25].mxu1 }
 0xee8   :  { %v3368_v40 = vpop.xlane.xlu1 %3367 }
 0xeec   :  { %v295_v48 = vpop.xlane.xlu1 %294 }
 0xeed   :  { %v296_v55 = vsub.f32 %v8285_v53, %v295_v48 }
 0xeef   :  { %v297_v8 = vmul.f32 1.442695, %v296_v55 }
 0xef1   :  { %6022 = vpow2.f32 %v297_v8 }
 0xefb   :  { %v7375_v37 = vpop.eup %6022 }
 0xefc   :  { %8286 = vst [vmem:[#allocation21_spill] sm:$0xff] %v7375_v37  ;;  %v299_v22 = vsel %vm292_vm11, %v7375_v37, 0.0 }
 0xefd   :  { %300 = vadd.xlane.f32.xlu1 %v299_v22 }
 0xf01   :  { %328 = vmax.xlane.f32.xlu1 %v327_v63 }
 0xf2e   :  { %v7381_v31 = vpop.f32.mrb[22].mxu0 }
 0xf2f   :  { %v5505_v25 = vpop.f32.mrb[23].mxu0 }
 0xf8a   :  { %v7383_v9 = vpop.xlane.xlu1 %300 }
 0xf8e   :  { %v329_v35 = vpop.xlane.xlu1 %328 }
 0xf8f   :  { %v330_v0 = vsub.f32 %v8287_v1, %v329_v35  ;;  %v2923_v35 = vrot.slane %v7341_v57, %v6570_v2 }
 0xf91   :  { %v331_v62 = vmul.f32 1.442695, %v330_v0  ;;  %v2938_v0 = vrot.slane %v7341_v57, %v6577_v27  ;;  %v3663_v57 = vld [vmem:[%s8198_s5] sm:$0xff] }
 0xf93   :  { %6024 = vpow2.f32 %v331_v62  ;;  %v3389_v62 = vrot.slane %v7365_v5, %v6570_v2 }
 0xf94   :  { %6026 = vrcp.f32 %v3368_v40 }
 0xf9d   :  { %v7386_v6 = vpop.eup %6024 }
 0xf9e   :  { %334 = vrot.lane.b32.xlu1 %v7386_v6, %s6148_s30  ;;  %v6027_v36 = vpop.eup %6026 }
 0xf9f   :  { %v3370_v53 = vmul.f32 %v6027_v36, %v6019_v39  ;;  %v3666_v36 = vld [vmem:[%s8198_s5 + $0x18] sm:$0xff] }
 0xfc2   :  { %674 = vadd.xlane.f32.xlu1 %v673_v49  ;;  %v5809_v49 = vpack.c.bf16 %v3680_v32, %v3679_v17  ;;  %v3669_v32 = vld [vmem:[%s8198_s5 + $0x30] sm:$0xff] }
 0xfc4   :  { %5810 = vmatprep.subr.bf16.mxu0 %v5809_v49 }
 0xfc6   :  { %849 = vmax.xlane.f32.xlu1 %v848_v33 }
 0xfca   :  { %880 = vmax.xlane.f32.xlu1 %v879_v21  ;;  %v3682_v21 = vld [vmem:[%s8198_s5 + $0x98] sm:$0xff] }
0x1010   :  { %v335_v46 = vpop.permute.xlu1 %334 }
0x1011   :  { %v338_v11 = vsel %vm337_vm14, %v335_v46, 0.0 }
0x1012   :  { %339 = vadd.xlane.f32.xlu0 %v338_v11  ;;  %v3665_v11 = vld [vmem:[%s8198_s5 + $0x10] sm:$0xff] }
0x1028   :  { %3639 = vperm.xlu0 %5966, %v3370_v53  }
0x102c   :  { %5968 = vset.pattern.permute.xlu0 %v8291_v47 }
0x104f   :  { %v7399_v28 = vpop.xlane.xlu1 %674 }
0x1053   :  { %v850_v48 = vpop.xlane.xlu1 %849 }
0x1054   :  { %v851_v55 = vsub.f32 %v8289_v23, %v850_v48  ;;  %v3664_v23 = vld [vmem:[%s8198_s5 + $0x8] sm:$0xff]  ;;  %v5815_v48 = vpack.c.bf16 %v3666_v36, %v3665_v11 }
0x1055   :  { %v5811_v33 = vpack.c.bf16 %v3664_v23, %v3663_v57  ;;  %v3692_v57 = vld [vmem:[%s8198_s5 + $0xe8] sm:$0xff] }
0x1056   :  { %v852_v8 = vmul.f32 1.442695, %v851_v55  ;;  %v4920_v55 = vld [vmem:[%s8195_s2 + $0xc] sm:$0x3] }
0x1057   :  { %v881_v22 = vpop.xlane.xlu1 %880  ;;  %5812 = vmatpush3.bf16.msra.mxu0 %v5811_v33 }
0x1058   :  { %6028 = vpow2.f32 %v852_v8  ;;  %v882_v1 = vsub.f32 %v8290_v42, %v881_v22  ;;  %v3681_v42 = vld [vmem:[%s8198_s5 + $0x90] sm:$0xff]  ;;  %v3683_v8 = vld [vmem:[%s8198_s5 + $0xa0] sm:$0xff]  ;;  %v3684_v22 = vld [vmem:[%s8198_s5 + $0xa8] sm:$0xff] }
0x1059   :  { %v5813_v46 = vpack.c.bf16 %v3682_v21, %v3681_v42  ;;  %v3677_v42 = vld [vmem:[%s8198_s5 + $0x70] sm:$0xff]  ;;  %v3678_v21 = vld [vmem:[%s8198_s5 + $0x78] sm:$0xff] }
0x105a   :  { %v883_v63 = vmul.f32 1.442695, %v882_v1  ;;  %v5817_v1 = vpack.c.bf16 %v3684_v22, %v3683_v8 }
0x105b   :  { %5814 = vmatprep.subr.bf16.mxu0 %v5813_v46  ;;  %v5839_v46 = vpack.c.bf16 %v3678_v21, %v3677_v42 }
0x105c   :  { %6030 = vpow2.f32 %v883_v63  ;;  %5816 = vmatpush3.bf16.msra.mxu0 %v5815_v48  ;;  %v3667_v63 = vld [vmem:[%s8198_s5 + $0x20] sm:$0xff] }
0x105d   :  { %5818 = vmatprep.subr.bf16.mxu0 %v5817_v1 }
0x1062   :  { %v7403_v25 = vpop.eup %6028 }
0x1063   :  { %8292 = vst [vmem:[#allocation22_spill] sm:$0xff] %v7403_v25  ;;  %v854_v39 = vsel %vm292_vm11, %v7403_v25, 0.0 }
0x1064   :  { %855 = vadd.xlane.f32.xlu0 %v854_v39  ;;  %v3668_v39 = vld [vmem:[%s8198_s5 + $0x28] sm:$0xff] }
0x1066   :  { %v7407_v40 = vpop.eup %6030 }
0x1067   :  { %886 = vrot.lane.b32.xlu1 %v7407_v40, %s6148_s30 }
0x106b   :  { %2925 = vbcast.lane.b32.xlu1 %v2923_v35, 256 }
0x106f   :  { %2929 = vbcast.lane.b32.xlu1 %v2923_v35, 264 }
0x1073   :  { %2940 = vbcast.lane.b32.xlu1 %v2938_v0, 256 }
0x1077   :  { %2944 = vbcast.lane.b32.xlu1 %v2938_v0, 264 }
0x107a   :  { %3395 = vbcast.lane.b32.xlu0 %v3389_v62, 264 }
0x107b   :  { %2933 = vbcast.lane.b32.xlu1 %v2923_v35, 272  ;;  %v5819_v35 = vpack.c.bf16 %v3668_v39, %v3667_v63 }
0x107d   :  { %5820 = vmatpush3.bf16.msra.mxu0 %v5819_v35 }
0x107e   :  { %3410 = vbcast.lane.b32.xlu0 %v3404_v18, 264 }
0x107f   :  { %2948 = vbcast.lane.b32.xlu1 %v2938_v0, 272  ;;  %v3685_v0 = vld [vmem:[%s8198_s5 + $0xb0] sm:$0xff] }
0x1082   :  { %3539 = vperm.xlu0 %5968, %v3370_v53  }
0x1083   :  { %3391 = vbcast.lane.b32.xlu1 %v3389_v62, 256 }
0x1086   :  { %3414 = vbcast.lane.b32.xlu0 %v3404_v18, 272 }
0x1087   :  { %3406 = vbcast.lane.b32.xlu1 %v3404_v18, 256  ;;  %5970 = vset.pattern.permute.xlu0 %v8275_v26  ;;  %v3686_v18 = vld [vmem:[%s8198_s5 + $0xb8] sm:$0xff] }
0x1088   :  { %v5821_v17 = vpack.c.bf16 %v3686_v18, %v3685_v0  ;;  %v3670_v26 = vld [vmem:[%s8198_s5 + $0x38] sm:$0xff] }
0x1089   :  { %v5823_v49 = vpack.c.bf16 %v3670_v26, %v3669_v32 }
0x108a   :  { %3975 = vrot.lane.b32.xlu0 %v4920_v55, %s6142_s16  ;;  %5822 = vmatprep.subr.bf16.mxu0 %v5821_v17  ;;  %v8293_v55 = vld [vmem:[#allocation13_spill] sm:$0xff]  ;;  %v4907_v17 = vld.sshfl [vmem:[%s8193_s0 + $0x10] sm:$0x33 pattern:$0x75316420] }
0x108b   :  { %3649 = vperm.xlu1 %5967, %v3370_v53   ;;  %5824 = vmatpush3.bf16.msra.mxu0 %v5823_v49  ;;  %v3691_v53 = vld [vmem:[%s8198_s5 + $0xe0] sm:$0xff]  ;;  %v2958_v32 = vcombine.high %v4907_v17, %v4907_v17 }
0x108c   :  { %5826 = vmatprep.subr.bf16.mxu0 %v7193_v61  ;;  %v5833_v23 = vpack.c.bf16 %v3692_v57, %v3691_v53  ;;  %v3676_v61 = vld [vmem:[%s8198_s5 + $0x68] sm:$0xff] }
0x108d   :  { %v2970_v49 = vrot.slane %v2958_v32, %v6570_v2  ;;  %v2974_v53 = vrot.slane %v2958_v32, %v6577_v27 }
0x108f   :  { %3399 = vbcast.lane.b32.xlu1 %v3389_v62, 272  ;;  %5828 = vmatpush3.bf16.msra.mxu0 %v7201_v16  ;;  %v3675_v62 = vld [vmem:[%s8198_s5 + $0x60] sm:$0xff] }
0x1090   :  { %5830 = vmatprep.subr.bf16.mxu0 %v7211_v58  ;;  %v5835_v16 = vpack.c.bf16 %v3676_v61, %v3675_v62  ;;  %v3693_v58 = vld [vmem:[%s8198_s5 + $0xf0] sm:$0xff]  ;;  %v2985_v62 = vsub.f32 %v2970_v49, %v7289_v3  ;;  %v2986_v61 = vsub.f32 %v2974_v53, %v7292_v38 }
0x1093   :  { %5832 = vmatpush3.bf16.msra.mxu0 %v7219_v60  ;;  %v3694_v60 = vld [vmem:[%s8198_s5 + $0xf8] sm:$0xff] }
0x1094   :  { %5834 = vmatprep.subr.bf16.mxu0 %v5833_v23  ;;  %v5837_v33 = vpack.c.bf16 %v3694_v60, %v3693_v58  ;;  %v2988_v58 = vsub.f32 %v2974_v53, %v7283_v34 }
0x1097   :  { %5836 = vmatpush3.bf16.msra.mxu0 %v5835_v16  ;;  %v2987_v16 = vsub.f32 %v2970_v49, %v7280_v24 }
0x1098   :  { %5838 = vmatprep.subr.bf16.mxu0 %v5837_v33 }
0x109b   :  { %5840 = vmatpush3.bf16.msra.mxu0 %v5839_v46 }
0x109c   :  { %5888 = vmatprep.subr.bf16.mxu0 %v8258_v54 }
0x109f   :  { %v7501_v11 = vpop.xlane.xlu0 %339 }
0x10a7   :  { %v3640_v36 = vpop.permute.xlu0 %3639 }
0x10a8   :  { %v3642_v48 = vmul.f32 %v3640_v36, %v7381_v31  ;;  %v2962_v36 = vrot.slane %v4907_v17, %v6570_v2 }
0x10a9   :  { %1296 = vadd.xlane.f32.xlu0 %v8293_v55  ;;  %v2989_v55 = vsub.f32 %v2970_v49, %v7297_v19 }
0x10aa   :  { %3644 = vrot.lane.b32.xlu1 %v3642_v48, %s6147_s15  ;;  %v2966_v48 = vrot.slane %v4907_v17, %v6577_v27  ;;  %v2979_v49 = vsub.f32 %v2962_v36, %v7249_v13  ;;  %v2983_v37 = vsub.f32 %v2962_v36, %v7256_v52 }
0x10d9   :  { %v887_v8 = vpop.permute.xlu1 %886 }
0x10da   :  { %v889_v22 = vsel %vm337_vm14, %v887_v8, 0.0  ;;  %v2990_v8 = vsub.f32 %v2974_v53, %v7300_v30  ;;  %v2981_v53 = vsub.f32 %v2962_v36, %v7263_v50 }
0x10db   :  { %890 = vadd.xlane.f32.xlu1 %v889_v22 }
0x10dd   :  { %v2926_v1 = vpop.permute.xlu1 %2925 }
0x10e1   :  { %v2930_v63 = vpop.permute.xlu1 %2929 }
0x10e5   :  { %v2941_v39 = vpop.permute.xlu1 %2940 }
0x10e6   :  { %v2997_v60 = vmul.f32 %v2985_v62, %v2941_v39  ;;  %v2998_v33 = vmul.f32 %v2986_v61, %v2941_v39 }
0x10e8   :  { %v7523_v25 = vadd.f32 %v2997_v60, %v7289_v3  ;;  %v7526_v62 = vadd.f32 %v2998_v33, %v7292_v38  ;;  %v2991_v33 = vmul.f32 %v2979_v49, %v2926_v1 }
0x10e9   :  { %v2945_v35 = vpop.permute.xlu1 %2944 }
0x10ea   :  { %v2999_v42 = vmul.f32 %v2987_v16, %v2945_v35  ;;  %v3000_v21 = vmul.f32 %v2988_v58, %v2945_v35  ;;  %v2980_v16 = vsub.f32 %v2966_v48, %v7252_v41 }
0x10ec   :  { %v7529_v39 = vadd.f32 %v2999_v42, %v7280_v24  ;;  %v7532_v35 = vadd.f32 %v3000_v21, %v7283_v34  ;;  %v2993_v34 = vmul.f32 %v2981_v53, %v2930_v63  ;;  %v2992_v21 = vmul.f32 %v2980_v16, %v2926_v1 }
0x10ed   :  { %v2934_v0 = vpop.permute.xlu1 %2933  ;;  %v7560_v16 = vadd.f32 %v2991_v33, %v7249_v13 }
0x10ee   :  { %v7563_v36 = vadd.f32 %v2992_v21, %v7252_v41 }
0x10f1   :  { %v7507_v18 = vpop.xlane.xlu0 %855  ;;  %v2949_v26 = vpop.permute.xlu1 %2948 }
0x10f2   :  { %8294 = vst [vmem:[#allocation23_spill] sm:$0xff] %v7507_v18  ;;  %v3001_v22 = vmul.f32 %v2989_v55, %v2949_v26  ;;  %v3002_v32 = vmul.f32 %v2990_v8, %v2949_v26  ;;  %v2982_v26 = vsub.f32 %v2966_v48, %v7266_v59 }
0x10f4   :  { %v7545_v58 = vadd.f32 %v3001_v22, %v7297_v19  ;;  %v7548_v60 = vadd.f32 %v3002_v32, %v7300_v30  ;;  %v2994_v55 = vmul.f32 %v2982_v26, %v2930_v63  ;;  %v7555_v19 = vadd.f32 %v2993_v34, %v7263_v50 }
0x10f5   :  { %v3396_v57 = vpop.permute.xlu0 %3395  ;;  %v3392_v23 = vpop.permute.xlu1 %3391  ;;  %v2995_v32 = vmul.f32 %v2983_v37, %v2934_v0 }
0x10f6   :  { %8295 = vst [vmem:[#allocation24_spill] sm:$0xff] %v7548_v60  ;;  %v3417_v13 = vmul.f32 %v3392_v23, %v7563_v36 }
0x10f9   :  { %v3411_v46 = vpop.permute.xlu0 %3410  ;;  %v3407_v10 = vpop.permute.xlu1 %3406 }
0x10fa   :  { %v3424_v3 = vmul.f32 %v3411_v46, %v7529_v39  ;;  %v3425_v61 = vmul.f32 %v3411_v46, %v7532_v35  ;;  %v3422_v38 = vmul.f32 %v3407_v10, %v7523_v25  ;;  %v3423_v24 = vmul.f32 %v3407_v10, %v7526_v62 }
0x10fb   :  { %v2984_v10 = vsub.f32 %v2966_v48, %v7259_v14  ;;  %v7566_v48 = vadd.f32 %v2994_v55, %v7266_v59  ;;  %v7578_v59 = vadd.f32 %v2995_v32, %v7256_v52 }
0x10fc   :  { %v3446_v18 = vadd.f32 %v3424_v3, %v3422_v38  ;;  %v3455_v53 = vadd.f32 %v3425_v61, %v3423_v24  ;;  %v3418_v61 = vmul.f32 %v3396_v57, %v7555_v19  ;;  %v3416_v38 = vmul.f32 %v3392_v23, %v7560_v16 }
0x10fd   :  { %v2996_v1 = vmul.f32 %v2984_v10, %v2934_v0 }
0x10fe   :  { %v3428_v23 = vadd.f32 %v3418_v61, %v3416_v38 }
0x10ff   :  { %v7581_v24 = vadd.f32 %v2996_v1, %v7259_v14 }
0x1101   :  { %v7534_v17 = vpop.permute.xlu0 %3539 }
0x1102   :  { %v7589_v61 = vmul.f32 %v7534_v17, %v7381_v31 }
0x1105   :  { %v3415_v42 = vpop.permute.xlu0 %3414 }
0x1106   :  { %v3426_v8 = vmul.f32 %v3415_v42, %v7545_v58  ;;  %v3427_v46 = vmul.f32 %v3415_v42, %v7548_v60 }
0x1108   :  { %v3447_v30 = vsel %vm358_vm4, %v3426_v8, 0.0  ;;  %v3456_v22 = vsel %vm358_vm4, %v3427_v46, 0.0 }
0x1109   :  { %v3448_v63 = vadd.f32 %v3447_v30, %v3446_v18  ;;  %v3457_v49 = vadd.f32 %v3456_v22, %v3455_v53  ;;  %v3976_v26 = vpop.permute.xlu0 %3975  ;;  %v3419_v18 = vmul.f32 %v3396_v57, %v7566_v48 }
0x110a   :  { %v7569_v50 = vadd.f32 %v3976_v26, %v7372_v43  ;;  %v3650_v3 = vpop.permute.xlu1 %3649 }
0x110b   :  { %v3449_v37 = vrot.slane %v3448_v63, 4  ;;  %v3458_v0 = vrot.slane %v3457_v49, 4  ;;  %v3437_v46 = vadd.f32 %v3419_v18, %v3417_v13 }
0x110c   :  { %v3979_v41 = vsel %vm309_vm6, %v7569_v50, -inf }
0x110d   :  { %v3450_v34 = vadd.f32 %v3449_v37, %v3448_v63  ;;  %v3459_v33 = vadd.f32 %v3458_v0, %v3457_v49  ;;  %3980 = vmax.xlane.f32.xlu0 %v3979_v41 }
0x110e   :  { %v3400_v42 = vpop.permute.xlu1 %3399 }
0x110f   :  { %v3451_v21 = vrot.slane %v3450_v34, 2  ;;  %v3460_v55 = vrot.slane %v3459_v33, 2  ;;  %v3420_v57 = vmul.f32 %v3400_v42, %v7578_v59  ;;  %v3421_v8 = vmul.f32 %v3400_v42, %v7581_v24 }
0x1111   :  { %v3429_v10 = vsel %vm358_vm4, %v3420_v57, 0.0  ;;  %v3438_v52 = vsel %vm358_vm4, %v3421_v8, 0.0  ;;  %v3452_v14 = vadd.f32 %v3451_v21, %v3450_v34  ;;  %v3461_v22 = vadd.f32 %v3460_v55, %v3459_v33 }
0x1112   :  { %v3430_v53 = vadd.f32 %v3429_v10, %v3428_v23  ;;  %v3439_v30 = vadd.f32 %v3438_v52, %v3437_v46  ;;  %v3652_v33 = vmul.f32 %v3650_v3, %v7365_v5 }
0x1113   :  { %v3462_v26 = vrot.slane %v3461_v22, 1  ;;  %v3453_v37 = vrot.slane %v3452_v14, 1 }
0x1114   :  { %v3431_v32 = vrot.slane %v3430_v53, 4  ;;  %v3440_v1 = vrot.slane %v3439_v30, 4 }
0x1115   :  { %v3463_v18 = vadd.f32 %v3462_v26, %v3461_v22  ;;  %v3454_v38 = vadd.f32 %v3453_v37, %v3452_v14 }
0x1116   :  { %v3432_v63 = vadd.f32 %v3431_v32, %v3430_v53  ;;  %v3441_v49 = vadd.f32 %v3440_v1, %v3439_v30 }
0x1117   :  { %v3776_v46 = vmul.f32 %v3463_v18, %v3463_v18  ;;  %v3775_v10 = vmul.f32 %v3454_v38, %v3454_v38 }
0x1118   :  { %v3433_v0 = vrot.slane %v3432_v63, 2  ;;  %v3442_v41 = vrot.slane %v3441_v49, 2 }
0x111a   :  { %v3434_v60 = vadd.f32 %v3433_v0, %v3432_v63  ;;  %v3443_v42 = vadd.f32 %v3442_v41, %v3441_v49 }
0x111c   :  { %v3645_v13 = vpop.permute.xlu1 %3644  ;;  %v3444_v57 = vrot.slane %v3443_v42, 1  ;;  %v3435_v34 = vrot.slane %v3434_v60, 1 }
0x111d   :  { %v3647_v21 = vadd.f32 %v3645_v13, %v7589_v61 }
0x111e   :  { %v3445_v55 = vadd.f32 %v3444_v57, %v3443_v42  ;;  %v3436_v8 = vadd.f32 %v3435_v34, %v3434_v60 }
0x111f   :  { %v3653_v23 = vadd.f32 %v3652_v33, %v3647_v21 }
0x1120   :  { %v3700_v52 = vsel %vm596_vm9, %v3463_v18, %v3445_v55  ;;  %v3774_v53 = vmul.f32 %v3445_v55, %v3445_v55  ;;  %v3699_v31 = vsel %vm596_vm9, %v3454_v38, %v3436_v8  ;;  %v3773_v17 = vmul.f32 %v3436_v8, %v3436_v8  ;;  %v8297_v18 = vld [vmem:[#allocation14_spill] sm:$0xff] }
0x1121   :  { %v3654_v30 = vmax.f32 %v3653_v23, 0.0  ;;  %3767 = vmatprep.mubr.f32.mxu0 %v3700_v52  ;;  %v1502_v38 = vsel %vm326_vm12, %v8297_v18, -inf }
0x1122   :  { %3768 = vmatmul.mubr.f32.vlgmr.msra.gmra.mrb[24].mxu0 %v3699_v31  ;;  %v3781_v14 = vsel %vm596_vm9, %v3775_v10, %v3773_v17  ;;  %v3782_v5 = vsel %vm596_vm9, %v3776_v46, %v3774_v53 }
0x1123   :  { %v3655_v3 = vmul.f32 %v3654_v30, %v3654_v30  ;;  %5890 = vmatpush3.bf16.msra.mxu0 %v6204_v4  ;;  %5545 = vmatprep.mubr.msk.f32.mxu0 %vm6139_vm0, %v8257_v44  ;;  %v3785_v60 = vsel %vm671_vm10, %v3781_v14, 0.0  ;;  %v3786_v22 = vsel %vm671_vm10, %v3782_v5, 0.0  ;;  %v8296_v4 = vld [vmem:[#allocation12_spill] sm:$0xff] }
0x1124   :  { %5891 = vmatprep.subr.bf16.mxu0 %v8258_v54  ;;  %v7603_v32 = vadd.f32 %v3786_v22, %v3785_v60  ;;  %v1471_v26 = vsel %vm292_vm11, %v8296_v4, -inf }
0x1125   :  { %v3656_v1 = vmul.f32 %v3655_v3, %v3655_v3  ;;  %v8298_v3 = vld [vmem:[#allocation11_spill] sm:$0xff] }
0x1127   :  { %5893 = vmatpush3.bf16.msra.mxu0 %v6215_v7  ;;  %v3657_v63 = vmul.f32 %v3656_v1, %v3654_v30  ;;  %v8243_v7 = vmov 20  }
0x1128   :  { %5894 = vmatprep.subr.bf16.mxu0 %v8258_v54  ;;  %5969 = vset.pattern.permute.xlu1 %v8243_v7 }
0x1129   :  { %v3658_v49 = vsel %vm557_vm8, %v3657_v63, 0.0 }
0x112a   :  { %5546 = vmatmul.mubr.msk.f32.vlgmr.msra.gmra.mrb[26].mxu0 %vm141_vm1, %v7351_v45  ;;  %3659 = vadd.xlane.f32.xlu1 %v3658_v49 }
0x112b   :  { %5896 = vmatpush3.bf16.msra.mxu0 %v6286_v51  ;;  %5556 = vmatprep.mubr.msk.f32.mxu0 %vm6139_vm0, %v8257_v44 }
0x112c   :  { %5897 = vmatprep.subr.bf16.mxu0 %v8258_v54 }
0x112e   :  { %1472 = vmax.xlane.f32.xlu1 %v1471_v26 }
0x112f   :  { %5899 = vmatpush3.bf16.msra.mxu0 %v6307_v56 }
0x1168   :  { %v891_v37 = vpop.xlane.xlu1 %890 }
0x11b7   :  { %v3660_v0 = vpop.xlane.xlu1 %3659 }
0x11b8   :  { %6032 = vrcp.f32 %v3660_v0  ;;  %v7657_v0 = vpop.xlane.xlu0 %1296 }
0x11bb   :  { %v1473_v45 = vpop.xlane.xlu1 %1472 }
0x11bc   :  { %v1474_v51 = vsub.f32 %v8296_v4, %v1473_v45 }
0x11be   :  { %v1475_v41 = vmul.f32 1.442695, %v1474_v51 }
0x11c0   :  { %6034 = vpow2.f32 %v1475_v41  ;;  %v3981_v41 = vpop.xlane.xlu0 %3980 }
0x11c1   :  { %6036 = vrcp.f32 %v7501_v11  ;;  %v4928_v11 = vld [vmem:[%s8194_s1 + $0xe] sm:$0x3] }
0x11c2   :  { %v6033_v44 = vpop.eup %6032  ;;  %6038 = vrcp.f32 %v891_v37 }
0x11c3   :  { %v7619_v42 = vmul.f32 %v6033_v44, %v3657_v63  ;;  %v8299_v44 = vld [vmem:[#allocation17_spill] sm:$0xff] }
0x11c5   :  { %5535 = vmatmul.mubr.msk.f32.vlgmr.msra.gmra.mrb[26].mxu1 %vm367_vm13, %v7619_v42 }
0x11ca   :  { %v7623_v54 = vpop.eup %6034 }
0x11cb   :  { %v1477_v56 = vsel %vm292_vm11, %v7623_v54, 0.0  ;;  %v6037_v13 = vpop.eup %6036 }
0x11cc   :  { %1478 = vadd.xlane.f32.xlu1 %v1477_v56  ;;  %v7631_v57 = vmul.f32 %v6037_v13, %v7386_v6  ;;  %v6039_v34 = vpop.eup %6038  ;;  %v3982_v56 = vsub.f32 %v7569_v50, %v3981_v41 }
0x11cd   :  { %v7635_v33 = vmul.f32 %v6039_v34, %v7407_v40  ;;  %v676_v40 = vmax.f32 %v7399_v28, 1e-16 }
0x11d0   :  { %1503 = vmax.xlane.f32.xlu1 %v1502_v38 }
0x11e1   :  { %686 = vperm.xlu1 %5969, %v7631_v57  }
0x11e5   :  { %1308 = vperm.xlu1 %5969, %v7635_v33  }
0x11f5   :  { %v5223_v21 = vpop.f32.mrb[24].mxu0 }
0x11f6   :  { %v5224_v55 = vpop.f32.mrb[25].mxu0 }
0x11f7   :  { %v7638_v8 = vadd.f32 %v5224_v55, %v5223_v21 }
0x11fd   :  { %v4503_v23 = vpop.f32.mrb[26].mxu0 }
0x11fe   :  { %v4507_v46 = vadd.f32 %v4928_v11, %v4503_v23  ;;  %v5547_v6 = vpop.f32.mrb[27].mxu0 }
0x1200   :  { %6040 = vtanh.f32 %v4507_v46  ;;  %v8300_v46 = vld [vmem:[#allocation19_spill] sm:$0xff] }
0x1201   :  { %6042 = vrsqrt.f32 %v676_v40 }
0x120a   :  { %v6041_v10 = vpop.eup %6040 }
0x120b   :  { %v4509_v52 = vmax.f32 %v6041_v10, 0.0  ;;  %v6043_v17 = vpop.eup %6042  ;;  %v8301_v10 = vld [vmem:[#allocation16_spill] sm:$0xff] }
0x120c   :  { %v678_v60 = vmul.f32 %v6043_v17, %v8298_v3 }
0x120d   :  { %v4510_v53 = vsub.f32 1.0, %v4509_v52  ;;  %v2094_v52 = vsel %vm292_vm11, %v8301_v10, -inf }
0x120f   :  { %5557 = vmatmul.mubr.msk.f32.vlgmr.msra.gmra.mrb[28].mxu0 %vm141_vm1, %v4510_v53  ;;  %v8302_v53 = vld [vmem:[#allocation18_spill] sm:$0xff] }
0x1210   :  { %v2125_v40 = vsel %vm326_vm12, %v8302_v53, -inf }
0x1259   :  { %v7645_v31 = vpop.xlane.xlu1 %1478 }
0x125d   :  { %v1504_v30 = vpop.xlane.xlu1 %1503 }
0x125e   :  { %v1505_v14 = vsub.f32 %v8297_v18, %v1504_v30  ;;  %v3983_v18 = vmul.f32 1.442695, %v3982_v56 }
0x1260   :  { %v1506_v5 = vmul.f32 1.442695, %v1505_v14 }
0x1261   :  { %v687_v22 = vpop.permute.xlu1 %686 }
0x1262   :  { %6044 = vpow2.f32 %v1506_v5  ;;  %v7649_v1 = vmul.f32 %v687_v22, %v678_v60 }
0x1263   :  { %6046 = vpow2.f32 %v3983_v18  ;;  %v8305_v18 = vld [vmem:[#allocation25_spill] sm:$0xff] }
0x1265   :  { %v7654_v4 = vpop.permute.xlu1 %1308 }
0x126c   :  { %v6045_v63 = vpop.eup %6044 }
0x126d   :  { %1509 = vrot.lane.b32.xlu1 %v6045_v63, %s6148_s30  ;;  %v7663_v38 = vpop.eup %6046 }
0x1298   :  { %v7652_v49 = vpop.f32.mrb[26].mxu1 }
0x1299   :  { %v5536_v28 = vpop.f32.mrb[27].mxu1 }
0x12df   :  { %v1510_v26 = vpop.permute.xlu1 %1509 }
0x12e0   :  { %v1512_v37 = vsel %vm337_vm14, %v1510_v26, 0.0 }
0x12e1   :  { %1513 = vadd.xlane.f32.xlu0 %v1512_v37  ;;  %v8304_v37 = vld [vmem:[#allocation26_spill] sm:$0xff] }
0x12e2   :  { %v7659_v45 = vpop.f32.mrb[28].mxu0 }
0x12e3   :  { %v5558_v51 = vpop.f32.mrb[29].mxu0 }
0x12e5   :  { %1919 = vadd.xlane.f32.xlu0 %v8299_v44 }
0x12fb   :  { %3986 = vrot.lane.b32.xlu0 %v7663_v38, %s6143_s21 }
0x136e   :  { %v1514_v13 = vpop.xlane.xlu0 %1513 }
0x136f   :  { %6048 = vrcp.f32 %v1514_v13  ;;  %v2717_v13 = vsel %vm292_vm11, %v8305_v18, -inf }
0x1372   :  { %v1920_v34 = vpop.xlane.xlu0 %1919 }
0x1373   :  { %v1921_v21 = vmax.f32 %v1920_v34, 1e-16 }
0x1375   :  { %6050 = vrsqrt.f32 %v1921_v21 }
0x1376   :  { %v3987_v44 = vpop.permute.xlu0 %3986 }
0x1377   :  { %v3989_v56 = vsel %vm320_vm7, %v3987_v44, 0.0 }
0x1379   :  { %v6049_v55 = vpop.eup %6048 }
0x137a   :  { %v7667_v11 = vmul.f32 %v6049_v55, %v6045_v63 }
0x137c   :  { %1931 = vperm.xlu1 %5969, %v7667_v11  }
0x137f   :  { %v6051_v23 = vpop.eup %6050 }
0x1380   :  { %v1923_v6 = vmul.f32 %v6051_v23, %v8300_v46  ;;  %5971 = vset.pattern.permute.xlu1 %v8291_v47 }
0x13a0   :  { %2095 = vmax.xlane.f32.xlu1 %v2094_v52 }
0x13a4   :  { %2126 = vmax.xlane.f32.xlu1 %v2125_v40 }
0x13fb   :  { %v1932_v17 = vpop.permute.xlu1 %1931 }
0x13fc   :  { %v7676_v30 = vmul.f32 %v1932_v17, %v1923_v6 }
0x142d   :  { %v2096_v14 = vpop.xlane.xlu1 %2095 }
0x142e   :  { %v2097_v5 = vsub.f32 %v8301_v10, %v2096_v14 }
0x1430   :  { %v2098_v3 = vmul.f32 1.442695, %v2097_v5 }
0x1431   :  { %v2127_v60 = vpop.xlane.xlu1 %2126 }
0x1432   :  { %6052 = vpow2.f32 %v2098_v3  ;;  %v2128_v22 = vsub.f32 %v8302_v53, %v2127_v60  ;;  %v8307_v53 = vld [vmem:[#allocation28_spill] sm:$0xff] }
0x1433   :  { %v2748_v40 = vsel %vm326_vm12, %v8307_v53, -inf }
0x1434   :  { %v2129_v47 = vmul.f32 1.442695, %v2128_v22 }
0x1436   :  { %6054 = vpow2.f32 %v2129_v47 }
0x143c   :  { %v7680_v63 = vpop.eup %6052 }
0x143d   :  { %8303 = vst [vmem:[#allocation6_spill] sm:$0xff] %v7680_v63  ;;  %v2100_v28 = vsel %vm292_vm11, %v7680_v63, 0.0 }
0x143e   :  { %2101 = vadd.xlane.f32.xlu0 %v2100_v28  ;;  %v3340_v28 = vsel %vm292_vm11, %v7184_v12, -inf }
0x1440   :  { %v7684_v26 = vpop.eup %6054 }
0x1441   :  { %2132 = vrot.lane.b32.xlu1 %v7684_v26, %s6148_s30 }
0x1465   :  { %2542 = vadd.xlane.f32.xlu1 %v8304_v37  ;;  %v3371_v37 = vsel %vm326_vm12, %v7336_v15, -inf }
0x14b3   :  { %v2133_v51 = vpop.permute.xlu1 %2132 }
0x14b4   :  { %v2135_v41 = vsel %vm337_vm14, %v2133_v51, 0.0 }
0x14b5   :  { %2136 = vadd.xlane.f32.xlu0 %v2135_v41 }
0x14b9   :  { %3990 = vadd.xlane.f32.xlu0 %v3989_v56 }
0x14bd   :  { %2718 = vmax.xlane.f32.xlu0 %v2717_v13 }
0x14c1   :  { %3165 = vadd.xlane.f32.xlu0 %v7321_v29 }
0x14cb   :  { %v7694_v34 = vpop.xlane.xlu0 %2101 }
0x14cc   :  { %8306 = vst [vmem:[#allocation7_spill] sm:$0xff] %v7694_v34  ;;  %v8317_v34 = vld [vmem:[#allocation23_spill] sm:$0xff] }
0x14f2   :  { %v7705_v29 = vpop.xlane.xlu1 %2542 }
0x14f3   :  { %8308 = vst [vmem:[#allocation9_spill] sm:$0xff] %v7705_v29 }
0x1542   :  { %v7696_v21 = vpop.xlane.xlu0 %2136 }
0x1546   :  { %v3991_v55 = vpop.xlane.xlu0 %3990 }
0x154a   :  { %v2719_v23 = vpop.xlane.xlu0 %2718 }
0x154b   :  { %v2720_v46 = vsub.f32 %v8305_v18, %v2719_v23 }
0x154d   :  { %v2721_v6 = vmul.f32 1.442695, %v2720_v46 }
0x154f   :  { %6056 = vpow2.f32 %v2721_v6 }
0x1559   :  { %v7699_v10 = vpop.eup %6056 }
0x155a   :  { %v2723_v52 = vsel %vm292_vm11, %v7699_v10, 0.0 }
0x155b   :  { %2724 = vadd.xlane.f32.xlu1 %v2723_v52  ;;  %v3561_v52 = vrot.slane %v7589_v61, %v6577_v27 }
0x155f   :  { %2749 = vmax.xlane.f32.xlu1 %v2748_v40 }
0x15e8   :  { %v7707_v17 = vpop.xlane.xlu1 %2724 }
0x15ec   :  { %v2750_v14 = vpop.xlane.xlu1 %2749 }
0x15ed   :  { %v2751_v5 = vsub.f32 %v8307_v53, %v2750_v14 }
0x15ef   :  { %v2752_v3 = vmul.f32 1.442695, %v2751_v5 }
0x15f1   :  { %6058 = vpow2.f32 %v2752_v3 }
0x15f2   :  { %6060 = vrcp.f32 %v3991_v55 }
0x15fb   :  { %v7710_v60 = vpop.eup %6058 }
0x15fc   :  { %2755 = vrot.lane.b32.xlu1 %v7710_v60, %s6148_s30  ;;  %v6061_v51 = vpop.eup %6060 }
0x15fd   :  { %v3993_v41 = vmul.f32 %v6061_v51, %v7663_v38 }
0x166e   :  { %v2756_v22 = vpop.permute.xlu1 %2755 }
0x166f   :  { %v2758_v47 = vsel %vm337_vm14, %v2756_v22, 0.0  ;;  %v6150_v22 = vmov 19  }
0x1670   :  { %2759 = vadd.xlane.f32.xlu1 %v2758_v47  ;;  %v3963_v47 = vsel %vm292_vm11, %v7372_v43, -inf }
0x1674   :  { %3341 = vmax.xlane.f32.xlu1 %v3340_v28 }
0x1678   :  { %3372 = vmax.xlane.f32.xlu1 %v3371_v37 }
0x1689   :  { %4162 = vperm.xlu1 %5971, %v3993_v41  }
0x168d   :  { %5972 = vset.pattern.permute.xlu1 %v8264_v20 }
0x168e   :  { %4272 = vperm.xlu1 %5972, %v3993_v41  }
0x1692   :  { %5973 = vset.pattern.permute.xlu1 %v6150_v22 }
0x16fd   :  { %v7721_v44 = vpop.xlane.xlu1 %2759 }
0x1701   :  { %v3342_v56 = vpop.xlane.xlu1 %3341 }
0x1702   :  { %v3343_v18 = vsub.f32 %v7184_v12, %v3342_v56  ;;  %v3546_v12 = vrot.slane %v7589_v61, %v6570_v2  ;;  %v4929_v61 = vld [vmem:[%s8195_s2 + $0xe] sm:$0x3] }
0x1704   :  { %v3344_v13 = vmul.f32 1.442695, %v3343_v18 }
0x1705   :  { %v3373_v55 = vpop.xlane.xlu1 %3372 }
0x1706   :  { %6062 = vpow2.f32 %v3344_v13  ;;  %v3374_v38 = vsub.f32 %v7336_v15, %v3373_v55  ;;  %v7737_v15 = vpop.xlane.xlu0 %3165 }
0x1707   :  { %8309 = vst [vmem:[#allocation8_spill] sm:$0xff] %v7737_v15 }
0x1708   :  { %v3375_v6 = vmul.f32 1.442695, %v3374_v38 }
0x1709   :  { %v4163_v28 = vpop.permute.xlu1 %4162 }
0x170a   :  { %6064 = vpow2.f32 %v3375_v6  ;;  %v7752_v37 = vmul.f32 %v4163_v28, %v7652_v49 }
0x170c   :  { %v7758_v51 = vrot.slane %v7752_v37, %v6577_v27 }
0x1710   :  { %v7724_v23 = vpop.eup %6062 }
0x1711   :  { %v3346_v46 = vsel %vm292_vm11, %v7724_v23, 0.0 }
0x1712   :  { %3347 = vadd.xlane.f32.xlu0 %v3346_v46 }
0x1714   :  { %v7729_v20 = vpop.eup %6064 }
0x1728   :  { %3378 = vrot.lane.b32.xlu0 %v7729_v20, %s6148_s30 }
0x172c   :  { %4262 = vperm.xlu0 %5970, %v3993_v41  }
0x1730   :  { %3548 = vbcast.lane.b32.xlu0 %v3546_v12, 256 }
0x1731   :  { %5974 = vset.pattern.permute.xlu0 %v6150_v22 }
0x1734   :  { %3552 = vbcast.lane.b32.xlu0 %v3546_v12, 264 }
0x1738   :  { %3556 = vbcast.lane.b32.xlu0 %v3546_v12, 272 }
0x173c   :  { %3563 = vbcast.lane.b32.xlu0 %v3561_v52, 256 }
0x1740   :  { %3567 = vbcast.lane.b32.xlu0 %v3561_v52, 264 }
0x1744   :  { %3571 = vbcast.lane.b32.xlu0 %v3561_v52, 272 }
0x179f   :  { %v7739_v53 = vpop.xlane.xlu0 %3347 }
0x17a3   :  { %v3379_v40 = vpop.permute.xlu0 %3378 }
0x17a4   :  { %v3381_v14 = vsel %vm337_vm14, %v3379_v40, 0.0 }
0x17a5   :  { %3382 = vadd.xlane.f32.xlu1 %v3381_v14 }
0x17ab   :  { %v4263_v5 = vpop.permute.xlu0 %4262 }
0x17ac   :  { %v4265_v3 = vmul.f32 %v4263_v5, %v7652_v49 }
0x17ae   :  { %4267 = vrot.lane.b32.xlu0 %v4265_v3, %s6147_s15 }
0x17af   :  { %v3549_v41 = vpop.permute.xlu0 %3548 }
0x17b3   :  { %v3553_v56 = vpop.permute.xlu0 %3552 }
0x17b7   :  { %v7762_v18 = vpop.permute.xlu0 %3556 }
0x17bb   :  { %v3564_v49 = vpop.permute.xlu0 %3563 }
0x17bf   :  { %v7764_v13 = vpop.permute.xlu0 %3567 }
0x17c3   :  { %v7766_v46 = vpop.permute.xlu0 %3571 }
0x17cd   :  { %3788 = vadd.xlane.f32.xlu0 %v7603_v32  ;;  %v4169_v32 = vrot.slane %v7752_v37, %v6570_v2 }
0x17e3   :  { %4596 = vrot.lane.b32.xlu0 %v4929_v61, %s6142_s16  ;;  %v4917_v61 = vld.sshfl [vmem:[%s8193_s0 + $0x14] sm:$0x33 pattern:$0x75316420] }
0x1802   :  { %3964 = vmax.xlane.f32.xlu0 %v3963_v47  ;;  %v7789_v47 = vrot.slane %v4917_v61, %v6570_v2 }
0x1818   :  { %4171 = vbcast.lane.b32.xlu0 %v4169_v32, 256 }
0x181c   :  { %4175 = vbcast.lane.b32.xlu0 %v4169_v32, 264 }
0x1820   :  { %4186 = vbcast.lane.b32.xlu0 %v7758_v51, 256  ;;  %v7768_v55 = vpop.permute.xlu0 %4267 }
0x1824   :  { %4190 = vbcast.lane.b32.xlu0 %v7758_v51, 264 }
0x1828   :  { %4179 = vbcast.lane.b32.xlu0 %v4169_v32, 272 }
0x185a   :  { %v3789_v38 = vpop.xlane.xlu0 %3788 }
0x185b   :  { %v3790_v6 = vmax.f32 %v3789_v38, 1e-16 }
0x185d   :  { %6066 = vrsqrt.f32 %v3790_v6 }
0x185e   :  { %v4597_v12 = vpop.permute.xlu0 %4596  ;;  %6068 = vrcp.f32 %v7696_v21 }
0x185f   :  { %v7771_v52 = vadd.f32 %v4597_v12, %v7659_v45  ;;  %v4927_v12 = vld.sshfl [vmem:[%s8193_s0 + $0x18] sm:$0x33 pattern:$0x75316420] }
0x1861   :  { %v4600_v40 = vsel %vm326_vm12, %v7771_v52, -inf }
0x1862   :  { %4601 = vmax.xlane.f32.xlu0 %v4600_v40 }
0x1867   :  { %v6067_v14 = vpop.eup %6066 }
0x1868   :  { %v7776_v5 = vmul.f32 %v6067_v14, %v7638_v8  ;;  %v6069_v3 = vpop.eup %6068  ;;  %v7792_v8 = vrot.slane %v4917_v61, %v6577_v27 }
0x1869   :  { %v7786_v22 = vmul.f32 %v6069_v3, %v7684_v26  ;;  %v3604_v26 = vsub.f32 %v7789_v47, %v7555_v19 }
0x186a   :  { %8310 = vst [vmem:[#allocation10_spill] sm:$0xff] %v7776_v5  ;;  %v3605_v32 = vsub.f32 %v7792_v8, %v7566_v48 }
0x186b   :  { %8311 = vst [vmem:[#allocation13_spill] sm:$0xff] %v7786_v22  ;;  %v3616_v40 = vmul.f32 %v3604_v26, %v3553_v56 }
0x186c   :  { %v3617_v14 = vmul.f32 %v3605_v32, %v3553_v56  ;;  %v4204_v56 = vcombine.high %v4927_v12, %v4927_v12 }
0x1878   :  { %681 = vperm.xlu0 %5974, %v7631_v57   ;;  %v3581_v57 = vcombine.high %v4917_v61, %v4917_v61  ;;  %v7819_v61 = vrot.slane %v4927_v12, %v6570_v2 }
0x187a   :  { %v7804_v38 = vrot.slane %v3581_v57, %v6570_v2  ;;  %v7807_v6 = vrot.slane %v3581_v57, %v6577_v27 }
0x187c   :  { %1303 = vperm.xlu0 %5974, %v7635_v33   ;;  %v3602_v33 = vsub.f32 %v7789_v47, %v7560_v16  ;;  %v3608_v57 = vsub.f32 %v7804_v38, %v7523_v25 }
0x187e   :  { %v3614_v21 = vmul.f32 %v3602_v33, %v3549_v41  ;;  %v7822_v33 = vrot.slane %v4927_v12, %v6577_v27  ;;  %v3610_v12 = vsub.f32 %v7804_v38, %v7529_v39 }
0x1880   :  { %1926 = vperm.xlu0 %5974, %v7667_v11   ;;  %v3603_v11 = vsub.f32 %v7792_v8, %v7563_v36  ;;  %v3622_v15 = vmul.f32 %v3610_v12, %v7764_v13 }
0x1882   :  { %v3615_v28 = vmul.f32 %v3603_v11, %v3549_v41  ;;  %v7813_v41 = vadd.f32 %v3614_v21, %v7560_v16  ;;  %v3609_v11 = vsub.f32 %v7807_v6, %v7526_v62  ;;  %v7830_v21 = vadd.f32 %v3616_v40, %v7555_v19 }
0x1883   :  { %v7844_v40 = vrot.slane %v4204_v56, %v6570_v2 }
0x1884   :  { %2549 = vperm.xlu0 %5974, %v7786_v22   ;;  %v7816_v3 = vadd.f32 %v3615_v28, %v7563_v36  ;;  %v7833_v36 = vadd.f32 %v3617_v14, %v7566_v48  ;;  %v3620_v28 = vmul.f32 %v3608_v57, %v3564_v49  ;;  %v3621_v32 = vmul.f32 %v3609_v11, %v3564_v49  ;;  %v8320_v22 = vld [vmem:[#allocation15_spill] sm:$0xff] }
0x1885   :  { %v4225_v5 = vsub.f32 %v7819_v61, %v7813_v41  ;;  %v7847_v14 = vrot.slane %v4204_v56, %v6577_v27 }
0x1886   :  { %v4226_v63 = vsub.f32 %v7822_v33, %v7816_v3  ;;  %v7850_v57 = vadd.f32 %v3620_v28, %v7523_v25  ;;  %v7853_v11 = vadd.f32 %v3621_v32, %v7526_v62 }
0x1888   :  { %v4231_v28 = vsub.f32 %v7844_v40, %v7850_v57  ;;  %v4232_v32 = vsub.f32 %v7847_v14, %v7853_v11 }
0x188f   :  { %v3965_v26 = vpop.xlane.xlu0 %3964 }
0x1890   :  { %v3966_v16 = vsub.f32 %v7372_v43, %v3965_v26  ;;  %v3611_v43 = vsub.f32 %v7807_v6, %v7532_v35  ;;  %v4227_v26 = vsub.f32 %v7819_v61, %v7830_v21 }
0x1892   :  { %v3967_v7 = vmul.f32 1.442695, %v3966_v16  ;;  %v4228_v16 = vsub.f32 %v7822_v33, %v7833_v36 }
0x1893   :  { %v4172_v19 = vpop.permute.xlu0 %4171 }
0x1894   :  { %6070 = vpow2.f32 %v3967_v7  ;;  %v4237_v48 = vmul.f32 %v4225_v5, %v4172_v19  ;;  %v4238_v49 = vmul.f32 %v4226_v63, %v4172_v19  ;;  %v3623_v7 = vmul.f32 %v3611_v43, %v7764_v13 }
0x1895   :  { %v7872_v19 = vadd.f32 %v3622_v15, %v7529_v39  ;;  %6072 = vrcp.f32 %v7383_v9 }
0x1896   :  { %v7862_v63 = vadd.f32 %v4237_v48, %v7813_v41  ;;  %v7865_v5 = vadd.f32 %v4238_v49, %v7816_v3  ;;  %v7875_v13 = vadd.f32 %v3623_v7, %v7532_v35  ;;  %6074 = vrcp.f32 %v8317_v34 }
0x1897   :  { %v4176_v25 = vpop.permute.xlu0 %4175 }
0x1898   :  { %v4239_v56 = vmul.f32 %v4227_v26, %v4176_v25  ;;  %v4240_v62 = vmul.f32 %v4228_v16, %v4176_v25  ;;  %v4233_v25 = vsub.f32 %v7844_v40, %v7872_v19  ;;  %v4234_v39 = vsub.f32 %v7847_v14, %v7875_v13 }
0x189a   :  { %v7878_v12 = vadd.f32 %v4239_v56, %v7830_v21  ;;  %v7881_v43 = vadd.f32 %v4240_v62, %v7833_v36 }
0x189b   :  { %v4187_v48 = vpop.permute.xlu0 %4186 }
0x189c   :  { %v4243_v49 = vmul.f32 %v4231_v28, %v4187_v48  ;;  %v4244_v26 = vmul.f32 %v4232_v32, %v4187_v48 }
0x189e   :  { %v7883_v16 = vpop.eup %6070  ;;  %v7890_v35 = vadd.f32 %v4243_v49, %v7850_v57  ;;  %v7893_v15 = vadd.f32 %v4244_v26, %v7853_v11  ;;  %v3994_v49 = vsel %vm326_vm12, %v7569_v50, -inf  ;;  %v1298_v26 = vmax.f32 %v7657_v0, 1e-16 }
0x189f   :  { %8312 = vst [vmem:[#allocation12_spill] sm:$0xff] %v7883_v16  ;;  %v4191_v7 = vpop.permute.xlu0 %4190  ;;  %v3969_v56 = vsel %vm292_vm11, %v7883_v16, 0.0 }
0x18a0   :  { %8313 = vst [vmem:[#allocation14_spill] sm:$0xff] %v7890_v35  ;;  %8314 = vst [vmem:[#allocation11_spill] sm:$0xff] %v7893_v15  ;;  %v4245_v62 = vmul.f32 %v4233_v25, %v4191_v7  ;;  %v4246_v28 = vmul.f32 %v4234_v39, %v4191_v7  ;;  %3970 = vadd.xlane.f32.xlu1 %v3969_v56  ;;  %6076 = vrsqrt.f32 %v1298_v26  ;;  %v6073_v39 = vpop.eup %6072 }
0x18a1   :  { %6078 = vrcp.f32 %v7645_v31  ;;  %v6075_v56 = vpop.eup %6074 }
0x18a2   :  { %v7898_v32 = vadd.f32 %v4245_v62, %v7872_v19  ;;  %v7901_v48 = vadd.f32 %v4246_v28, %v7875_v13  ;;  %v8319_v62 = vld [vmem:[#allocation21_spill] sm:$0xff] }
0x18a3   :  { %v7908_v25 = vpop.permute.xlu0 %4179  ;;  %v303_v28 = vmul.f32 %v6073_v39, %v8319_v62 }
0x18a4   :  { %8315 = vst [vmem:[#allocation17_spill] sm:$0xff] %v7898_v32  ;;  %8316 = vst [vmem:[#allocation19_spill] sm:$0xff] %v7901_v48  ;;  %3995 = vmax.xlane.f32.xlu1 %v3994_v49  ;;  %v8321_v48 = vld [vmem:[#allocation22_spill] sm:$0xff] }
0x18a5   :  { %8318 = vst [vmem:[#allocation16_spill] sm:$0xff] %v7908_v25  ;;  %v858_v34 = vmul.f32 %v6075_v56, %v8321_v48 }
0x18aa   :  { %v6077_v29 = vpop.eup %6076 }
0x18ab   :  { %v1300_v9 = vmul.f32 %v6077_v29, %v8320_v22  ;;  %v6079_v26 = vpop.eup %6078 }
0x18ac   :  { %v1481_v25 = vmul.f32 %v6079_v26, %v7623_v54  ;;  %v4270_v54 = vadd.f32 %v7768_v55, %v7752_v37 }
0x18ad   :  { %v1311_v15 = vmul.f32 %v7654_v4, %v1300_v9 }
0x18ef   :  { %v7911_v7 = vpop.xlane.xlu0 %4601 }
0x18f7   :  { %v682_v16 = vpop.permute.xlu0 %681 }
0x18f8   :  { %v684_v49 = vmul.f32 %v682_v16, %v303_v28 }
0x18fa   :  { %v690_v0 = vadd.f32 %v7649_v1, %v684_v49  ;;  %v4273_v1 = vpop.permute.xlu1 %4272 }
0x18fb   :  { %v1304_v32 = vpop.permute.xlu0 %1303 }
0x18fc   :  { %691 = vst.msk [vmem:[#allocation3] sm:$0x3] %vm292_vm11, %v690_v0  ;;  %v1306_v31 = vmul.f32 %v1304_v32, %v858_v34 }
0x18fe   :  { %v1312_v35 = vadd.f32 %v1311_v15, %v1306_v31  ;;  %v3383_v22 = vpop.xlane.xlu1 %3382  ;;  %v4012_v31 = vrot.slane %v7619_v42, %v6570_v2 }
0x18ff   :  { %v1927_v39 = vpop.permute.xlu0 %1926 }
0x1900   :  { %1314 = vst.msk [vmem:[#allocation3 + $0x2] sm:$0x3] %vm292_vm11, %v1312_v35  ;;  %v1929_v16 = vmul.f32 %v1927_v39, %v1481_v25 }
0x1902   :  { %v1935_v29 = vadd.f32 %v7676_v30, %v1929_v16  ;;  %v4275_v30 = vmul.f32 %v4273_v1, %v7619_v42  ;;  %v4287_v16 = vld [vmem:[%s8198_s5 + $0x8] sm:$0xff]  ;;  %v4305_v1 = vld [vmem:[%s8198_s5 + $0x98] sm:$0xff] }
0x1904   :  { %1937 = vst.msk [vmem:[#allocation3 + $0x4] sm:$0x3] %vm292_vm11, %v1935_v29  ;;  %v4276_v35 = vadd.f32 %v4275_v30, %v4270_v54  ;;  %v4306_v54 = vld [vmem:[%s8198_s5 + $0xa0] sm:$0xff]  ;;  %v4307_v30 = vld [vmem:[%s8198_s5 + $0xa8] sm:$0xff] }
0x1906   :  { %v4277_v32 = vmax.f32 %v4276_v35, 0.0  ;;  %v5864_v35 = vpack.c.bf16 %v4307_v30, %v4306_v54  ;;  %v4315_v54 = vld [vmem:[%s8198_s5 + $0xe8] sm:$0xff] }
0x1908   :  { %v4278_v25 = vmul.f32 %v4277_v32, %v4277_v32 }
0x190a   :  { %v4279_v28 = vmul.f32 %v4278_v25, %v4278_v25  ;;  %v4291_v25 = vld [vmem:[%s8198_s5 + $0x28] sm:$0xff] }
0x190c   :  { %v7933_v49 = vmul.f32 %v4279_v28, %v4277_v32  ;;  %v4290_v32 = vld [vmem:[%s8198_s5 + $0x20] sm:$0xff] }
0x190d   :  { %v5866_v28 = vpack.c.bf16 %v4291_v25, %v4290_v32  ;;  %v4299_v32 = vld [vmem:[%s8198_s5 + $0x68] sm:$0xff] }
0x192d   :  { %v7923_v48 = vpop.xlane.xlu1 %3970 }
0x1931   :  { %v3996_v56 = vpop.xlane.xlu1 %3995 }
0x1932   :  { %v3997_v4 = vsub.f32 %v7569_v50, %v3996_v56  ;;  %v4281_v50 = vsel %vm557_vm8, %v7933_v49, 0.0  ;;  %v4288_v56 = vld [vmem:[%s8198_s5 + $0x10] sm:$0xff] }
0x1934   :  { %v3998_v62 = vmul.f32 1.442695, %v3997_v4  ;;  %v4289_v4 = vld [vmem:[%s8198_s5 + $0x18] sm:$0xff] }
0x1936   :  { %6080 = vpow2.f32 %v3998_v62  ;;  %v5862_v62 = vpack.c.bf16 %v4289_v4, %v4288_v56  ;;  %v4297_v56 = vld [vmem:[%s8198_s5 + $0x58] sm:$0xff] }
0x1937   :  { %6082 = vrcp.f32 %v7721_v44  ;;  %v4027_v44 = vrot.slane %v7619_v42, %v6577_v27  ;;  %v4304_v42 = vld [vmem:[%s8198_s5 + $0x90] sm:$0xff] }
0x1938   :  { %6084 = vrcp.f32 %v3383_v22  ;;  %v5860_v22 = vpack.c.bf16 %v4305_v1, %v4304_v42  ;;  %v4313_v42 = vld [vmem:[%s8198_s5 + $0xd8] sm:$0xff] }
0x1940   :  { %v7926_v15 = vpop.eup %6080 }
0x1941   :  { %4001 = vrot.lane.b32.xlu1 %v7926_v15, %s6148_s30  ;;  %v6083_v37 = vpop.eup %6082 }
0x1942   :  { %v7940_v55 = vmul.f32 %v6083_v37, %v7710_v60  ;;  %v6085_v34 = vpop.eup %6084  ;;  %v4302_v60 = vld [vmem:[%s8198_s5 + $0x80] sm:$0xff]  ;;  %v4292_v37 = vld [vmem:[%s8198_s5 + $0x30] sm:$0xff] }
0x1943   :  { %v7944_v26 = vmul.f32 %v6085_v34, %v7729_v20  ;;  %v4303_v20 = vld [vmem:[%s8198_s5 + $0x88] sm:$0xff]  ;;  %v4293_v34 = vld [vmem:[%s8198_s5 + $0x38] sm:$0xff] }
0x1944   :  { %v5856_v39 = vpack.c.bf16 %v4303_v20, %v4302_v60  ;;  %v4310_v60 = vld [vmem:[%s8198_s5 + $0xc0] sm:$0xff]  ;;  %v4311_v20 = vld [vmem:[%s8198_s5 + $0xc8] sm:$0xff] }
0x1946   :  { %5857 = vmatprep.subr.bf16.mxu1 %v5856_v39  ;;  %5901 = vmatprep.subr.bf16.mxu0 %v5856_v39  ;;  %v5872_v39 = vpack.c.bf16 %v4311_v20, %v4310_v60  ;;  %v4603_v60 = vsub.f32 %v7771_v52, %v7911_v7 }
0x1948   :  { %v4604_v20 = vmul.f32 1.442695, %v4603_v60 }
0x1965   :  { %4282 = vadd.xlane.f32.xlu1 %v4281_v50  ;;  %v4308_v50 = vld [vmem:[%s8198_s5 + $0xb0] sm:$0xff] }
0x19b3   :  { %v4002_v9 = vpop.permute.xlu1 %4001 }
0x19b4   :  { %v4004_v0 = vsel %vm337_vm14, %v4002_v9, 0.0  ;;  %v4309_v9 = vld [vmem:[%s8198_s5 + $0xb8] sm:$0xff] }
0x19b5   :  { %4005 = vadd.xlane.f32.xlu1 %v4004_v0  ;;  %v5868_v0 = vpack.c.bf16 %v4309_v9, %v4308_v50  ;;  %v4316_v50 = vld [vmem:[%s8198_s5 + $0xf0] sm:$0xff]  ;;  %v4317_v9 = vld [vmem:[%s8198_s5 + $0xf8] sm:$0xff] }
0x19c6   :  { %3172 = vperm.xlu1 %5973, %v7940_v55  }
0x19ca   :  { %3795 = vperm.xlu1 %5973, %v7944_v26  }
0x19ce   :  { %4194 = vbcast.lane.b32.xlu1 %v7758_v51, 272  ;;  %v4286_v51 = vld [vmem:[%s8198_s5] sm:$0xff] }
0x19cf   :  { %v5858_v29 = vpack.c.bf16 %v4287_v16, %v4286_v51  ;;  %v4294_v51 = vld [vmem:[%s8198_s5 + $0x40] sm:$0xff] }
0x19d1   :  { %5859 = vmatpush3.bf16.msra.mxu1 %v5858_v29  ;;  %5903 = vmatpush3.bf16.msra.mxu0 %v5858_v29  ;;  %v4312_v29 = vld [vmem:[%s8198_s5 + $0xd0] sm:$0xff] }
0x19d2   :  { %4014 = vbcast.lane.b32.xlu1 %v4012_v31, 256  ;;  %5861 = vmatprep.subr.bf16.mxu1 %v5860_v22  ;;  %v5876_v1 = vpack.c.bf16 %v4313_v42, %v4312_v29 }
0x19d3   :  { %5905 = vmatprep.subr.bf16.mxu0 %v5860_v22  ;;  %v4296_v22 = vld [vmem:[%s8198_s5 + $0x50] sm:$0xff] }
0x19d4   :  { %v5878_v4 = vpack.c.bf16 %v4297_v56, %v4296_v22 }
0x19d5   :  { %5863 = vmatpush3.bf16.msra.mxu1 %v5862_v62  ;;  %5907 = vmatpush3.bf16.msra.mxu0 %v5862_v62  ;;  %v4314_v62 = vld [vmem:[%s8198_s5 + $0xe0] sm:$0xff] }
0x19d6   :  { %4018 = vbcast.lane.b32.xlu1 %v4012_v31, 264  ;;  %5865 = vmatprep.subr.bf16.mxu1 %v5864_v35  ;;  %v5880_v30 = vpack.c.bf16 %v4315_v54, %v4314_v62  ;;  %v8322_v54 = vmov 20  }
0x19d7   :  { %5909 = vmatprep.subr.bf16.mxu0 %v5864_v35  ;;  %v4298_v35 = vld [vmem:[%s8198_s5 + $0x60] sm:$0xff] }
0x19d9   :  { %5867 = vmatpush3.bf16.msra.mxu1 %v5866_v28  ;;  %5911 = vmatpush3.bf16.msra.mxu0 %v5866_v28  ;;  %v5882_v28 = vpack.c.bf16 %v4299_v32, %v4298_v35 }
0x19da   :  { %4029 = vbcast.lane.b32.xlu1 %v4027_v44, 256  ;;  %5869 = vmatprep.subr.bf16.mxu1 %v5868_v0 }
0x19db   :  { %5913 = vmatprep.subr.bf16.mxu0 %v5868_v0  ;;  %v5884_v0 = vpack.c.bf16 %v4317_v9, %v4316_v50  ;;  %v3607_v50 = vsub.f32 %v7792_v8, %v7581_v24 }
0x19de   :  { %4033 = vbcast.lane.b32.xlu1 %v4027_v44, 264 }
0x19e2   :  { %4022 = vbcast.lane.b32.xlu1 %v4012_v31, 272  ;;  %v5870_v31 = vpack.c.bf16 %v4293_v34, %v4292_v37  ;;  %v4300_v37 = vld [vmem:[%s8198_s5 + $0x70] sm:$0xff]  ;;  %v4301_v34 = vld [vmem:[%s8198_s5 + $0x78] sm:$0xff] }
0x19e4   :  { %5871 = vmatpush3.bf16.msra.mxu1 %v5870_v31  ;;  %5915 = vmatpush3.bf16.msra.mxu0 %v5870_v31  ;;  %v5886_v31 = vpack.c.bf16 %v4301_v34, %v4300_v37  ;;  %v3619_v37 = vmul.f32 %v3607_v50, %v7762_v18  ;;  %v8114_v50 = vpop.permute.xlu0 %2549 }
0x19e5   :  { %5873 = vmatprep.subr.bf16.mxu1 %v5872_v39  ;;  %5917 = vmatprep.subr.bf16.mxu0 %v5872_v39 }
0x19e6   :  { %4037 = vbcast.lane.b32.xlu1 %v4027_v44, 272  ;;  %v4295_v44 = vld [vmem:[%s8198_s5 + $0x48] sm:$0xff]  ;;  %s6151_s5 = smov [#allocation3]  }
0x19e7   :  { %v5874_v16 = vpack.c.bf16 %v4295_v44, %v4294_v51 }
0x19e9   :  { %5875 = vmatpush3.bf16.msra.mxu1 %v5874_v16  ;;  %5919 = vmatpush3.bf16.msra.mxu0 %v5874_v16 }
0x19ea   :  { %5877 = vmatprep.subr.bf16.mxu1 %v5876_v1  ;;  %5921 = vmatprep.subr.bf16.mxu0 %v5876_v1 }
0x19ed   :  { %5879 = vmatpush3.bf16.msra.mxu1 %v5878_v4  ;;  %5923 = vmatpush3.bf16.msra.mxu0 %v5878_v4 }
0x19ee   :  { %5881 = vmatprep.subr.bf16.mxu1 %v5880_v30  ;;  %5925 = vmatprep.subr.bf16.mxu0 %v5880_v30 }
0x19f1   :  { %5883 = vmatpush3.bf16.msra.mxu1 %v5882_v28  ;;  %5927 = vmatpush3.bf16.msra.mxu0 %v5882_v28 }
0x19f2   :  { %v4283_v25 = vpop.xlane.xlu1 %4282  ;;  %5885 = vmatprep.subr.bf16.mxu1 %v5884_v0  ;;  %5929 = vmatprep.subr.bf16.mxu0 %v5884_v0 }
0x19f3   :  { %6086 = vrcp.f32 %v4283_v25 }
0x19f4   :  { %6088 = vpow2.f32 %v4604_v20 }
0x19f5   :  { %5887 = vmatpush3.bf16.msra.mxu1 %v5886_v31  ;;  %5931 = vmatpush3.bf16.msra.mxu0 %v5886_v31  ;;  %6090 = vrcp.f32 %v7707_v17 }
0x19f6   :  { %6092 = vrcp.f32 %v7739_v53 }
0x19fd   :  { %v6087_v39 = vpop.eup %6086 }
0x19fe   :  { %v4285_v51 = vmul.f32 %v6087_v39, %v7933_v49  ;;  %v8053_v29 = vpop.eup %6088 }
0x19ff   :  { %v6091_v52 = vpop.eup %6090 }
0x1a00   :  { %v4618_v44 = vrot.slane %v4285_v51, %v6570_v2  ;;  %v4633_v16 = vrot.slane %v4285_v51, %v6577_v27  ;;  %v2727_v2 = vmul.f32 %v6091_v52, %v7699_v10  ;;  %v6093_v49 = vpop.eup %6092 }
0x1a01   :  { %v3350_v1 = vmul.f32 %v6093_v49, %v7724_v23 }
0x1a02   :  { %4620 = vbcast.lane.b32.xlu1 %v4618_v44, 256  ;;  %4624 = vbcast.lane.b32.xlu0 %v4618_v44, 264 }
0x1a06   :  { %4635 = vbcast.lane.b32.xlu1 %v4633_v16, 256  ;;  %4643 = vbcast.lane.b32.xlu0 %v4633_v16, 272 }
0x1a0a   :  { %4639 = vbcast.lane.b32.xlu1 %v4633_v16, 264  ;;  %4607 = vrot.lane.b32.xlu0 %v8053_v29, %s6148_s30  ;;  %s4842_s30 = sshll.u32 %s6151_s5, 4  ;;  %s4843_s30 = int_to_ptr.vmem [resolvable:$true] %s4842_s30 }
0x1a0b   :  { %s6114_s27 = scalar_lea.vmem %s4843_s30, 256  ;;  %p6119_p1 = scmp.lt.s32.totalorder %s4843_s30, %s4843_s30 }
0x1a0c   :  { %p6115_p0 = scmp.ne.s32.totalorder %s4843_s30, %s6114_s27  ;;  %p6120_p2 = scmp.lt.s32.totalorder %s6114_s27, %s6114_s27 }
0x1a0e   :  { %4628 = vbcast.lane.b32.xlu1 %v4618_v44, 272  ;;  %p6121_p3 = por %p6120_p2, %p6119_p1 }
0x1a10   :  { %p6122_p4 = pnand %p6121_p3, %p6115_p0 }
0x1a42   :  { %v4006_v7 = vpop.xlane.xlu1 %4005 }
0x1a43   :  { %6094 = vrcp.f32 %v4006_v7 }
0x1a44   :  { %6096 = vrcp.f32 %v7923_v48 }
0x1a46   :  { %v3173_v27 = vpop.permute.xlu1 %3172 }
0x1a47   :  { %v8060_v42 = vmul.f32 %v3173_v27, %v2727_v2 }
0x1a4a   :  { %v3796_v22 = vpop.permute.xlu1 %3795 }
0x1a4b   :  { %v8063_v56 = vmul.f32 %v3796_v22, %v3350_v1 }
0x1a4d   :  { %v6095_v4 = vpop.eup %6094 }
0x1a4e   :  { %v8065_v62 = vpop.permute.xlu1 %4194  ;;  %v8068_v17 = vmul.f32 %v6095_v4, %v7926_v15  ;;  %v3606_v15 = vsub.f32 %v7789_v47, %v7578_v59 }
0x1a50   :  { %4418 = vperm.xlu0 %5974, %v8068_v17   ;;  %v3618_v0 = vmul.f32 %v3606_v15, %v7762_v18  ;;  %v8094_v18 = vadd.f32 %v3619_v37, %v7581_v24 }
0x1a52   :  { %v4015_v53 = vpop.permute.xlu1 %4014  ;;  %v8091_v60 = vadd.f32 %v3618_v0, %v7578_v59 }
0x1a53   :  { %v4039_v30 = vmul.f32 %v4015_v53, %v7813_v41  ;;  %v4040_v35 = vmul.f32 %v4015_v53, %v7816_v3  ;;  %v3612_v41 = vsub.f32 %v7804_v38, %v7545_v58  ;;  %v8323_v3 = vld [vmem:[#allocation24_spill] sm:$0xff] }
0x1a54   :  { %5975 = vset.pattern.permute.xlu0 %v8322_v54 }
0x1a55   :  { %v3624_v38 = vmul.f32 %v3612_v41, %v7766_v46 }
0x1a56   :  { %v4019_v10 = vpop.permute.xlu1 %4018 }
0x1a57   :  { %v4041_v23 = vmul.f32 %v4019_v10, %v7830_v21  ;;  %v4042_v32 = vmul.f32 %v4019_v10, %v7833_v36  ;;  %v3613_v21 = vsub.f32 %v7807_v6, %v8323_v3 }
0x1a59   :  { %v4051_v25 = vadd.f32 %v4041_v23, %v4039_v30  ;;  %v4060_v28 = vadd.f32 %v4042_v32, %v4040_v35  ;;  %v3625_v20 = vmul.f32 %v3613_v21, %v7766_v46  ;;  %v4584_v23 = vsel %vm292_vm11, %v7659_v45, -inf }
0x1a5a   :  { %v4030_v9 = vpop.permute.xlu1 %4029 }
0x1a5b   :  { %v4045_v34 = vmul.f32 %v4030_v9, %v7850_v57  ;;  %v4046_v31 = vmul.f32 %v4030_v9, %v7853_v11  ;;  %v8104_v59 = vadd.f32 %v3625_v20, %v8323_v3 }
0x1a5e   :  { %v4034_v36 = vpop.permute.xlu1 %4033 }
0x1a5f   :  { %v4047_v47 = vmul.f32 %v4034_v36, %v7872_v19  ;;  %v4048_v8 = vmul.f32 %v4034_v36, %v7875_v13  ;;  %v8101_v19 = vadd.f32 %v3624_v38, %v7545_v58 }
0x1a61   :  { %v4069_v6 = vadd.f32 %v4047_v47, %v4045_v34  ;;  %v4078_v39 = vadd.f32 %v4048_v8, %v4046_v31  ;;  %v4235_v31 = vsub.f32 %v7844_v40, %v8101_v19  ;;  %v4236_v47 = vsub.f32 %v7847_v14, %v8104_v59 }
0x1a62   :  { %v4023_v51 = vpop.permute.xlu1 %4022 }
0x1a63   :  { %v4043_v57 = vmul.f32 %v4023_v51, %v8091_v60  ;;  %v4044_v11 = vmul.f32 %v4023_v51, %v8094_v18 }
0x1a65   :  { %v4052_v24 = vsel %vm358_vm4, %v4043_v57, 0.0  ;;  %v4061_v13 = vsel %vm358_vm4, %v4044_v11, 0.0 }
0x1a66   :  { %v4053_v44 = vadd.f32 %v4052_v24, %v4051_v25  ;;  %v4062_v16 = vadd.f32 %v4061_v13, %v4060_v28  ;;  %v4038_v46 = vpop.permute.xlu1 %4037  ;;  %v4247_v24 = vmul.f32 %v4235_v31, %v8065_v62  ;;  %v4248_v13 = vmul.f32 %v4236_v47, %v8065_v62 }
0x1a67   :  { %v4049_v52 = vmul.f32 %v4038_v46, %v8101_v19  ;;  %v4050_v7 = vmul.f32 %v4038_v46, %v8104_v59 }
0x1a68   :  { %v4054_v2 = vrot.slane %v4053_v44, 4  ;;  %v4063_v49 = vrot.slane %v4062_v16, 4 }
0x1a69   :  { %v4070_v27 = vsel %vm358_vm4, %v4049_v52, 0.0  ;;  %v4079_v58 = vsel %vm358_vm4, %v4050_v7, 0.0 }
0x1a6a   :  { %v4055_v1 = vadd.f32 %v4054_v2, %v4053_v44  ;;  %v4064_v22 = vadd.f32 %v4063_v49, %v4062_v16  ;;  %v4071_v4 = vadd.f32 %v4070_v27, %v4069_v6  ;;  %v4080_v53 = vadd.f32 %v4079_v58, %v4078_v39 }
0x1a6b   :  { %v4259_v27 = vadd.f32 %v4247_v24, %v8101_v19  ;;  %v4260_v58 = vadd.f32 %v4248_v13, %v8104_v59  ;;  %v8325_v19 = vld [vmem:[#allocation14_spill] sm:$0xff]  ;;  %v8326_v59 = vld [vmem:[#allocation11_spill] sm:$0xff] }
0x1a6c   :  { %v4056_v54 = vrot.slane %v4055_v1, 2  ;;  %v4065_v10 = vrot.slane %v4064_v22, 2  ;;  %v4072_v30 = vrot.slane %v4071_v4, 4  ;;  %v4081_v35 = vrot.slane %v4080_v53, 4 }
0x1a6e   :  { %v4057_v32 = vadd.f32 %v4056_v54, %v4055_v1  ;;  %v4073_v25 = vadd.f32 %v4072_v30, %v4071_v4  ;;  %v4082_v28 = vadd.f32 %v4081_v35, %v4080_v53  ;;  %v4066_v15 = vadd.f32 %v4065_v10, %v4064_v22  ;;  %v8324_v4 = vld [vmem:[#allocation16_spill] sm:$0xff] }
0x1a6f   :  { %4585 = vmax.xlane.f32.xlu0 %v4584_v23 }
0x1a70   :  { %v4074_v9 = vrot.slane %v4073_v25, 2  ;;  %v4083_v0 = vrot.slane %v4082_v28, 2  ;;  %v4067_v37 = vrot.slane %v4066_v15, 1  ;;  %v4058_v41 = vrot.slane %v4057_v32, 1 }
0x1a72   :  { %v4075_v3 = vadd.f32 %v4074_v9, %v4073_v25  ;;  %v4084_v21 = vadd.f32 %v4083_v0, %v4082_v28  ;;  %v4068_v36 = vadd.f32 %v4067_v37, %v4066_v15  ;;  %v4059_v34 = vadd.f32 %v4058_v41, %v4057_v32  ;;  %v8327_v28 = vld [vmem:[#allocation17_spill] sm:$0xff]  ;;  %v8328_v9 = vld [vmem:[#allocation19_spill] sm:$0xff] }
0x1a74   :  { %v4621_v8 = vpop.permute.xlu1 %4620  ;;  %v4625_v38 = vpop.permute.xlu0 %4624  ;;  %v4085_v20 = vrot.slane %v4084_v21, 1  ;;  %v4076_v6 = vrot.slane %v4075_v3, 1  ;;  %v4397_v46 = vmul.f32 %v4068_v36, %v4068_v36  ;;  %v4396_v52 = vmul.f32 %v4059_v34, %v4059_v34 }
0x1a75   :  { %v4645_v39 = vmul.f32 %v4621_v8, %v7862_v63  ;;  %v4646_v51 = vmul.f32 %v4621_v8, %v7865_v5  ;;  %v4647_v57 = vmul.f32 %v4625_v38, %v7878_v12  ;;  %v4648_v11 = vmul.f32 %v4625_v38, %v7881_v43 }
0x1a76   :  { %v4086_v40 = vadd.f32 %v4085_v20, %v4084_v21  ;;  %v4077_v44 = vadd.f32 %v4076_v6, %v4075_v3  ;;  %v4229_v12 = vsub.f32 %v7819_v61, %v8091_v60  ;;  %v4230_v43 = vsub.f32 %v7822_v33, %v8094_v18 }
0x1a77   :  { %v4657_v16 = vadd.f32 %v4647_v57, %v4645_v39  ;;  %v4666_v14 = vadd.f32 %v4648_v11, %v4646_v51 }
0x1a78   :  { %v4636_v7 = vpop.permute.xlu1 %4635  ;;  %v4323_v2 = vsel %vm596_vm9, %v4086_v40, %v4068_v36  ;;  %v4399_v63 = vmul.f32 %v4086_v40, %v4086_v40  ;;  %v4322_v5 = vsel %vm596_vm9, %v4077_v44, %v4059_v34  ;;  %v4398_v49 = vmul.f32 %v4077_v44, %v4077_v44  ;;  %v4644_v62 = vpop.permute.xlu0 %4643 }
0x1a79   :  { %4390 = vmatprep.mubr.f32.mxu1 %v4323_v2  ;;  %v4241_v53 = vmul.f32 %v4229_v12, %v8324_v4  ;;  %v4242_v54 = vmul.f32 %v4230_v43, %v8324_v4  ;;  %v4655_v33 = vmul.f32 %v4644_v62, %v4259_v27  ;;  %v4656_v30 = vmul.f32 %v4644_v62, %v4260_v58 }
0x1a7a   :  { %4391 = vmatmul.mubr.f32.vlgmr.msra.gmra.mrb[28].mxu1 %v4322_v5  ;;  %v4404_v1 = vsel %vm596_vm9, %v4398_v49, %v4396_v52  ;;  %v4405_v22 = vsel %vm596_vm9, %v4399_v63, %v4397_v46  ;;  %v4651_v32 = vmul.f32 %v4636_v7, %v8325_v19  ;;  %v4652_v25 = vmul.f32 %v4636_v7, %v8326_v59 }
0x1a7b   :  { %v4408_v61 = vsel %vm671_vm10, %v4404_v1, 0.0  ;;  %v4409_v10 = vsel %vm671_vm10, %v4405_v22, 0.0  ;;  %v4253_v3 = vadd.f32 %v4241_v53, %v8091_v60  ;;  %v4254_v21 = vadd.f32 %v4242_v54, %v8094_v18  ;;  %v8329_v18 = vld [vmem:[#allocation13_spill] sm:$0xff] }
0x1a7c   :  { %v4640_v35 = vpop.permute.xlu1 %4639  ;;  %v4410_v23 = vadd.f32 %v4409_v10, %v4408_v61  ;;  %v4676_v36 = vsel %vm358_vm4, %v4655_v33, 0.0  ;;  %v4685_v34 = vsel %vm358_vm4, %v4656_v30, 0.0  ;;  %v4608_v59 = vpop.permute.xlu0 %4607 }
0x1a7d   :  { %v4653_v15 = vmul.f32 %v4640_v35, %v8327_v28  ;;  %v4654_v0 = vmul.f32 %v4640_v35, %v8328_v9 }
0x1a7e   :  { %4411 = vadd.xlane.f32.xlu1 %v4410_v23 }
0x1a7f   :  { %v4675_v37 = vadd.f32 %v4653_v15, %v4651_v32  ;;  %v4684_v41 = vadd.f32 %v4654_v0, %v4652_v25  ;;  %v8330_v25 = vld [vmem:[#allocation12_spill] sm:$0xff]  ;;  %v8331_v0 = vld [vmem:[#allocation9_spill] sm:$0xff] }
0x1a80   :  { %v4629_v31 = vpop.permute.xlu1 %4628 }
0x1a81   :  { %v4677_v47 = vadd.f32 %v4676_v36, %v4675_v37  ;;  %v4686_v8 = vadd.f32 %v4685_v34, %v4684_v41  ;;  %v4649_v38 = vmul.f32 %v4629_v31, %v4253_v3  ;;  %v4650_v20 = vmul.f32 %v4629_v31, %v4254_v21  ;;  %v8332_v41 = vld [vmem:[#allocation7_spill] sm:$0xff]  ;;  %v8333_v3 = vld [vmem:[#allocation8_spill] sm:$0xff] }
0x1a82   :  { %v2544_v37 = vmax.f32 %v8331_v0, 1e-16  ;;  %6098 = vrcp.f32 %v8332_v41  ;;  %v3167_v21 = vmax.f32 %v8333_v3, 1e-16 }
0x1a83   :  { %v4678_v6 = vrot.slane %v4677_v47, 4  ;;  %v4687_v39 = vrot.slane %v4686_v8, 4  ;;  %v4658_v51 = vsel %vm358_vm4, %v4649_v38, 0.0  ;;  %v4667_v57 = vsel %vm358_vm4, %v4650_v20, 0.0  ;;  %v8335_v20 = vld [vmem:[#allocation27_spill] sm:$0xff] }
0x1a84   :  { %v4659_v11 = vadd.f32 %v4658_v51, %v4657_v16  ;;  %v4668_v24 = vadd.f32 %v4667_v57, %v4666_v14  ;;  %6100 = vrsqrt.f32 %v2544_v37 }
0x1a85   :  { %v4679_v60 = vadd.f32 %v4678_v6, %v4677_v47  ;;  %v4688_v13 = vadd.f32 %v4687_v39, %v4686_v8  ;;  %2554 = vperm.xlu0 %5975, %v8329_v18   ;;  %6102 = vrsqrt.f32 %v3167_v21  ;;  %v8334_v8 = vld [vmem:[#allocation6_spill] sm:$0xff] }
0x1a86   :  { %v4660_v40 = vrot.slane %v4659_v11, 4  ;;  %v4669_v44 = vrot.slane %v4668_v24, 4 }
0x1a87   :  { %v4680_v46 = vrot.slane %v4679_v60, 2  ;;  %v4689_v52 = vrot.slane %v4688_v13, 2 }
0x1a88   :  { %v4661_v7 = vadd.f32 %v4660_v40, %v4659_v11  ;;  %v4670_v2 = vadd.f32 %v4669_v44, %v4668_v24 }
0x1a89   :  { %v4681_v63 = vadd.f32 %v4680_v46, %v4679_v60  ;;  %3177 = vperm.xlu0 %5975, %v7940_v55   ;;  %v4690_v5 = vadd.f32 %v4689_v52, %v4688_v13  ;;  %v8336_v60 = vld [vmem:[#allocation20_spill] sm:$0xff] }
0x1a8a   :  { %v4662_v49 = vrot.slane %v4661_v7, 2  ;;  %v4671_v12 = vrot.slane %v4670_v2, 2 }
0x1a8b   :  { %v4691_v43 = vrot.slane %v4690_v5, 1  ;;  %v4682_v62 = vrot.slane %v4681_v63, 1 }
0x1a8c   :  { %v4663_v16 = vadd.f32 %v4662_v49, %v4661_v7  ;;  %v4672_v14 = vadd.f32 %v4671_v12, %v4670_v2  ;;  %v8337_v7 = vld [vmem:[#allocation10_spill] sm:$0xff] }
0x1a8d   :  { %3800 = vperm.xlu0 %5975, %v7944_v26   ;;  %v4692_v27 = vadd.f32 %v4691_v43, %v4690_v5  ;;  %v4683_v58 = vadd.f32 %v4682_v62, %v4681_v63  ;;  %v4610_v63 = vsel %vm337_vm14, %v4608_v59, 0.0 }
0x1a8e   :  { %v4673_v1 = vrot.slane %v4672_v14, 1  ;;  %v4664_v22 = vrot.slane %v4663_v16, 1 }
0x1a8f   :  { %v4806_v54 = vmul.f32 %v4692_v27, %v4692_v27  ;;  %v4805_v61 = vmul.f32 %v4683_v58, %v4683_v58 }
0x1a90   :  { %v4674_v4 = vadd.f32 %v4673_v1, %v4672_v14  ;;  %v4665_v53 = vadd.f32 %v4664_v22, %v4663_v16 }
0x1a91   :  { %4423 = vperm.xlu0 %5975, %v8068_v17   ;;  %v6097_v17 = vpop.eup %6096 }
0x1a92   :  { %v4730_v55 = vsel %vm596_vm9, %v4692_v27, %v4674_v4  ;;  %v4804_v10 = vmul.f32 %v4674_v4, %v4674_v4  ;;  %v4729_v33 = vsel %vm596_vm9, %v4683_v58, %v4665_v53  ;;  %v4803_v30 = vmul.f32 %v4665_v53, %v4665_v53  ;;  %v6099_v31 = vpop.eup %6098 }
0x1a93   :  { %4797 = vmatprep.mubr.f32.mxu0 %v4730_v55  ;;  %v3973_v28 = vmul.f32 %v6097_v17, %v8330_v25  ;;  %v6101_v48 = vpop.eup %6100  ;;  %v2104_v38 = vmul.f32 %v6099_v31, %v8334_v8 }
0x1a94   :  { %4798 = vmatmul.mubr.f32.vlgmr.msra.gmra.mrb[30].mxu0 %v4729_v33  ;;  %v4811_v26 = vsel %vm596_vm9, %v4805_v61, %v4803_v30  ;;  %v4812_v35 = vsel %vm596_vm9, %v4806_v54, %v4804_v10  ;;  %v2546_v6 = vmul.f32 %v6101_v48, %v8335_v20  ;;  %v6103_v39 = vpop.eup %6102 }
0x1a95   :  { %v4815_v23 = vsel %vm671_vm10, %v4811_v26, 0.0  ;;  %v4816_v19 = vsel %vm671_vm10, %v4812_v35, 0.0  ;;  %v2552_v57 = vmul.f32 %v8114_v50, %v2104_v38  ;;  %v3169_v13 = vmul.f32 %v6103_v39, %v8336_v60 }
0x1a96   :  { %v4817_v32 = vadd.f32 %v4816_v19, %v4815_v23 }
0x1acf   :  { %v4419_v15 = vpop.permute.xlu0 %4418 }
0x1ad0   :  { %v4421_v9 = vmul.f32 %v4419_v15, %v3973_v28 }
0x1afc   :  { %v4586_v36 = vpop.xlane.xlu0 %4585 }
0x1afd   :  { %v4587_v34 = vsub.f32 %v7659_v45, %v4586_v36 }
0x1aff   :  { %v4588_v47 = vmul.f32 1.442695, %v4587_v34 }
0x1b01   :  { %6104 = vpow2.f32 %v4588_v47 }
0x1b04   :  { %v2555_v51 = vpop.permute.xlu0 %2554 }
0x1b05   :  { %v2557_v11 = vmul.f32 %v2555_v51, %v2546_v6 }
0x1b07   :  { %v2558_v24 = vadd.f32 %v2557_v11, %v2552_v57 }
0x1b08   :  { %v3178_v18 = vpop.permute.xlu0 %3177 }
0x1b09   :  { %2560 = vst.msk [vmem:[#allocation3 + $0x6] sm:$0x3] %vm292_vm11, %v2558_v24  ;;  %v3180_v45 = vmul.f32 %v3178_v18, %v3169_v13 }
0x1b0b   :  { %v6105_v40 = vpop.eup %6104  ;;  %v3181_v44 = vadd.f32 %v3180_v45, %v8060_v42  ;;  %v4412_v5 = vpop.xlane.xlu1 %4411 }
0x1b0c   :  { %v3801_v46 = vpop.permute.xlu0 %3800  ;;  %v4590_v52 = vsel %vm292_vm11, %v6105_v40, 0.0  ;;  %v4413_v49 = vmax.f32 %v4412_v5, 1e-16 }
0x1b0d   :  { %3183 = vst.msk [vmem:[#allocation3 + $0x8] sm:$0x3] %vm292_vm11, %v3181_v44  ;;  %v3803_v2 = vmul.f32 %v3801_v46, %v8337_v7  ;;  %4591 = vadd.xlane.f32.xlu1 %v4590_v52 }
0x1b0e   :  { %6106 = vrsqrt.f32 %v4413_v49 }
0x1b0f   :  { %v3804_v50 = vadd.f32 %v3803_v2, %v8063_v56 }
0x1b10   :  { %v4424_v14 = vpop.permute.xlu0 %4423 }
0x1b11   :  { %3806 = vst.msk [vmem:[#allocation3 + $0xa] sm:$0x3] %vm292_vm11, %v3804_v50  ;;  %4611 = vadd.xlane.f32.xlu1 %v4610_v63 }
0x1b15   :  { %4818 = vadd.xlane.f32.xlu1 %v4817_v32 }
0x1b18   :  { %v6107_v62 = vpop.eup %6106 }
0x1b4d   :  { %v5272_v42 = vpop.f32.mrb[28].mxu1 }
0x1b4e   :  { %v5273_v12 = vpop.f32.mrb[29].mxu1 }
0x1b4f   :  { %v5274_v43 = vadd.f32 %v5273_v12, %v5272_v42 }
0x1b51   :  { %v4415_v16 = vmul.f32 %v6107_v62, %v5274_v43 }
0x1b53   :  { %v4426_v27 = vmul.f32 %v4424_v14, %v4415_v16 }
0x1b55   :  { %v4427_v58 = vadd.f32 %v4426_v27, %v4421_v9 }
0x1b57   :  { %4429 = vst.msk [vmem:[#allocation3 + $0xc] sm:$0x3] %vm292_vm11, %v4427_v58 }
0x1b67   :  { %v5317_v56 = vpop.f32.mrb[30].mxu0 }
0x1b68   :  { %v5318_v1 = vpop.f32.mrb[31].mxu0 }
0x1b69   :  { %v5319_v22 = vadd.f32 %v5318_v1, %v5317_v56 }
0x1b9a   :  { %v4592_v4 = vpop.xlane.xlu1 %4591 }
0x1b9e   :  { %v4612_v53 = vpop.xlane.xlu1 %4611 }
0x1b9f   :  { %6108 = vrcp.f32 %v4612_v53 }
0x1ba0   :  { %6110 = vrcp.f32 %v4592_v4 }
0x1ba2   :  { %v4819_v55 = vpop.xlane.xlu1 %4818 }
0x1ba3   :  { %v4820_v10 = vmax.f32 %v4819_v55, 1e-16 }
0x1ba5   :  { %6112 = vrsqrt.f32 %v4820_v10 }
0x1ba9   :  { %v6109_v54 = vpop.eup %6108 }
0x1baa   :  { %v4614_v61 = vmul.f32 %v6109_v54, %v8053_v29  ;;  %v6111_v33 = vpop.eup %6110 }
0x1bab   :  { %v4594_v26 = vmul.f32 %v6111_v33, %v6105_v40 }
0x1bac   :  { %4830 = vperm.xlu0 %5975, %v4614_v61   ;;  %4825 = vperm.xlu1 %5973, %v4614_v61  }
0x1baf   :  { %v6113_v30 = vpop.eup %6112 }
0x1bb0   :  { %v4822_v35 = vmul.f32 %v6113_v30, %v5319_v22 }
0x1c2b   :  { %v4826_v23 = vpop.permute.xlu1 %4825  ;;  %v4831_v19 = vpop.permute.xlu0 %4830 }
0x1c2c   :  { %v4828_v32 = vmul.f32 %v4826_v23, %v4594_v26  ;;  %v4833_v17 = vmul.f32 %v4831_v19, %v4822_v35 }
0x1c2e   :  { %v4834_v59 = vadd.f32 %v4833_v17, %v4828_v32 }
0x1c30   :  { %4836 = vst.msk [vmem:[#allocation3 + $0xe] sm:$0x3] %vm292_vm11, %v4834_v59 }
0x1c31   :  { %6125 = shalt.err (!%p6122_p4)
}
0x1c32   :  { %s6126_s6 = scalar_lea.hbm %s8200_s7, 256 }
0x1c33   :  { %p6127_p5 = scmp.ne.s32.totalorder %s8200_s7, %s6126_s6  ;;  %p6130_p6 = scmp.lt.u32.totalorder %s6126_s6, %s8200_s7 }
0x1c35   :  { %p6132_p7 = pnand %p6130_p6, %p6127_p5 }
0x1c37   :  { %6135 = shalt.err (!%p6132_p7)
}
0x1c38   :  { %s6152_s11 = smov 32   ;;  %s6153_s12 = smov 2  }
0x1c39   :  { %4848 = dma.vmem_to_hbm [thread:$0]  %s4843_s30, 256, %s8200_s7, [#allocation4], %s6152_s11, %s6152_s11, %s6153_s12  }
0x1c3a   :  { %6136 = dma.done.wait [#allocation4], 256  }
0x1c3b   :  { %6137 = vsyncadd [#allocation4], 4294967040 }
0x1c3c   :  { %4852 = vsyncpa [#allocation4], 1 }

</bundles_post_ra>
